<compile_context>
chip_gen: v5e
topology: v5e:2x2
jax: 0.10.0
libtpu: 0.0.40
codegen_flags: <defaults>
</compile_context>

<pallas_src>
import functools
import math

import jax
import jax.numpy as jnp
from jax.experimental import pallas as pl
from jax.experimental.pallas import tpu as pltpu


# ----------------------------------------------------------------------------------
# Exact-ish (erf-based) GELU, matching torch.nn.GELU() default.  Mosaic has no native
# erf, so erf uses the Abramowitz&Stegun 7.1.26 polynomial (~1.5e-7 abs error).
# ----------------------------------------------------------------------------------
def _erf(x):
    p = 0.3275911
    a1, a2, a3, a4, a5 = 0.254829592, -0.284496736, 1.421413741, -1.453152027, 1.061405429
    sgn = jnp.where(x >= 0.0, 1.0, -1.0)
    ax = jnp.abs(x)
    t = 1.0 / (1.0 + p * ax)
    poly = ((((a5 * t + a4) * t + a3) * t + a2) * t + a1) * t
    return sgn * (1.0 - poly * jnp.exp(-ax * ax))


def _gelu(x):
    return 0.5 * x * (1.0 + _erf(x * 0.7071067811865476))


# ----------------------------------------------------------------------------------
# Whole-image depthwise 3x3 / maxpool 3x3 over the shared pre-padded VMEM scratch.
# Only the first `width` lanes of the scratch are read.
# ----------------------------------------------------------------------------------
def _dw3x3(pad_ref, taps, H, W):
    # taps: (9, Cw) value; pad_ref interior lanes [0:Cw] hold the image, borders are 0.
    Cw = taps.shape[-1]
    acc = pad_ref[0:H, 0:W, 0:Cw] * taps[0:1, :]
    for k in range(1, 9):
        dh, dw = divmod(k, 3)
        acc = acc + pad_ref[dh:dh + H, dw:dw + W, 0:Cw] * taps[k:k + 1, :]
    return acc                                                      # (H, W, Cw)


def _maxpool3x3(pad_ref, H, W, Cw):
    # pad_ref interior lanes [0:Cw] hold the image, borders are -inf.
    m = pad_ref[0:H, 0:W, 0:Cw]
    for k in range(1, 9):
        dh, dw = divmod(k, 3)
        m = jnp.maximum(m, pad_ref[dh:dh + H, dw:dw + W, 0:Cw])
    return m                                                        # (H, W, Cw)


# ----------------------------------------------------------------------------------
# Fused Mixer kernel: one batch element per grid step.
# ----------------------------------------------------------------------------------
def _mixer_kernel(x_ref,
                  w1_ref, wd1_ref, w2_ref, b2_ref,
                  wqkv_ref,
                  wdfa_ref, wdfb_ref, wdfc_ref,
                  wpa_ref, wpb_ref, wpc_ref, bp_ref,
                  o_ref,
                  pad,                       # shared (H+2, W+2, PW) f32 scratch
                  *, H, W, ps, pool_lo, pool_hi, LP, scale, mm_dtype):
    f32 = jnp.float32
    N = H * W
    C = x_ref.shape[-1]
    cnn_dim = w1_ref.shape[-1]
    pool_dim = w2_ref.shape[-1]
    slab_w = pool_hi - pool_lo
    PW = pad.shape[-1]
    Hp, Wp = H // ps, W // ps
    Np = Hp * Wp
    neg = jnp.finfo(f32).min

    x = x_ref[0].astype(f32)                                        # (H, W, C)
    x_flat = x.reshape(N, C)
    xm = x_flat.astype(mm_dtype)

    # Border-only init of the shared pad scratch (interiors are always overwritten).
    def set_border(val):
        pad[0:1, :, :] = jnp.full((1, W + 2, PW), val, f32)
        pad[H + 1:H + 2, :, :] = jnp.full((1, W + 2, PW), val, f32)
        pad[:, 0:1, :] = jnp.full((H + 2, 1, PW), val, f32)
        pad[:, W + 1:W + 2, :] = jnp.full((H + 2, 1, PW), val, f32)

    # ======================= HighMixer: max-pool branch (first: -inf borders) ======
    set_border(neg)
    pad[1:H + 1, 1:W + 1, 0:slab_w] = x[:, :, pool_lo:pool_hi]
    m = _maxpool3x3(pad, H, W, slab_w).reshape(N, slab_w)
    p2 = jnp.dot(m.astype(mm_dtype), w2_ref[...],
                 preferred_element_type=f32) + b2_ref[...]          # (N, pool_dim)
    px_img = _gelu(p2).reshape(H, W, pool_dim)

    # Zero borders once; every remaining depthwise conv is zero-padded.
    set_border(0.0)

    # =========================== HighMixer: conv branch ===========================
    c1 = jnp.dot(xm, w1_ref[...], preferred_element_type=f32)       # (N, cnn_dim)
    pad[1:H + 1, 1:W + 1, 0:cnn_dim] = c1.reshape(H, W, cnn_dim)
    cx_img = _gelu(_dw3x3(pad, wd1_ref[...], H, W))                 # (H, W, cnn_dim)

    # ================================ LowMixer =====================================
    # Structured avg-pool (reshape + pair adds) over all channels; channel selection is
    # folded into the zero-padded fused qkv weight, so no activation lane slicing.
    if ps > 1:
        t = x.reshape(Hp, ps, W, C)                  # split leading H -> (Hp, ps)
        th = t[:, 0]
        for d in range(1, ps):
            th = th + t[:, d]                        # (Hp, W, C)
        u = th.reshape(Hp, Wp, ps, C)                # split sublane W -> (Wp, ps)
        pw = u[:, :, 0]
        for d in range(1, ps):
            pw = pw + u[:, :, d]                     # (Hp, Wp, C)
        xa = (pw * (1.0 / float(ps * ps))).reshape(Np, C)
    else:
        xa = x_flat

    qkv = jnp.dot(xa.astype(mm_dtype), wqkv_ref[...],
                  preferred_element_type=f32)                        # (Np, 3*LP)
    q = qkv[:, 0:LP]
    k = qkv[:, LP:2 * LP]
    v = qkv[:, 2 * LP:3 * LP]
    attn = jax.lax.dot_general(q.astype(mm_dtype), k.astype(mm_dtype),
                               (((1,), (1,)), ((), ())),
                               preferred_element_type=f32) * scale   # (Np, Np)
    attn = jnp.exp(attn - jnp.max(attn, axis=-1, keepdims=True))
    attn = attn * pl.reciprocal(jnp.sum(attn, axis=-1, keepdims=True), approx=True)
    xa_out = jnp.dot(attn.astype(mm_dtype), v.astype(mm_dtype),
                     preferred_element_type=f32)                     # (Np, LP)

    # Nearest upsample x ps via sublane/leading broadcasts (no U matmul).
    if ps > 1:
        xa_img = xa_out.reshape(Hp, Wp, LP)
        uw = jnp.broadcast_to(xa_img[:, :, None, :], (Hp, Wp, ps, LP)).reshape(Hp, W, LP)
        lx_img = jnp.broadcast_to(uw[:, None, :, :], (Hp, ps, W, LP)).reshape(H, W, LP)
    else:
        lx_img = xa_out.reshape(H, W, LP)

    # ========================= fuse: y = g + dw3x3(g), then proj ===================
    # conv_fuse is depthwise -> applied per channel group; the 1x1 projection is the
    # matching block-row split of wp, summed -- identical to concat + proj.
    pad[1:H + 1, 1:W + 1, 0:cnn_dim] = cx_img
    ya = (cx_img + _dw3x3(pad, wdfa_ref[...], H, W)).reshape(N, cnn_dim)
    pad[1:H + 1, 1:W + 1, 0:pool_dim] = px_img
    yb = (px_img + _dw3x3(pad, wdfb_ref[...], H, W)).reshape(N, pool_dim)
    pad[1:H + 1, 1:W + 1, 0:LP] = lx_img
    yc = (lx_img + _dw3x3(pad, wdfc_ref[...], H, W)).reshape(N, LP)

    out = (jnp.dot(ya.astype(mm_dtype), wpa_ref[...], preferred_element_type=f32)
           + jnp.dot(yb.astype(mm_dtype), wpb_ref[...], preferred_element_type=f32)
           + jnp.dot(yc.astype(mm_dtype), wpc_ref[...], preferred_element_type=f32)
           + bp_ref[...])
    o_ref[0] = out.astype(o_ref.dtype)                               # (N, dim)


# ----------------------------------------------------------------------------------
# Wrapper
# ----------------------------------------------------------------------------------
def _const_spec(a):
    # Grid-invariant weight: whole-array block, constant index, single-buffered.
    zeros = (0,) * a.ndim
    return pl.BlockSpec(a.shape, lambda b: zeros, pipeline_mode=pl.Buffered(1))


def init_params(key, dim, num_heads=8, attention_head=1):
    head_dim = dim // num_heads
    low_dim = attention_head * head_dim
    high_dim = dim - low_dim
    cnn_in = high_dim // 2
    cnn_dim = cnn_in * 2
    pool_in = high_dim // 2
    pool_dim = pool_in * 2
    Cf = low_dim + high_dim * 2
    ks = jax.random.split(key, 10)
    std = 0.1
    n = lambda k, shape: jax.random.normal(k, shape, jnp.float32) * std
    return dict(
        w1=n(ks[0], (cnn_in, cnn_dim)),      # conv1.weight (1x1, no bias), (Cin, Cout)
        wd1=n(ks[1], (9, cnn_dim)),          # proj1 depthwise 3x3 taps, (dh*3+dw, C)
        w2=n(ks[2], (pool_in, pool_dim)),    # proj2.weight (1x1)
        b2=n(ks[3], (1, pool_dim)),          # proj2.bias
        wq=n(ks[4], (low_dim, low_dim)),     # qkv.weight split (bias=False)
        wk=n(ks[5], (low_dim, low_dim)),
        wv=n(ks[6], (low_dim, low_dim)),
        wdf=n(ks[7], (9, Cf)),               # conv_fuse depthwise 3x3 taps
        wp=n(ks[8], (Cf, dim)),              # proj.weight (1x1)
        bp=n(ks[9], (1, dim)),               # proj.bias
    )


def mixer_forward(x, params, *, dim, num_heads=8, attention_head=1, pool_size=2,
                  mm_dtype=jnp.bfloat16, out_dtype=jnp.float32):
    B, N, C = x.shape
    assert C == dim
    H = W = int(math.isqrt(N))
    assert H * W == N

    head_dim = dim // num_heads
    low_dim = attention_head * head_dim
    high_dim = dim - low_dim
    cnn_in = high_dim // 2
    cnn_dim = cnn_in * 2
    pool_in = high_dim // 2
    pool_dim = pool_in * 2

    # TODO(synk): multi-head low-mixer attention (attention_head > 1) not implemented
    # (module default is 1).
    assert attention_head == 1
    ps = pool_size
    if ps > 1:
        assert H % ps == 0 and W % ps == 0
    scale = float(low_dim // attention_head) ** (-0.5)

    # Lane-padded width of the low branch (q/k/v, attention output, fuse group c).
    LP = ((low_dim + 127) // 128) * 128
    # Lane-aligned channel slab covering the pool group [cnn_in, cnn_in + pool_in).
    pool_lo = (cnn_in // 128) * 128
    pool_hi = min(C, ((cnn_in + pool_in + 127) // 128) * 128)
    slab_w = pool_hi - pool_lo
    PW = max(cnn_dim, pool_dim, LP, slab_w)      # shared pad-scratch lane width

    # Keep the caller's dtype for the input DMA (pass bf16 to halve input HBM traffic);
    # the kernel upcasts to f32 internally.
    x4 = x.reshape(B, H, W, C)

    def embed_rows(w, off, rows):
        return jnp.pad(w, ((off, rows - off - w.shape[0]), (0, 0)))

    # Channel selection folded into zero-padded weights (channel layout of x:
    # [cnn_in | pool_in | low_dim]).
    w1f = embed_rows(params["w1"], 0, C).astype(mm_dtype)                       # (C, cnn_dim)
    w2f = embed_rows(params["w2"], cnn_in - pool_lo, slab_w).astype(mm_dtype)   # (slab_w, pool_dim)
    pad_cols = lambda w: jnp.pad(w, ((0, 0), (0, LP - w.shape[1])))
    wqkv = jnp.concatenate([pad_cols(params["wq"]),
                            pad_cols(params["wk"]),
                            pad_cols(params["wv"])], axis=1)                    # (low_dim, 3*LP)
    wqkv_f = embed_rows(wqkv, high_dim, C).astype(mm_dtype)                     # (C, 3*LP)

    # Fuse depthwise taps / projection split per channel group; low group lane-padded.
    wdf = params["wdf"]
    wdfa = wdf[:, :cnn_dim]
    wdfb = wdf[:, cnn_dim:cnn_dim + pool_dim]
    wdfc = jnp.pad(wdf[:, cnn_dim + pool_dim:], ((0, 0), (0, LP - low_dim)))
    wp = params["wp"]
    wpa = wp[:cnn_dim].astype(mm_dtype)
    wpb = wp[cnn_dim:cnn_dim + pool_dim].astype(mm_dtype)
    wpc = jnp.pad(wp[cnn_dim + pool_dim:], ((0, LP - low_dim), (0, 0))).astype(mm_dtype)

    weights = (w1f, params["wd1"], w2f, params["b2"], wqkv_f,
               wdfa, wdfb, wdfc, wpa, wpb, wpc, params["bp"])

    kernel = functools.partial(_mixer_kernel, H=H, W=W, ps=ps,
                               pool_lo=pool_lo, pool_hi=pool_hi, LP=LP,
                               scale=scale, mm_dtype=mm_dtype)

    out_flat = pl.pallas_call(
        kernel,
        grid=(B,),
        in_specs=[pl.BlockSpec((1, H, W, C), lambda b: (b, 0, 0, 0))]
                 + [_const_spec(a) for a in weights],
        out_specs=pl.BlockSpec((1, N, dim), lambda b: (b, 0, 0)),
        out_shape=jax.ShapeDtypeStruct((B, N, dim), out_dtype),
        scratch_shapes=[pltpu.VMEM((H + 2, W + 2, PW), jnp.float32)],
        compiler_params=pltpu.CompilerParams(
            dimension_semantics=("parallel",),
            vmem_limit_bytes=64 * 1024 * 1024),
    )(x4, *weights)

    # Matches PyTorch's final x.permute(0, 2, 3, 1): shape (B, H, W, dim).
    return out_flat.reshape(B, H, W, dim)


if __name__ == "__main__":
    B, dim, num_heads, attention_head, pool_size = 2, 32, 8, 1, 2
    H = W = 8
    N = H * W

    key = jax.random.PRNGKey(0)
    kx, kp = jax.random.split(key)
    x = jax.random.normal(kx, (B, N, dim), jnp.float32)
    params = init_params(kp, dim, num_heads=num_heads, attention_head=attention_head)

    out = mixer_forward(x, params, dim=dim, num_heads=num_heads,
                        attention_head=attention_head, pool_size=pool_size)
    out = jax.block_until_ready(out)

    assert out.shape == (B, H, W, dim), out.shape
    assert bool(jnp.all(jnp.isfinite(out)))
    print("KERNEL_OK")
</pallas_src>

<mosaic_0001>
module attributes {stable_mosaic.version = 11 : i64} {
  func.func @_mixer_kernel(%arg0: i32, %arg1: memref<1x8x8x32xf32, #tpu.memory_space<vmem>>, %arg2: memref<32x28xbf16, #tpu.memory_space<vmem>>, %arg3: memref<9x28xf32, #tpu.memory_space<vmem>>, %arg4: memref<32x28xbf16, #tpu.memory_space<vmem>>, %arg5: memref<1x28xf32, #tpu.memory_space<vmem>>, %arg6: memref<32x384xbf16, #tpu.memory_space<vmem>>, %arg7: memref<9x28xf32, #tpu.memory_space<vmem>>, %arg8: memref<9x28xf32, #tpu.memory_space<vmem>>, %arg9: memref<9x128xf32, #tpu.memory_space<vmem>>, %arg10: memref<28x32xbf16, #tpu.memory_space<vmem>>, %arg11: memref<28x32xbf16, #tpu.memory_space<vmem>>, %arg12: memref<128x32xbf16, #tpu.memory_space<vmem>>, %arg13: memref<1x32xf32, #tpu.memory_space<vmem>>, %arg14: memref<1x64x32xf32, #tpu.memory_space<vmem>>, %arg15: memref<10x10x128xf32, #tpu.memory_space<vmem>>) attributes {dimension_semantics = [#tpu.dimension_semantics<parallel>], iteration_bounds = array<i64: 2>, scalar_prefetch = 0 : i64, scratch_operands = 1 : i64, tpu.core_type = #tpu.core_type<tc>, window_params = [{transform_indices = @transform_0, window_bounds = array<i64: 1, 8, 8, 32>}, {pipeline_mode = #tpu.pipeline_mode<synchronous>, transform_indices = @transform_1, window_bounds = array<i64: 32, 28>}, {pipeline_mode = #tpu.pipeline_mode<synchronous>, transform_indices = @transform_2, window_bounds = array<i64: 9, 28>}, {pipeline_mode = #tpu.pipeline_mode<synchronous>, transform_indices = @transform_3, window_bounds = array<i64: 32, 28>}, {pipeline_mode = #tpu.pipeline_mode<synchronous>, transform_indices = @transform_4, window_bounds = array<i64: 1, 28>}, {pipeline_mode = #tpu.pipeline_mode<synchronous>, transform_indices = @transform_5, window_bounds = array<i64: 32, 384>}, {pipeline_mode = #tpu.pipeline_mode<synchronous>, transform_indices = @transform_6, window_bounds = array<i64: 9, 28>}, {pipeline_mode = #tpu.pipeline_mode<synchronous>, transform_indices = @transform_7, window_bounds = array<i64: 9, 28>}, {pipeline_mode = #tpu.pipeline_mode<synchronous>, transform_indices = @transform_8, window_bounds = array<i64: 9, 128>}, {pipeline_mode = #tpu.pipeline_mode<synchronous>, transform_indices = @transform_9, window_bounds = array<i64: 28, 32>}, {pipeline_mode = #tpu.pipeline_mode<synchronous>, transform_indices = @transform_10, window_bounds = array<i64: 28, 32>}, {pipeline_mode = #tpu.pipeline_mode<synchronous>, transform_indices = @transform_11, window_bounds = array<i64: 128, 32>}, {pipeline_mode = #tpu.pipeline_mode<synchronous>, transform_indices = @transform_12, window_bounds = array<i64: 1, 32>}, {transform_indices = @transform_13, window_bounds = array<i64: 1, 64, 32>}]} {
    %c0 = arith.constant 0 : index
    %c0_0 = arith.constant 0 : index
    %c0_1 = arith.constant 0 : index
    %c0_2 = arith.constant 0 : index
    %0 = vector.load %arg1[%c0, %c0_0, %c0_1, %c0_2] : memref<1x8x8x32xf32, #tpu.memory_space<vmem>>, vector<1x8x8x32xf32>
    %1 = vector.shape_cast %0 : vector<1x8x8x32xf32> to vector<8x8x32xf32>
    %2 = vector.shape_cast %1 : vector<8x8x32xf32> to vector<64x32xf32>
    %3 = arith.truncf %2 : vector<64x32xf32> to vector<64x32xbf16>
    %cst = arith.constant -3.40282347E+38 : f32
    %4 = vector.broadcast %cst : f32 to vector<1x10x128xf32>
    %c0_3 = arith.constant 0 : index
    %c0_4 = arith.constant 0 : index
    %c0_5 = arith.constant 0 : index
    %5 = vector.load %arg15[%c0_3, %c0_4, %c0_5] : memref<10x10x128xf32, #tpu.memory_space<vmem>>, vector<1x10x128xf32>
    tpu.vector_store %arg15[%c0_3, %c0_4, %c0_5], %4 {strides = array<i32>} : memref<10x10x128xf32, #tpu.memory_space<vmem>>, vector<1x10x128xf32>,
    %cst_6 = arith.constant -3.40282347E+38 : f32
    %6 = vector.broadcast %cst_6 : f32 to vector<1x10x128xf32>
    %c9 = arith.constant 9 : index
    %c0_7 = arith.constant 0 : index
    %c0_8 = arith.constant 0 : index
    %7 = vector.load %arg15[%c9, %c0_7, %c0_8] : memref<10x10x128xf32, #tpu.memory_space<vmem>>, vector<1x10x128xf32>
    tpu.vector_store %arg15[%c9, %c0_7, %c0_8], %6 {strides = array<i32>} : memref<10x10x128xf32, #tpu.memory_space<vmem>>, vector<1x10x128xf32>,
    %cst_9 = arith.constant -3.40282347E+38 : f32
    %8 = vector.broadcast %cst_9 : f32 to vector<10x1x128xf32>
    %c0_10 = arith.constant 0 : index
    %c0_11 = arith.constant 0 : index
    %c0_12 = arith.constant 0 : index
    %9 = vector.load %arg15[%c0_10, %c0_11, %c0_12] : memref<10x10x128xf32, #tpu.memory_space<vmem>>, vector<10x1x128xf32>
    tpu.vector_store %arg15[%c0_10, %c0_11, %c0_12], %8 {strides = array<i32>} : memref<10x10x128xf32, #tpu.memory_space<vmem>>, vector<10x1x128xf32>,
    %cst_13 = arith.constant -3.40282347E+38 : f32
    %10 = vector.broadcast %cst_13 : f32 to vector<10x1x128xf32>
    %c0_14 = arith.constant 0 : index
    %c9_15 = arith.constant 9 : index
    %c0_16 = arith.constant 0 : index
    %11 = vector.load %arg15[%c0_14, %c9_15, %c0_16] : memref<10x10x128xf32, #tpu.memory_space<vmem>>, vector<10x1x128xf32>
    tpu.vector_store %arg15[%c0_14, %c9_15, %c0_16], %10 {strides = array<i32>} : memref<10x10x128xf32, #tpu.memory_space<vmem>>, vector<10x1x128xf32>,
    %c1 = arith.constant 1 : index
    %c1_17 = arith.constant 1 : index
    %c0_18 = arith.constant 0 : index
    %12 = vector.load %arg15[%c1, %c1_17, %c0_18] : memref<10x10x128xf32, #tpu.memory_space<vmem>>, vector<8x8x32xf32>
    tpu.vector_store %arg15[%c1, %c1_17, %c0_18], %1 {strides = array<i32>} : memref<10x10x128xf32, #tpu.memory_space<vmem>>, vector<8x8x32xf32>,
    %c0_19 = arith.constant 0 : index
    %c0_20 = arith.constant 0 : index
    %c0_21 = arith.constant 0 : index
    %13 = vector.load %arg15[%c0_19, %c0_20, %c0_21] : memref<10x10x128xf32, #tpu.memory_space<vmem>>, vector<8x8x32xf32>
    %c0_22 = arith.constant 0 : index
    %c1_23 = arith.constant 1 : index
    %c0_24 = arith.constant 0 : index
    %14 = vector.load %arg15[%c0_22, %c1_23, %c0_24] : memref<10x10x128xf32, #tpu.memory_space<vmem>>, vector<8x8x32xf32>
    %15 = arith.maximumf %13, %14 : vector<8x8x32xf32>
    %c0_25 = arith.constant 0 : index
    %c2 = arith.constant 2 : index
    %c0_26 = arith.constant 0 : index
    %16 = vector.load %arg15[%c0_25, %c2, %c0_26] : memref<10x10x128xf32, #tpu.memory_space<vmem>>, vector<8x8x32xf32>
    %17 = arith.maximumf %15, %16 : vector<8x8x32xf32>
    %c1_27 = arith.constant 1 : index
    %c0_28 = arith.constant 0 : index
    %c0_29 = arith.constant 0 : index
    %18 = vector.load %arg15[%c1_27, %c0_28, %c0_29] : memref<10x10x128xf32, #tpu.memory_space<vmem>>, vector<8x8x32xf32>
    %19 = arith.maximumf %17, %18 : vector<8x8x32xf32>
    %c1_30 = arith.constant 1 : index
    %c1_31 = arith.constant 1 : index
    %c0_32 = arith.constant 0 : index
    %20 = vector.load %arg15[%c1_30, %c1_31, %c0_32] : memref<10x10x128xf32, #tpu.memory_space<vmem>>, vector<8x8x32xf32>
    %21 = arith.maximumf %19, %20 : vector<8x8x32xf32>
    %c1_33 = arith.constant 1 : index
    %c2_34 = arith.constant 2 : index
    %c0_35 = arith.constant 0 : index
    %22 = vector.load %arg15[%c1_33, %c2_34, %c0_35] : memref<10x10x128xf32, #tpu.memory_space<vmem>>, vector<8x8x32xf32>
    %23 = arith.maximumf %21, %22 : vector<8x8x32xf32>
    %c2_36 = arith.constant 2 : index
    %c0_37 = arith.constant 0 : index
    %c0_38 = arith.constant 0 : index
    %24 = vector.load %arg15[%c2_36, %c0_37, %c0_38] : memref<10x10x128xf32, #tpu.memory_space<vmem>>, vector<8x8x32xf32>
    %25 = arith.maximumf %23, %24 : vector<8x8x32xf32>
    %c2_39 = arith.constant 2 : index
    %c1_40 = arith.constant 1 : index
    %c0_41 = arith.constant 0 : index
    %26 = vector.load %arg15[%c2_39, %c1_40, %c0_41] : memref<10x10x128xf32, #tpu.memory_space<vmem>>, vector<8x8x32xf32>
    %27 = arith.maximumf %25, %26 : vector<8x8x32xf32>
    %c2_42 = arith.constant 2 : index
    %c2_43 = arith.constant 2 : index
    %c0_44 = arith.constant 0 : index
    %28 = vector.load %arg15[%c2_42, %c2_43, %c0_44] : memref<10x10x128xf32, #tpu.memory_space<vmem>>, vector<8x8x32xf32>
    %29 = arith.maximumf %27, %28 : vector<8x8x32xf32>
    %30 = vector.shape_cast %29 : vector<8x8x32xf32> to vector<64x32xf32>
    %31 = arith.truncf %30 : vector<64x32xf32> to vector<64x32xbf16>
    %c0_45 = arith.constant 0 : index
    %c0_46 = arith.constant 0 : index
    %32 = vector.load %arg4[%c0_45, %c0_46] : memref<32x28xbf16, #tpu.memory_space<vmem>>, vector<32x28xbf16>
    %cst_47 = arith.constant dense<0.000000e+00> : vector<64x28xf32>
    %33 = tpu.matmul %31, %32, %cst_47 {dimension_numbers = #tpu.dot_dimension_numbers<[1], [0], [0], [1], [0, 0, 1, 1], [], []>} : vector<64x32xbf16>, vector<32x28xbf16>, vector<64x28xf32> -> vector<64x28xf32>
    %c0_48 = arith.constant 0 : index
    %c0_49 = arith.constant 0 : index
    %34 = vector.load %arg5[%c0_48, %c0_49] : memref<1x28xf32, #tpu.memory_space<vmem>>, vector<1x28xf32>
    %35 = vector.broadcast %34 : vector<1x28xf32> to vector<64x28xf32>
    %36 = arith.addf %33, %35 : vector<64x28xf32>
    %cst_50 = arith.constant 5.000000e-01 : f32
    %37 = vector.broadcast %cst_50 : f32 to vector<64x28xf32>
    %38 = arith.mulf %37, %36 : vector<64x28xf32>
    %cst_51 = arith.constant 0.707106769 : f32
    %39 = vector.broadcast %cst_51 : f32 to vector<64x28xf32>
    %40 = arith.mulf %36, %39 : vector<64x28xf32>
    %cst_52 = arith.constant 0.000000e+00 : f32
    %41 = vector.broadcast %cst_52 : f32 to vector<64x28xf32>
    %42 = arith.cmpf oge, %40, %41 : vector<64x28xf32>
    %cst_53 = arith.constant 1.000000e+00 : f32
    %cst_54 = arith.constant -1.000000e+00 : f32
    %43 = vector.broadcast %cst_53 : f32 to vector<64x28xf32>
    %44 = vector.broadcast %cst_54 : f32 to vector<64x28xf32>
    %45 = arith.select %42, %43, %44 : vector<64x28xi1>, vector<64x28xf32>
    %46 = math.absf %40 : vector<64x28xf32>
    %cst_55 = arith.constant 0.327591091 : f32
    %47 = vector.broadcast %cst_55 : f32 to vector<64x28xf32>
    %48 = arith.mulf %47, %46 : vector<64x28xf32>
    %cst_56 = arith.constant 1.000000e+00 : f32
    %49 = vector.broadcast %cst_56 : f32 to vector<64x28xf32>
    %50 = arith.addf %49, %48 : vector<64x28xf32>
    %cst_57 = arith.constant 1.000000e+00 : f32
    %51 = vector.broadcast %cst_57 : f32 to vector<64x28xf32>
    %52 = arith.divf %51, %50 : vector<64x28xf32>
    %cst_58 = arith.constant 1.06140542 : f32
    %53 = vector.broadcast %cst_58 : f32 to vector<64x28xf32>
    %54 = arith.mulf %53, %52 : vector<64x28xf32>
    %cst_59 = arith.constant -1.45315206 : f32
    %55 = vector.broadcast %cst_59 : f32 to vector<64x28xf32>
    %56 = arith.addf %54, %55 : vector<64x28xf32>
    %57 = arith.mulf %56, %52 : vector<64x28xf32>
    %cst_60 = arith.constant 1.42141378 : f32
    %58 = vector.broadcast %cst_60 : f32 to vector<64x28xf32>
    %59 = arith.addf %57, %58 : vector<64x28xf32>
    %60 = arith.mulf %59, %52 : vector<64x28xf32>
    %cst_61 = arith.constant -0.284496725 : f32
    %61 = vector.broadcast %cst_61 : f32 to vector<64x28xf32>
    %62 = arith.addf %60, %61 : vector<64x28xf32>
    %63 = arith.mulf %62, %52 : vector<64x28xf32>
    %cst_62 = arith.constant 0.254829586 : f32
    %64 = vector.broadcast %cst_62 : f32 to vector<64x28xf32>
    %65 = arith.addf %63, %64 : vector<64x28xf32>
    %66 = arith.mulf %65, %52 : vector<64x28xf32>
    %cst_63 = arith.constant 0.000000e+00 : f32
    %67 = vector.broadcast %cst_63 : f32 to vector<64x28xf32>
    %68 = arith.subf %67, %46 : vector<64x28xf32>
    %69 = arith.mulf %68, %46 : vector<64x28xf32>
    %70 = math.exp %69 : vector<64x28xf32>
    %71 = arith.mulf %66, %70 : vector<64x28xf32>
    %cst_64 = arith.constant 1.000000e+00 : f32
    %72 = vector.broadcast %cst_64 : f32 to vector<64x28xf32>
    %73 = arith.subf %72, %71 : vector<64x28xf32>
    %74 = arith.mulf %45, %73 : vector<64x28xf32>
    %cst_65 = arith.constant 1.000000e+00 : f32
    %75 = vector.broadcast %cst_65 : f32 to vector<64x28xf32>
    %76 = arith.addf %75, %74 : vector<64x28xf32>
    %77 = arith.mulf %38, %76 : vector<64x28xf32>
    %78 = vector.shape_cast %77 : vector<64x28xf32> to vector<8x8x28xf32>
    %cst_66 = arith.constant 0.000000e+00 : f32
    %79 = vector.broadcast %cst_66 : f32 to vector<1x10x128xf32>
    %c0_67 = arith.constant 0 : index
    %c0_68 = arith.constant 0 : index
    %c0_69 = arith.constant 0 : index
    %80 = vector.load %arg15[%c0_67, %c0_68, %c0_69] : memref<10x10x128xf32, #tpu.memory_space<vmem>>, vector<1x10x128xf32>
    tpu.vector_store %arg15[%c0_67, %c0_68, %c0_69], %79 {strides = array<i32>} : memref<10x10x128xf32, #tpu.memory_space<vmem>>, vector<1x10x128xf32>,
    %cst_70 = arith.constant 0.000000e+00 : f32
    %81 = vector.broadcast %cst_70 : f32 to vector<1x10x128xf32>
    %c9_71 = arith.constant 9 : index
    %c0_72 = arith.constant 0 : index
    %c0_73 = arith.constant 0 : index
    %82 = vector.load %arg15[%c9_71, %c0_72, %c0_73] : memref<10x10x128xf32, #tpu.memory_space<vmem>>, vector<1x10x128xf32>
    tpu.vector_store %arg15[%c9_71, %c0_72, %c0_73], %81 {strides = array<i32>} : memref<10x10x128xf32, #tpu.memory_space<vmem>>, vector<1x10x128xf32>,
    %cst_74 = arith.constant 0.000000e+00 : f32
    %83 = vector.broadcast %cst_74 : f32 to vector<10x1x128xf32>
    %c0_75 = arith.constant 0 : index
    %c0_76 = arith.constant 0 : index
    %c0_77 = arith.constant 0 : index
    %84 = vector.load %arg15[%c0_75, %c0_76, %c0_77] : memref<10x10x128xf32, #tpu.memory_space<vmem>>, vector<10x1x128xf32>
    tpu.vector_store %arg15[%c0_75, %c0_76, %c0_77], %83 {strides = array<i32>} : memref<10x10x128xf32, #tpu.memory_space<vmem>>, vector<10x1x128xf32>,
    %cst_78 = arith.constant 0.000000e+00 : f32
    %85 = vector.broadcast %cst_78 : f32 to vector<10x1x128xf32>
    %c0_79 = arith.constant 0 : index
    %c9_80 = arith.constant 9 : index
    %c0_81 = arith.constant 0 : index
    %86 = vector.load %arg15[%c0_79, %c9_80, %c0_81] : memref<10x10x128xf32, #tpu.memory_space<vmem>>, vector<10x1x128xf32>
    tpu.vector_store %arg15[%c0_79, %c9_80, %c0_81], %85 {strides = array<i32>} : memref<10x10x128xf32, #tpu.memory_space<vmem>>, vector<10x1x128xf32>,
    %c0_82 = arith.constant 0 : index
    %c0_83 = arith.constant 0 : index
    %87 = vector.load %arg2[%c0_82, %c0_83] : memref<32x28xbf16, #tpu.memory_space<vmem>>, vector<32x28xbf16>
    %cst_84 = arith.constant dense<0.000000e+00> : vector<64x28xf32>
    %88 = tpu.matmul %3, %87, %cst_84 {dimension_numbers = #tpu.dot_dimension_numbers<[1], [0], [0], [1], [0, 0, 1, 1], [], []>} : vector<64x32xbf16>, vector<32x28xbf16>, vector<64x28xf32> -> vector<64x28xf32>
    %89 = vector.shape_cast %88 : vector<64x28xf32> to vector<8x8x28xf32>
    %c1_85 = arith.constant 1 : index
    %c1_86 = arith.constant 1 : index
    %c0_87 = arith.constant 0 : index
    %90 = vector.load %arg15[%c1_85, %c1_86, %c0_87] : memref<10x10x128xf32, #tpu.memory_space<vmem>>, vector<8x8x28xf32>
    tpu.vector_store %arg15[%c1_85, %c1_86, %c0_87], %89 {strides = array<i32>} : memref<10x10x128xf32, #tpu.memory_space<vmem>>, vector<8x8x28xf32>,
    %c0_88 = arith.constant 0 : index
    %c0_89 = arith.constant 0 : index
    %91 = vector.load %arg3[%c0_88, %c0_89] : memref<9x28xf32, #tpu.memory_space<vmem>>, vector<9x28xf32>
    %c0_90 = arith.constant 0 : index
    %c0_91 = arith.constant 0 : index
    %c0_92 = arith.constant 0 : index
    %92 = vector.load %arg15[%c0_90, %c0_91, %c0_92] : memref<10x10x128xf32, #tpu.memory_space<vmem>>, vector<8x8x28xf32>
    %93 = vector.extract_strided_slice %91 {offsets = [0, 0], sizes = [1, 28], strides = [1, 1]} : vector<9x28xf32> to vector<1x28xf32>
    %94 = vector.shape_cast %93 : vector<1x28xf32> to vector<1x1x28xf32>
    %95 = vector.broadcast %94 : vector<1x1x28xf32> to vector<8x8x28xf32>
    %96 = arith.mulf %92, %95 : vector<8x8x28xf32>
    %c0_93 = arith.constant 0 : index
    %c1_94 = arith.constant 1 : index
    %c0_95 = arith.constant 0 : index
    %97 = vector.load %arg15[%c0_93, %c1_94, %c0_95] : memref<10x10x128xf32, #tpu.memory_space<vmem>>, vector<8x8x28xf32>
    %98 = vector.extract_strided_slice %91 {offsets = [1, 0], sizes = [1, 28], strides = [1, 1]} : vector<9x28xf32> to vector<1x28xf32>
    %99 = vector.shape_cast %98 : vector<1x28xf32> to vector<1x1x28xf32>
    %100 = vector.broadcast %99 : vector<1x1x28xf32> to vector<8x8x28xf32>
    %101 = arith.mulf %97, %100 : vector<8x8x28xf32>
    %102 = arith.addf %96, %101 : vector<8x8x28xf32>
    %c0_96 = arith.constant 0 : index
    %c2_97 = arith.constant 2 : index
    %c0_98 = arith.constant 0 : index
    %103 = vector.load %arg15[%c0_96, %c2_97, %c0_98] : memref<10x10x128xf32, #tpu.memory_space<vmem>>, vector<8x8x28xf32>
    %104 = vector.extract_strided_slice %91 {offsets = [2, 0], sizes = [1, 28], strides = [1, 1]} : vector<9x28xf32> to vector<1x28xf32>
    %105 = vector.shape_cast %104 : vector<1x28xf32> to vector<1x1x28xf32>
    %106 = vector.broadcast %105 : vector<1x1x28xf32> to vector<8x8x28xf32>
    %107 = arith.mulf %103, %106 : vector<8x8x28xf32>
    %108 = arith.addf %102, %107 : vector<8x8x28xf32>
    %c1_99 = arith.constant 1 : index
    %c0_100 = arith.constant 0 : index
    %c0_101 = arith.constant 0 : index
    %109 = vector.load %arg15[%c1_99, %c0_100, %c0_101] : memref<10x10x128xf32, #tpu.memory_space<vmem>>, vector<8x8x28xf32>
    %110 = vector.extract_strided_slice %91 {offsets = [3, 0], sizes = [1, 28], strides = [1, 1]} : vector<9x28xf32> to vector<1x28xf32>
    %111 = vector.shape_cast %110 : vector<1x28xf32> to vector<1x1x28xf32>
    %112 = vector.broadcast %111 : vector<1x1x28xf32> to vector<8x8x28xf32>
    %113 = arith.mulf %109, %112 : vector<8x8x28xf32>
    %114 = arith.addf %108, %113 : vector<8x8x28xf32>
    %c1_102 = arith.constant 1 : index
    %c1_103 = arith.constant 1 : index
    %c0_104 = arith.constant 0 : index
    %115 = vector.load %arg15[%c1_102, %c1_103, %c0_104] : memref<10x10x128xf32, #tpu.memory_space<vmem>>, vector<8x8x28xf32>
    %116 = vector.extract_strided_slice %91 {offsets = [4, 0], sizes = [1, 28], strides = [1, 1]} : vector<9x28xf32> to vector<1x28xf32>
    %117 = vector.shape_cast %116 : vector<1x28xf32> to vector<1x1x28xf32>
    %118 = vector.broadcast %117 : vector<1x1x28xf32> to vector<8x8x28xf32>
    %119 = arith.mulf %115, %118 : vector<8x8x28xf32>
    %120 = arith.addf %114, %119 : vector<8x8x28xf32>
    %c1_105 = arith.constant 1 : index
    %c2_106 = arith.constant 2 : index
    %c0_107 = arith.constant 0 : index
    %121 = vector.load %arg15[%c1_105, %c2_106, %c0_107] : memref<10x10x128xf32, #tpu.memory_space<vmem>>, vector<8x8x28xf32>
    %122 = vector.extract_strided_slice %91 {offsets = [5, 0], sizes = [1, 28], strides = [1, 1]} : vector<9x28xf32> to vector<1x28xf32>
    %123 = vector.shape_cast %122 : vector<1x28xf32> to vector<1x1x28xf32>
    %124 = vector.broadcast %123 : vector<1x1x28xf32> to vector<8x8x28xf32>
    %125 = arith.mulf %121, %124 : vector<8x8x28xf32>
    %126 = arith.addf %120, %125 : vector<8x8x28xf32>
    %c2_108 = arith.constant 2 : index
    %c0_109 = arith.constant 0 : index
    %c0_110 = arith.constant 0 : index
    %127 = vector.load %arg15[%c2_108, %c0_109, %c0_110] : memref<10x10x128xf32, #tpu.memory_space<vmem>>, vector<8x8x28xf32>
    %128 = vector.extract_strided_slice %91 {offsets = [6, 0], sizes = [1, 28], strides = [1, 1]} : vector<9x28xf32> to vector<1x28xf32>
    %129 = vector.shape_cast %128 : vector<1x28xf32> to vector<1x1x28xf32>
    %130 = vector.broadcast %129 : vector<1x1x28xf32> to vector<8x8x28xf32>
    %131 = arith.mulf %127, %130 : vector<8x8x28xf32>
    %132 = arith.addf %126, %131 : vector<8x8x28xf32>
    %c2_111 = arith.constant 2 : index
    %c1_112 = arith.constant 1 : index
    %c0_113 = arith.constant 0 : index
    %133 = vector.load %arg15[%c2_111, %c1_112, %c0_113] : memref<10x10x128xf32, #tpu.memory_space<vmem>>, vector<8x8x28xf32>
    %134 = vector.extract_strided_slice %91 {offsets = [7, 0], sizes = [1, 28], strides = [1, 1]} : vector<9x28xf32> to vector<1x28xf32>
    %135 = vector.shape_cast %134 : vector<1x28xf32> to vector<1x1x28xf32>
    %136 = vector.broadcast %135 : vector<1x1x28xf32> to vector<8x8x28xf32>
    %137 = arith.mulf %133, %136 : vector<8x8x28xf32>
    %138 = arith.addf %132, %137 : vector<8x8x28xf32>
    %c2_114 = arith.constant 2 : index
    %c2_115 = arith.constant 2 : index
    %c0_116 = arith.constant 0 : index
    %139 = vector.load %arg15[%c2_114, %c2_115, %c0_116] : memref<10x10x128xf32, #tpu.memory_space<vmem>>, vector<8x8x28xf32>
    %140 = vector.extract_strided_slice %91 {offsets = [8, 0], sizes = [1, 28], strides = [1, 1]} : vector<9x28xf32> to vector<1x28xf32>
    %141 = vector.shape_cast %140 : vector<1x28xf32> to vector<1x1x28xf32>
    %142 = vector.broadcast %141 : vector<1x1x28xf32> to vector<8x8x28xf32>
    %143 = arith.mulf %139, %142 : vector<8x8x28xf32>
    %144 = arith.addf %138, %143 : vector<8x8x28xf32>
    %cst_117 = arith.constant 5.000000e-01 : f32
    %145 = vector.broadcast %cst_117 : f32 to vector<8x8x28xf32>
    %146 = arith.mulf %145, %144 : vector<8x8x28xf32>
    %cst_118 = arith.constant 0.707106769 : f32
    %147 = vector.broadcast %cst_118 : f32 to vector<8x8x28xf32>
    %148 = arith.mulf %144, %147 : vector<8x8x28xf32>
    %cst_119 = arith.constant 0.000000e+00 : f32
    %149 = vector.broadcast %cst_119 : f32 to vector<8x8x28xf32>
    %150 = arith.cmpf oge, %148, %149 : vector<8x8x28xf32>
    %cst_120 = arith.constant 1.000000e+00 : f32
    %cst_121 = arith.constant -1.000000e+00 : f32
    %151 = vector.broadcast %cst_120 : f32 to vector<8x8x28xf32>
    %152 = vector.broadcast %cst_121 : f32 to vector<8x8x28xf32>
    %153 = arith.select %150, %151, %152 : vector<8x8x28xi1>, vector<8x8x28xf32>
    %154 = math.absf %148 : vector<8x8x28xf32>
    %cst_122 = arith.constant 0.327591091 : f32
    %155 = vector.broadcast %cst_122 : f32 to vector<8x8x28xf32>
    %156 = arith.mulf %155, %154 : vector<8x8x28xf32>
    %cst_123 = arith.constant 1.000000e+00 : f32
    %157 = vector.broadcast %cst_123 : f32 to vector<8x8x28xf32>
    %158 = arith.addf %157, %156 : vector<8x8x28xf32>
    %cst_124 = arith.constant 1.000000e+00 : f32
    %159 = vector.broadcast %cst_124 : f32 to vector<8x8x28xf32>
    %160 = arith.divf %159, %158 : vector<8x8x28xf32>
    %cst_125 = arith.constant 1.06140542 : f32
    %161 = vector.broadcast %cst_125 : f32 to vector<8x8x28xf32>
    %162 = arith.mulf %161, %160 : vector<8x8x28xf32>
    %cst_126 = arith.constant -1.45315206 : f32
    %163 = vector.broadcast %cst_126 : f32 to vector<8x8x28xf32>
    %164 = arith.addf %162, %163 : vector<8x8x28xf32>
    %165 = arith.mulf %164, %160 : vector<8x8x28xf32>
    %cst_127 = arith.constant 1.42141378 : f32
    %166 = vector.broadcast %cst_127 : f32 to vector<8x8x28xf32>
    %167 = arith.addf %165, %166 : vector<8x8x28xf32>
    %168 = arith.mulf %167, %160 : vector<8x8x28xf32>
    %cst_128 = arith.constant -0.284496725 : f32
    %169 = vector.broadcast %cst_128 : f32 to vector<8x8x28xf32>
    %170 = arith.addf %168, %169 : vector<8x8x28xf32>
    %171 = arith.mulf %170, %160 : vector<8x8x28xf32>
    %cst_129 = arith.constant 0.254829586 : f32
    %172 = vector.broadcast %cst_129 : f32 to vector<8x8x28xf32>
    %173 = arith.addf %171, %172 : vector<8x8x28xf32>
    %174 = arith.mulf %173, %160 : vector<8x8x28xf32>
    %cst_130 = arith.constant 0.000000e+00 : f32
    %175 = vector.broadcast %cst_130 : f32 to vector<8x8x28xf32>
    %176 = arith.subf %175, %154 : vector<8x8x28xf32>
    %177 = arith.mulf %176, %154 : vector<8x8x28xf32>
    %178 = math.exp %177 : vector<8x8x28xf32>
    %179 = arith.mulf %174, %178 : vector<8x8x28xf32>
    %cst_131 = arith.constant 1.000000e+00 : f32
    %180 = vector.broadcast %cst_131 : f32 to vector<8x8x28xf32>
    %181 = arith.subf %180, %179 : vector<8x8x28xf32>
    %182 = arith.mulf %153, %181 : vector<8x8x28xf32>
    %cst_132 = arith.constant 1.000000e+00 : f32
    %183 = vector.broadcast %cst_132 : f32 to vector<8x8x28xf32>
    %184 = arith.addf %183, %182 : vector<8x8x28xf32>
    %185 = arith.mulf %146, %184 : vector<8x8x28xf32>
    %186 = vector.shape_cast %1 : vector<8x8x32xf32> to vector<4x2x8x32xf32>
    %187 = vector.extract_strided_slice %186 {offsets = [0, 0, 0, 0], sizes = [4, 1, 8, 32], strides = [1, 1, 1, 1]} : vector<4x2x8x32xf32> to vector<4x1x8x32xf32>
    %188 = vector.shape_cast %187 : vector<4x1x8x32xf32> to vector<4x8x32xf32>
    %189 = vector.extract_strided_slice %186 {offsets = [0, 1, 0, 0], sizes = [4, 1, 8, 32], strides = [1, 1, 1, 1]} : vector<4x2x8x32xf32> to vector<4x1x8x32xf32>
    %190 = vector.shape_cast %189 : vector<4x1x8x32xf32> to vector<4x8x32xf32>
    %191 = arith.addf %188, %190 : vector<4x8x32xf32>
    %192 = vector.shape_cast %191 : vector<4x8x32xf32> to vector<4x4x2x32xf32>
    %193 = vector.extract_strided_slice %192 {offsets = [0, 0, 0, 0], sizes = [4, 4, 1, 32], strides = [1, 1, 1, 1]} : vector<4x4x2x32xf32> to vector<4x4x1x32xf32>
    %194 = vector.shape_cast %193 : vector<4x4x1x32xf32> to vector<4x4x32xf32>
    %195 = vector.extract_strided_slice %192 {offsets = [0, 0, 1, 0], sizes = [4, 4, 1, 32], strides = [1, 1, 1, 1]} : vector<4x4x2x32xf32> to vector<4x4x1x32xf32>
    %196 = vector.shape_cast %195 : vector<4x4x1x32xf32> to vector<4x4x32xf32>
    %197 = arith.addf %194, %196 : vector<4x4x32xf32>
    %cst_133 = arith.constant 2.500000e-01 : f32
    %198 = vector.broadcast %cst_133 : f32 to vector<4x4x32xf32>
    %199 = arith.mulf %197, %198 : vector<4x4x32xf32>
    %200 = vector.shape_cast %199 : vector<4x4x32xf32> to vector<16x32xf32>
    %201 = arith.truncf %200 : vector<16x32xf32> to vector<16x32xbf16>
    %c0_134 = arith.constant 0 : index
    %c0_135 = arith.constant 0 : index
    %202 = vector.load %arg6[%c0_134, %c0_135] : memref<32x384xbf16, #tpu.memory_space<vmem>>, vector<32x384xbf16>
    %cst_136 = arith.constant dense<0.000000e+00> : vector<16x384xf32>
    %203 = tpu.matmul %201, %202, %cst_136 {dimension_numbers = #tpu.dot_dimension_numbers<[1], [0], [0], [1], [0, 0, 1, 1], [], []>} : vector<16x32xbf16>, vector<32x384xbf16>, vector<16x384xf32> -> vector<16x384xf32>
    %204 = vector.extract_strided_slice %203 {offsets = [0, 0], sizes = [16, 128], strides = [1, 1]} : vector<16x384xf32> to vector<16x128xf32>
    %205 = vector.extract_strided_slice %203 {offsets = [0, 128], sizes = [16, 128], strides = [1, 1]} : vector<16x384xf32> to vector<16x128xf32>
    %206 = vector.extract_strided_slice %203 {offsets = [0, 256], sizes = [16, 128], strides = [1, 1]} : vector<16x384xf32> to vector<16x128xf32>
    %207 = arith.truncf %204 : vector<16x128xf32> to vector<16x128xbf16>
    %208 = arith.truncf %205 : vector<16x128xf32> to vector<16x128xbf16>
    %cst_137 = arith.constant dense<0.000000e+00> : vector<16x16xf32>
    %209 = tpu.matmul %207, %208, %cst_137 {dimension_numbers = #tpu.dot_dimension_numbers<[1], [1], [0], [0], [0, 0, 1, 0], [], []>} : vector<16x128xbf16>, vector<16x128xbf16>, vector<16x16xf32> -> vector<16x16xf32>
    %cst_138 = arith.constant 5.000000e-01 : f32
    %210 = vector.broadcast %cst_138 : f32 to vector<16x16xf32>
    %211 = arith.mulf %209, %210 : vector<16x16xf32>
    %cst_139 = arith.constant dense<0xFF800000> : vector<16xf32>
    %212 = vector.multi_reduction <maximumf>, %211, %cst_139 [1] : vector<16x16xf32> to vector<16xf32>
    %213 = vector.shape_cast %212 : vector<16xf32> to vector<16x1xf32>
    %214 = vector.broadcast %213 : vector<16x1xf32> to vector<16x16xf32>
    %215 = arith.subf %211, %214 : vector<16x16xf32>
    %216 = math.exp %215 : vector<16x16xf32>
    %cst_140 = arith.constant dense<0.000000e+00> : vector<16xf32>
    %217 = vector.multi_reduction <add>, %216, %cst_140 [1] : vector<16x16xf32> to vector<16xf32>
    %218 = vector.shape_cast %217 : vector<16xf32> to vector<16x1xf32>
    %219 = tpu.reciprocal %218 {approx = true} : vector<16x1xf32> -> vector<16x1xf32>
    %220 = vector.broadcast %219 : vector<16x1xf32> to vector<16x16xf32>
    %221 = arith.mulf %216, %220 : vector<16x16xf32>
    %222 = arith.truncf %221 : vector<16x16xf32> to vector<16x16xbf16>
    %223 = arith.truncf %206 : vector<16x128xf32> to vector<16x128xbf16>
    %cst_141 = arith.constant dense<0.000000e+00> : vector<16x128xf32>
    %224 = tpu.matmul %222, %223, %cst_141 {dimension_numbers = #tpu.dot_dimension_numbers<[1], [0], [0], [1], [0, 0, 1, 1], [], []>} : vector<16x16xbf16>, vector<16x128xbf16>, vector<16x128xf32> -> vector<16x128xf32>
    %225 = vector.shape_cast %224 : vector<16x128xf32> to vector<4x4x128xf32>
    %226 = vector.shape_cast %225 : vector<4x4x128xf32> to vector<4x4x1x128xf32>
    %227 = vector.shape_cast %226 : vector<4x4x1x128xf32> to vector<4x4x1x128xf32>
    %228 = vector.broadcast %227 : vector<4x4x1x128xf32> to vector<4x4x2x128xf32>
    %229 = vector.shape_cast %228 : vector<4x4x2x128xf32> to vector<4x8x128xf32>
    %230 = vector.shape_cast %229 : vector<4x8x128xf32> to vector<4x1x8x128xf32>
    %231 = vector.shape_cast %230 : vector<4x1x8x128xf32> to vector<4x1x8x128xf32>
    %232 = vector.broadcast %231 : vector<4x1x8x128xf32> to vector<4x2x8x128xf32>
    %233 = vector.shape_cast %232 : vector<4x2x8x128xf32> to vector<8x8x128xf32>
    %c1_142 = arith.constant 1 : index
    %c1_143 = arith.constant 1 : index
    %c0_144 = arith.constant 0 : index
    %234 = vector.load %arg15[%c1_142, %c1_143, %c0_144] : memref<10x10x128xf32, #tpu.memory_space<vmem>>, vector<8x8x28xf32>
    tpu.vector_store %arg15[%c1_142, %c1_143, %c0_144], %185 {strides = array<i32>} : memref<10x10x128xf32, #tpu.memory_space<vmem>>, vector<8x8x28xf32>,
    %c0_145 = arith.constant 0 : index
    %c0_146 = arith.constant 0 : index
    %235 = vector.load %arg7[%c0_145, %c0_146] : memref<9x28xf32, #tpu.memory_space<vmem>>, vector<9x28xf32>
    %c0_147 = arith.constant 0 : index
    %c0_148 = arith.constant 0 : index
    %c0_149 = arith.constant 0 : index
    %236 = vector.load %arg15[%c0_147, %c0_148, %c0_149] : memref<10x10x128xf32, #tpu.memory_space<vmem>>, vector<8x8x28xf32>
    %237 = vector.extract_strided_slice %235 {offsets = [0, 0], sizes = [1, 28], strides = [1, 1]} : vector<9x28xf32> to vector<1x28xf32>
    %238 = vector.shape_cast %237 : vector<1x28xf32> to vector<1x1x28xf32>
    %239 = vector.broadcast %238 : vector<1x1x28xf32> to vector<8x8x28xf32>
    %240 = arith.mulf %236, %239 : vector<8x8x28xf32>
    %c0_150 = arith.constant 0 : index
    %c1_151 = arith.constant 1 : index
    %c0_152 = arith.constant 0 : index
    %241 = vector.load %arg15[%c0_150, %c1_151, %c0_152] : memref<10x10x128xf32, #tpu.memory_space<vmem>>, vector<8x8x28xf32>
    %242 = vector.extract_strided_slice %235 {offsets = [1, 0], sizes = [1, 28], strides = [1, 1]} : vector<9x28xf32> to vector<1x28xf32>
    %243 = vector.shape_cast %242 : vector<1x28xf32> to vector<1x1x28xf32>
    %244 = vector.broadcast %243 : vector<1x1x28xf32> to vector<8x8x28xf32>
    %245 = arith.mulf %241, %244 : vector<8x8x28xf32>
    %246 = arith.addf %240, %245 : vector<8x8x28xf32>
    %c0_153 = arith.constant 0 : index
    %c2_154 = arith.constant 2 : index
    %c0_155 = arith.constant 0 : index
    %247 = vector.load %arg15[%c0_153, %c2_154, %c0_155] : memref<10x10x128xf32, #tpu.memory_space<vmem>>, vector<8x8x28xf32>
    %248 = vector.extract_strided_slice %235 {offsets = [2, 0], sizes = [1, 28], strides = [1, 1]} : vector<9x28xf32> to vector<1x28xf32>
    %249 = vector.shape_cast %248 : vector<1x28xf32> to vector<1x1x28xf32>
    %250 = vector.broadcast %249 : vector<1x1x28xf32> to vector<8x8x28xf32>
    %251 = arith.mulf %247, %250 : vector<8x8x28xf32>
    %252 = arith.addf %246, %251 : vector<8x8x28xf32>
    %c1_156 = arith.constant 1 : index
    %c0_157 = arith.constant 0 : index
    %c0_158 = arith.constant 0 : index
    %253 = vector.load %arg15[%c1_156, %c0_157, %c0_158] : memref<10x10x128xf32, #tpu.memory_space<vmem>>, vector<8x8x28xf32>
    %254 = vector.extract_strided_slice %235 {offsets = [3, 0], sizes = [1, 28], strides = [1, 1]} : vector<9x28xf32> to vector<1x28xf32>
    %255 = vector.shape_cast %254 : vector<1x28xf32> to vector<1x1x28xf32>
    %256 = vector.broadcast %255 : vector<1x1x28xf32> to vector<8x8x28xf32>
    %257 = arith.mulf %253, %256 : vector<8x8x28xf32>
    %258 = arith.addf %252, %257 : vector<8x8x28xf32>
    %c1_159 = arith.constant 1 : index
    %c1_160 = arith.constant 1 : index
    %c0_161 = arith.constant 0 : index
    %259 = vector.load %arg15[%c1_159, %c1_160, %c0_161] : memref<10x10x128xf32, #tpu.memory_space<vmem>>, vector<8x8x28xf32>
    %260 = vector.extract_strided_slice %235 {offsets = [4, 0], sizes = [1, 28], strides = [1, 1]} : vector<9x28xf32> to vector<1x28xf32>
    %261 = vector.shape_cast %260 : vector<1x28xf32> to vector<1x1x28xf32>
    %262 = vector.broadcast %261 : vector<1x1x28xf32> to vector<8x8x28xf32>
    %263 = arith.mulf %259, %262 : vector<8x8x28xf32>
    %264 = arith.addf %258, %263 : vector<8x8x28xf32>
    %c1_162 = arith.constant 1 : index
    %c2_163 = arith.constant 2 : index
    %c0_164 = arith.constant 0 : index
    %265 = vector.load %arg15[%c1_162, %c2_163, %c0_164] : memref<10x10x128xf32, #tpu.memory_space<vmem>>, vector<8x8x28xf32>
    %266 = vector.extract_strided_slice %235 {offsets = [5, 0], sizes = [1, 28], strides = [1, 1]} : vector<9x28xf32> to vector<1x28xf32>
    %267 = vector.shape_cast %266 : vector<1x28xf32> to vector<1x1x28xf32>
    %268 = vector.broadcast %267 : vector<1x1x28xf32> to vector<8x8x28xf32>
    %269 = arith.mulf %265, %268 : vector<8x8x28xf32>
    %270 = arith.addf %264, %269 : vector<8x8x28xf32>
    %c2_165 = arith.constant 2 : index
    %c0_166 = arith.constant 0 : index
    %c0_167 = arith.constant 0 : index
    %271 = vector.load %arg15[%c2_165, %c0_166, %c0_167] : memref<10x10x128xf32, #tpu.memory_space<vmem>>, vector<8x8x28xf32>
    %272 = vector.extract_strided_slice %235 {offsets = [6, 0], sizes = [1, 28], strides = [1, 1]} : vector<9x28xf32> to vector<1x28xf32>
    %273 = vector.shape_cast %272 : vector<1x28xf32> to vector<1x1x28xf32>
    %274 = vector.broadcast %273 : vector<1x1x28xf32> to vector<8x8x28xf32>
    %275 = arith.mulf %271, %274 : vector<8x8x28xf32>
    %276 = arith.addf %270, %275 : vector<8x8x28xf32>
    %c2_168 = arith.constant 2 : index
    %c1_169 = arith.constant 1 : index
    %c0_170 = arith.constant 0 : index
    %277 = vector.load %arg15[%c2_168, %c1_169, %c0_170] : memref<10x10x128xf32, #tpu.memory_space<vmem>>, vector<8x8x28xf32>
    %278 = vector.extract_strided_slice %235 {offsets = [7, 0], sizes = [1, 28], strides = [1, 1]} : vector<9x28xf32> to vector<1x28xf32>
    %279 = vector.shape_cast %278 : vector<1x28xf32> to vector<1x1x28xf32>
    %280 = vector.broadcast %279 : vector<1x1x28xf32> to vector<8x8x28xf32>
    %281 = arith.mulf %277, %280 : vector<8x8x28xf32>
    %282 = arith.addf %276, %281 : vector<8x8x28xf32>
    %c2_171 = arith.constant 2 : index
    %c2_172 = arith.constant 2 : index
    %c0_173 = arith.constant 0 : index
    %283 = vector.load %arg15[%c2_171, %c2_172, %c0_173] : memref<10x10x128xf32, #tpu.memory_space<vmem>>, vector<8x8x28xf32>
    %284 = vector.extract_strided_slice %235 {offsets = [8, 0], sizes = [1, 28], strides = [1, 1]} : vector<9x28xf32> to vector<1x28xf32>
    %285 = vector.shape_cast %284 : vector<1x28xf32> to vector<1x1x28xf32>
    %286 = vector.broadcast %285 : vector<1x1x28xf32> to vector<8x8x28xf32>
    %287 = arith.mulf %283, %286 : vector<8x8x28xf32>
    %288 = arith.addf %282, %287 : vector<8x8x28xf32>
    %289 = arith.addf %185, %288 : vector<8x8x28xf32>
    %290 = vector.shape_cast %289 : vector<8x8x28xf32> to vector<64x28xf32>
    %c1_174 = arith.constant 1 : index
    %c1_175 = arith.constant 1 : index
    %c0_176 = arith.constant 0 : index
    %291 = vector.load %arg15[%c1_174, %c1_175, %c0_176] : memref<10x10x128xf32, #tpu.memory_space<vmem>>, vector<8x8x28xf32>
    tpu.vector_store %arg15[%c1_174, %c1_175, %c0_176], %78 {strides = array<i32>} : memref<10x10x128xf32, #tpu.memory_space<vmem>>, vector<8x8x28xf32>,
    %c0_177 = arith.constant 0 : index
    %c0_178 = arith.constant 0 : index
    %292 = vector.load %arg8[%c0_177, %c0_178] : memref<9x28xf32, #tpu.memory_space<vmem>>, vector<9x28xf32>
    %c0_179 = arith.constant 0 : index
    %c0_180 = arith.constant 0 : index
    %c0_181 = arith.constant 0 : index
    %293 = vector.load %arg15[%c0_179, %c0_180, %c0_181] : memref<10x10x128xf32, #tpu.memory_space<vmem>>, vector<8x8x28xf32>
    %294 = vector.extract_strided_slice %292 {offsets = [0, 0], sizes = [1, 28], strides = [1, 1]} : vector<9x28xf32> to vector<1x28xf32>
    %295 = vector.shape_cast %294 : vector<1x28xf32> to vector<1x1x28xf32>
    %296 = vector.broadcast %295 : vector<1x1x28xf32> to vector<8x8x28xf32>
    %297 = arith.mulf %293, %296 : vector<8x8x28xf32>
    %c0_182 = arith.constant 0 : index
    %c1_183 = arith.constant 1 : index
    %c0_184 = arith.constant 0 : index
    %298 = vector.load %arg15[%c0_182, %c1_183, %c0_184] : memref<10x10x128xf32, #tpu.memory_space<vmem>>, vector<8x8x28xf32>
    %299 = vector.extract_strided_slice %292 {offsets = [1, 0], sizes = [1, 28], strides = [1, 1]} : vector<9x28xf32> to vector<1x28xf32>
    %300 = vector.shape_cast %299 : vector<1x28xf32> to vector<1x1x28xf32>
    %301 = vector.broadcast %300 : vector<1x1x28xf32> to vector<8x8x28xf32>
    %302 = arith.mulf %298, %301 : vector<8x8x28xf32>
    %303 = arith.addf %297, %302 : vector<8x8x28xf32>
    %c0_185 = arith.constant 0 : index
    %c2_186 = arith.constant 2 : index
    %c0_187 = arith.constant 0 : index
    %304 = vector.load %arg15[%c0_185, %c2_186, %c0_187] : memref<10x10x128xf32, #tpu.memory_space<vmem>>, vector<8x8x28xf32>
    %305 = vector.extract_strided_slice %292 {offsets = [2, 0], sizes = [1, 28], strides = [1, 1]} : vector<9x28xf32> to vector<1x28xf32>
    %306 = vector.shape_cast %305 : vector<1x28xf32> to vector<1x1x28xf32>
    %307 = vector.broadcast %306 : vector<1x1x28xf32> to vector<8x8x28xf32>
    %308 = arith.mulf %304, %307 : vector<8x8x28xf32>
    %309 = arith.addf %303, %308 : vector<8x8x28xf32>
    %c1_188 = arith.constant 1 : index
    %c0_189 = arith.constant 0 : index
    %c0_190 = arith.constant 0 : index
    %310 = vector.load %arg15[%c1_188, %c0_189, %c0_190] : memref<10x10x128xf32, #tpu.memory_space<vmem>>, vector<8x8x28xf32>
    %311 = vector.extract_strided_slice %292 {offsets = [3, 0], sizes = [1, 28], strides = [1, 1]} : vector<9x28xf32> to vector<1x28xf32>
    %312 = vector.shape_cast %311 : vector<1x28xf32> to vector<1x1x28xf32>
    %313 = vector.broadcast %312 : vector<1x1x28xf32> to vector<8x8x28xf32>
    %314 = arith.mulf %310, %313 : vector<8x8x28xf32>
    %315 = arith.addf %309, %314 : vector<8x8x28xf32>
    %c1_191 = arith.constant 1 : index
    %c1_192 = arith.constant 1 : index
    %c0_193 = arith.constant 0 : index
    %316 = vector.load %arg15[%c1_191, %c1_192, %c0_193] : memref<10x10x128xf32, #tpu.memory_space<vmem>>, vector<8x8x28xf32>
    %317 = vector.extract_strided_slice %292 {offsets = [4, 0], sizes = [1, 28], strides = [1, 1]} : vector<9x28xf32> to vector<1x28xf32>
    %318 = vector.shape_cast %317 : vector<1x28xf32> to vector<1x1x28xf32>
    %319 = vector.broadcast %318 : vector<1x1x28xf32> to vector<8x8x28xf32>
    %320 = arith.mulf %316, %319 : vector<8x8x28xf32>
    %321 = arith.addf %315, %320 : vector<8x8x28xf32>
    %c1_194 = arith.constant 1 : index
    %c2_195 = arith.constant 2 : index
    %c0_196 = arith.constant 0 : index
    %322 = vector.load %arg15[%c1_194, %c2_195, %c0_196] : memref<10x10x128xf32, #tpu.memory_space<vmem>>, vector<8x8x28xf32>
    %323 = vector.extract_strided_slice %292 {offsets = [5, 0], sizes = [1, 28], strides = [1, 1]} : vector<9x28xf32> to vector<1x28xf32>
    %324 = vector.shape_cast %323 : vector<1x28xf32> to vector<1x1x28xf32>
    %325 = vector.broadcast %324 : vector<1x1x28xf32> to vector<8x8x28xf32>
    %326 = arith.mulf %322, %325 : vector<8x8x28xf32>
    %327 = arith.addf %321, %326 : vector<8x8x28xf32>
    %c2_197 = arith.constant 2 : index
    %c0_198 = arith.constant 0 : index
    %c0_199 = arith.constant 0 : index
    %328 = vector.load %arg15[%c2_197, %c0_198, %c0_199] : memref<10x10x128xf32, #tpu.memory_space<vmem>>, vector<8x8x28xf32>
    %329 = vector.extract_strided_slice %292 {offsets = [6, 0], sizes = [1, 28], strides = [1, 1]} : vector<9x28xf32> to vector<1x28xf32>
    %330 = vector.shape_cast %329 : vector<1x28xf32> to vector<1x1x28xf32>
    %331 = vector.broadcast %330 : vector<1x1x28xf32> to vector<8x8x28xf32>
    %332 = arith.mulf %328, %331 : vector<8x8x28xf32>
    %333 = arith.addf %327, %332 : vector<8x8x28xf32>
    %c2_200 = arith.constant 2 : index
    %c1_201 = arith.constant 1 : index
    %c0_202 = arith.constant 0 : index
    %334 = vector.load %arg15[%c2_200, %c1_201, %c0_202] : memref<10x10x128xf32, #tpu.memory_space<vmem>>, vector<8x8x28xf32>
    %335 = vector.extract_strided_slice %292 {offsets = [7, 0], sizes = [1, 28], strides = [1, 1]} : vector<9x28xf32> to vector<1x28xf32>
    %336 = vector.shape_cast %335 : vector<1x28xf32> to vector<1x1x28xf32>
    %337 = vector.broadcast %336 : vector<1x1x28xf32> to vector<8x8x28xf32>
    %338 = arith.mulf %334, %337 : vector<8x8x28xf32>
    %339 = arith.addf %333, %338 : vector<8x8x28xf32>
    %c2_203 = arith.constant 2 : index
    %c2_204 = arith.constant 2 : index
    %c0_205 = arith.constant 0 : index
    %340 = vector.load %arg15[%c2_203, %c2_204, %c0_205] : memref<10x10x128xf32, #tpu.memory_space<vmem>>, vector<8x8x28xf32>
    %341 = vector.extract_strided_slice %292 {offsets = [8, 0], sizes = [1, 28], strides = [1, 1]} : vector<9x28xf32> to vector<1x28xf32>
    %342 = vector.shape_cast %341 : vector<1x28xf32> to vector<1x1x28xf32>
    %343 = vector.broadcast %342 : vector<1x1x28xf32> to vector<8x8x28xf32>
    %344 = arith.mulf %340, %343 : vector<8x8x28xf32>
    %345 = arith.addf %339, %344 : vector<8x8x28xf32>
    %346 = arith.addf %78, %345 : vector<8x8x28xf32>
    %347 = vector.shape_cast %346 : vector<8x8x28xf32> to vector<64x28xf32>
    %c1_206 = arith.constant 1 : index
    %c1_207 = arith.constant 1 : index
    %c0_208 = arith.constant 0 : index
    %348 = vector.load %arg15[%c1_206, %c1_207, %c0_208] : memref<10x10x128xf32, #tpu.memory_space<vmem>>, vector<8x8x128xf32>
    tpu.vector_store %arg15[%c1_206, %c1_207, %c0_208], %233 {strides = array<i32>} : memref<10x10x128xf32, #tpu.memory_space<vmem>>, vector<8x8x128xf32>,
    %c0_209 = arith.constant 0 : index
    %c0_210 = arith.constant 0 : index
    %349 = vector.load %arg9[%c0_209, %c0_210] : memref<9x128xf32, #tpu.memory_space<vmem>>, vector<9x128xf32>
    %c0_211 = arith.constant 0 : index
    %c0_212 = arith.constant 0 : index
    %c0_213 = arith.constant 0 : index
    %350 = vector.load %arg15[%c0_211, %c0_212, %c0_213] : memref<10x10x128xf32, #tpu.memory_space<vmem>>, vector<8x8x128xf32>
    %351 = vector.extract_strided_slice %349 {offsets = [0, 0], sizes = [1, 128], strides = [1, 1]} : vector<9x128xf32> to vector<1x128xf32>
    %352 = vector.shape_cast %351 : vector<1x128xf32> to vector<1x1x128xf32>
    %353 = vector.broadcast %352 : vector<1x1x128xf32> to vector<8x8x128xf32>
    %354 = arith.mulf %350, %353 : vector<8x8x128xf32>
    %c0_214 = arith.constant 0 : index
    %c1_215 = arith.constant 1 : index
    %c0_216 = arith.constant 0 : index
    %355 = vector.load %arg15[%c0_214, %c1_215, %c0_216] : memref<10x10x128xf32, #tpu.memory_space<vmem>>, vector<8x8x128xf32>
    %356 = vector.extract_strided_slice %349 {offsets = [1, 0], sizes = [1, 128], strides = [1, 1]} : vector<9x128xf32> to vector<1x128xf32>
    %357 = vector.shape_cast %356 : vector<1x128xf32> to vector<1x1x128xf32>
    %358 = vector.broadcast %357 : vector<1x1x128xf32> to vector<8x8x128xf32>
    %359 = arith.mulf %355, %358 : vector<8x8x128xf32>
    %360 = arith.addf %354, %359 : vector<8x8x128xf32>
    %c0_217 = arith.constant 0 : index
    %c2_218 = arith.constant 2 : index
    %c0_219 = arith.constant 0 : index
    %361 = vector.load %arg15[%c0_217, %c2_218, %c0_219] : memref<10x10x128xf32, #tpu.memory_space<vmem>>, vector<8x8x128xf32>
    %362 = vector.extract_strided_slice %349 {offsets = [2, 0], sizes = [1, 128], strides = [1, 1]} : vector<9x128xf32> to vector<1x128xf32>
    %363 = vector.shape_cast %362 : vector<1x128xf32> to vector<1x1x128xf32>
    %364 = vector.broadcast %363 : vector<1x1x128xf32> to vector<8x8x128xf32>
    %365 = arith.mulf %361, %364 : vector<8x8x128xf32>
    %366 = arith.addf %360, %365 : vector<8x8x128xf32>
    %c1_220 = arith.constant 1 : index
    %c0_221 = arith.constant 0 : index
    %c0_222 = arith.constant 0 : index
    %367 = vector.load %arg15[%c1_220, %c0_221, %c0_222] : memref<10x10x128xf32, #tpu.memory_space<vmem>>, vector<8x8x128xf32>
    %368 = vector.extract_strided_slice %349 {offsets = [3, 0], sizes = [1, 128], strides = [1, 1]} : vector<9x128xf32> to vector<1x128xf32>
    %369 = vector.shape_cast %368 : vector<1x128xf32> to vector<1x1x128xf32>
    %370 = vector.broadcast %369 : vector<1x1x128xf32> to vector<8x8x128xf32>
    %371 = arith.mulf %367, %370 : vector<8x8x128xf32>
    %372 = arith.addf %366, %371 : vector<8x8x128xf32>
    %c1_223 = arith.constant 1 : index
    %c1_224 = arith.constant 1 : index
    %c0_225 = arith.constant 0 : index
    %373 = vector.load %arg15[%c1_223, %c1_224, %c0_225] : memref<10x10x128xf32, #tpu.memory_space<vmem>>, vector<8x8x128xf32>
    %374 = vector.extract_strided_slice %349 {offsets = [4, 0], sizes = [1, 128], strides = [1, 1]} : vector<9x128xf32> to vector<1x128xf32>
    %375 = vector.shape_cast %374 : vector<1x128xf32> to vector<1x1x128xf32>
    %376 = vector.broadcast %375 : vector<1x1x128xf32> to vector<8x8x128xf32>
    %377 = arith.mulf %373, %376 : vector<8x8x128xf32>
    %378 = arith.addf %372, %377 : vector<8x8x128xf32>
    %c1_226 = arith.constant 1 : index
    %c2_227 = arith.constant 2 : index
    %c0_228 = arith.constant 0 : index
    %379 = vector.load %arg15[%c1_226, %c2_227, %c0_228] : memref<10x10x128xf32, #tpu.memory_space<vmem>>, vector<8x8x128xf32>
    %380 = vector.extract_strided_slice %349 {offsets = [5, 0], sizes = [1, 128], strides = [1, 1]} : vector<9x128xf32> to vector<1x128xf32>
    %381 = vector.shape_cast %380 : vector<1x128xf32> to vector<1x1x128xf32>
    %382 = vector.broadcast %381 : vector<1x1x128xf32> to vector<8x8x128xf32>
    %383 = arith.mulf %379, %382 : vector<8x8x128xf32>
    %384 = arith.addf %378, %383 : vector<8x8x128xf32>
    %c2_229 = arith.constant 2 : index
    %c0_230 = arith.constant 0 : index
    %c0_231 = arith.constant 0 : index
    %385 = vector.load %arg15[%c2_229, %c0_230, %c0_231] : memref<10x10x128xf32, #tpu.memory_space<vmem>>, vector<8x8x128xf32>
    %386 = vector.extract_strided_slice %349 {offsets = [6, 0], sizes = [1, 128], strides = [1, 1]} : vector<9x128xf32> to vector<1x128xf32>
    %387 = vector.shape_cast %386 : vector<1x128xf32> to vector<1x1x128xf32>
    %388 = vector.broadcast %387 : vector<1x1x128xf32> to vector<8x8x128xf32>
    %389 = arith.mulf %385, %388 : vector<8x8x128xf32>
    %390 = arith.addf %384, %389 : vector<8x8x128xf32>
    %c2_232 = arith.constant 2 : index
    %c1_233 = arith.constant 1 : index
    %c0_234 = arith.constant 0 : index
    %391 = vector.load %arg15[%c2_232, %c1_233, %c0_234] : memref<10x10x128xf32, #tpu.memory_space<vmem>>, vector<8x8x128xf32>
    %392 = vector.extract_strided_slice %349 {offsets = [7, 0], sizes = [1, 128], strides = [1, 1]} : vector<9x128xf32> to vector<1x128xf32>
    %393 = vector.shape_cast %392 : vector<1x128xf32> to vector<1x1x128xf32>
    %394 = vector.broadcast %393 : vector<1x1x128xf32> to vector<8x8x128xf32>
    %395 = arith.mulf %391, %394 : vector<8x8x128xf32>
    %396 = arith.addf %390, %395 : vector<8x8x128xf32>
    %c2_235 = arith.constant 2 : index
    %c2_236 = arith.constant 2 : index
    %c0_237 = arith.constant 0 : index
    %397 = vector.load %arg15[%c2_235, %c2_236, %c0_237] : memref<10x10x128xf32, #tpu.memory_space<vmem>>, vector<8x8x128xf32>
    %398 = vector.extract_strided_slice %349 {offsets = [8, 0], sizes = [1, 128], strides = [1, 1]} : vector<9x128xf32> to vector<1x128xf32>
    %399 = vector.shape_cast %398 : vector<1x128xf32> to vector<1x1x128xf32>
    %400 = vector.broadcast %399 : vector<1x1x128xf32> to vector<8x8x128xf32>
    %401 = arith.mulf %397, %400 : vector<8x8x128xf32>
    %402 = arith.addf %396, %401 : vector<8x8x128xf32>
    %403 = arith.addf %233, %402 : vector<8x8x128xf32>
    %404 = vector.shape_cast %403 : vector<8x8x128xf32> to vector<64x128xf32>
    %405 = arith.truncf %290 : vector<64x28xf32> to vector<64x28xbf16>
    %c0_238 = arith.constant 0 : index
    %c0_239 = arith.constant 0 : index
    %406 = vector.load %arg10[%c0_238, %c0_239] : memref<28x32xbf16, #tpu.memory_space<vmem>>, vector<28x32xbf16>
    %cst_240 = arith.constant dense<0.000000e+00> : vector<64x32xf32>
    %407 = tpu.matmul %405, %406, %cst_240 {dimension_numbers = #tpu.dot_dimension_numbers<[1], [0], [0], [1], [0, 0, 1, 1], [], []>} : vector<64x28xbf16>, vector<28x32xbf16>, vector<64x32xf32> -> vector<64x32xf32>
    %408 = arith.truncf %347 : vector<64x28xf32> to vector<64x28xbf16>
    %c0_241 = arith.constant 0 : index
    %c0_242 = arith.constant 0 : index
    %409 = vector.load %arg11[%c0_241, %c0_242] : memref<28x32xbf16, #tpu.memory_space<vmem>>, vector<28x32xbf16>
    %cst_243 = arith.constant dense<0.000000e+00> : vector<64x32xf32>
    %410 = tpu.matmul %408, %409, %cst_243 {dimension_numbers = #tpu.dot_dimension_numbers<[1], [0], [0], [1], [0, 0, 1, 1], [], []>} : vector<64x28xbf16>, vector<28x32xbf16>, vector<64x32xf32> -> vector<64x32xf32>
    %411 = arith.addf %407, %410 : vector<64x32xf32>
    %412 = arith.truncf %404 : vector<64x128xf32> to vector<64x128xbf16>
    %c0_244 = arith.constant 0 : index
    %c0_245 = arith.constant 0 : index
    %413 = vector.load %arg12[%c0_244, %c0_245] : memref<128x32xbf16, #tpu.memory_space<vmem>>, vector<128x32xbf16>
    %cst_246 = arith.constant dense<0.000000e+00> : vector<64x32xf32>
    %414 = tpu.matmul %412, %413, %cst_246 {dimension_numbers = #tpu.dot_dimension_numbers<[1], [0], [0], [1], [0, 0, 1, 1], [], []>} : vector<64x128xbf16>, vector<128x32xbf16>, vector<64x32xf32> -> vector<64x32xf32>
    %415 = arith.addf %411, %414 : vector<64x32xf32>
    %c0_247 = arith.constant 0 : index
    %c0_248 = arith.constant 0 : index
    %416 = vector.load %arg13[%c0_247, %c0_248] : memref<1x32xf32, #tpu.memory_space<vmem>>, vector<1x32xf32>
    %417 = vector.broadcast %416 : vector<1x32xf32> to vector<64x32xf32>
    %418 = arith.addf %415, %417 : vector<64x32xf32>
    %c0_249 = arith.constant 0 : index
    %c0_250 = arith.constant 0 : index
    %c0_251 = arith.constant 0 : index
    %419 = vector.load %arg14[%c0_249, %c0_250, %c0_251] : memref<1x64x32xf32, #tpu.memory_space<vmem>>, vector<1x64x32xf32>
    %420 = vector.shape_cast %419 : vector<1x64x32xf32> to vector<64x32xf32>
    %421 = vector.shape_cast %418 : vector<64x32xf32> to vector<1x64x32xf32>
    tpu.vector_store %arg14[%c0_249, %c0_250, %c0_251], %421 {strides = array<i32>} : memref<1x64x32xf32, #tpu.memory_space<vmem>>, vector<1x64x32xf32>,
    return
  }
  func.func @transform_0(%arg0: i32) -> (i32, i32, i32, i32) {
    %c0_i32 = arith.constant 0 : i32
    %c0_i32_0 = arith.constant 0 : i32
    %c0_i32_1 = arith.constant 0 : i32
    %c0_i32_2 = arith.constant 0 : i32
    return %arg0, %c0_i32, %c0_i32_0, %c0_i32_1 : i32, i32, i32, i32
  }
  func.func @transform_1(%arg0: i32) -> (i32, i32) {
    %c0_i32 = arith.constant 0 : i32
    %c0_i32_0 = arith.constant 0 : i32
    %c0_i32_1 = arith.constant 0 : i32
    return %c0_i32, %c0_i32_0 : i32, i32
  }
  func.func @transform_2(%arg0: i32) -> (i32, i32) {
    %c0_i32 = arith.constant 0 : i32
    %c0_i32_0 = arith.constant 0 : i32
    %c0_i32_1 = arith.constant 0 : i32
    return %c0_i32, %c0_i32_0 : i32, i32
  }
  func.func @transform_3(%arg0: i32) -> (i32, i32) {
    %c0_i32 = arith.constant 0 : i32
    %c0_i32_0 = arith.constant 0 : i32
    %c0_i32_1 = arith.constant 0 : i32
    return %c0_i32, %c0_i32_0 : i32, i32
  }
  func.func @transform_4(%arg0: i32) -> (i32, i32) {
    %c0_i32 = arith.constant 0 : i32
    %c0_i32_0 = arith.constant 0 : i32
    %c0_i32_1 = arith.constant 0 : i32
    return %c0_i32, %c0_i32_0 : i32, i32
  }
  func.func @transform_5(%arg0: i32) -> (i32, i32) {
    %c0_i32 = arith.constant 0 : i32
    %c0_i32_0 = arith.constant 0 : i32
    %c0_i32_1 = arith.constant 0 : i32
    return %c0_i32, %c0_i32_0 : i32, i32
  }
  func.func @transform_6(%arg0: i32) -> (i32, i32) {
    %c0_i32 = arith.constant 0 : i32
    %c0_i32_0 = arith.constant 0 : i32
    %c0_i32_1 = arith.constant 0 : i32
    return %c0_i32, %c0_i32_0 : i32, i32
  }
  func.func @transform_7(%arg0: i32) -> (i32, i32) {
    %c0_i32 = arith.constant 0 : i32
    %c0_i32_0 = arith.constant 0 : i32
    %c0_i32_1 = arith.constant 0 : i32
    return %c0_i32, %c0_i32_0 : i32, i32
  }
  func.func @transform_8(%arg0: i32) -> (i32, i32) {
    %c0_i32 = arith.constant 0 : i32
    %c0_i32_0 = arith.constant 0 : i32
    %c0_i32_1 = arith.constant 0 : i32
    return %c0_i32, %c0_i32_0 : i32, i32
  }
  func.func @transform_9(%arg0: i32) -> (i32, i32) {
    %c0_i32 = arith.constant 0 : i32
    %c0_i32_0 = arith.constant 0 : i32
    %c0_i32_1 = arith.constant 0 : i32
    return %c0_i32, %c0_i32_0 : i32, i32
  }
  func.func @transform_10(%arg0: i32) -> (i32, i32) {
    %c0_i32 = arith.constant 0 : i32
    %c0_i32_0 = arith.constant 0 : i32
    %c0_i32_1 = arith.constant 0 : i32
    return %c0_i32, %c0_i32_0 : i32, i32
  }
  func.func @transform_11(%arg0: i32) -> (i32, i32) {
    %c0_i32 = arith.constant 0 : i32
    %c0_i32_0 = arith.constant 0 : i32
    %c0_i32_1 = arith.constant 0 : i32
    return %c0_i32, %c0_i32_0 : i32, i32
  }
  func.func @transform_12(%arg0: i32) -> (i32, i32) {
    %c0_i32 = arith.constant 0 : i32
    %c0_i32_0 = arith.constant 0 : i32
    %c0_i32_1 = arith.constant 0 : i32
    return %c0_i32, %c0_i32_0 : i32, i32
  }
  func.func @transform_13(%arg0: i32) -> (i32, i32, i32) {
    %c0_i32 = arith.constant 0 : i32
    %c0_i32_0 = arith.constant 0 : i32
    %c0_i32_1 = arith.constant 0 : i32
    return %arg0, %c0_i32, %c0_i32_0 : i32, i32, i32
  }
}

</mosaic_0001>

<bundles_post_ra>
// kernel: tpu_custom_call.1
= control target key start
LH: loop header
LB: loop body
LE: loop exit
PB: predicated region body
PF: predicated region fallthrough
CT: control target
= control target key end

     0   :  { %s6254_s0 = inlined_call_operand.hbm [shape: f32[2,8,8,32], index: 0, kind: input, shape index: {}]   ;;  %s6255_s1 = inlined_call_operand.vmem [shape: bf16[32,28], index: 1, kind: input, shape index: {}]   ;;  %s6256_s2 = inlined_call_operand.vmem [shape: f32[9,28], index: 2, kind: input, shape index: {}]   ;;  %s6257_s3 = inlined_call_operand.hbm [shape: bf16[32,28], index: 3, kind: input, shape index: {}]   ;;  %s6258_s4 = inlined_call_operand.vmem [shape: f32[1,28], index: 4, kind: input, shape index: {}]   ;;  %s6259_s5 = inlined_call_operand.vmem [shape: bf16[32,384], index: 5, kind: input, shape index: {}]   ;;  %s6260_s6 = inlined_call_operand.hbm [shape: f32[9,28], index: 6, kind: input, shape index: {}]   ;;  %s6261_s7 = inlined_call_operand.hbm [shape: f32[9,28], index: 7, kind: input, shape index: {}]   ;;  %s6262_s8 = inlined_call_operand.hbm [shape: f32[9,128], index: 8, kind: input, shape index: {}]   ;;  %s6263_s9 = inlined_call_operand.hbm [shape: bf16[28,32], index: 9, kind: input, shape index: {}]   ;;  %s6264_s10 = inlined_call_operand.hbm [shape: bf16[28,32], index: 10, kind: input, shape index: {}]   ;;  %s6265_s11 = inlined_call_operand.vmem [shape: bf16[128,32], index: 11, kind: input, shape index: {}]   ;;  %s6266_s12 = inlined_call_operand.vmem [shape: f32[1,32], index: 12, kind: input, shape index: {}]   ;;  %s6267_s13 = inlined_call_operand.vmem [shape: f32[2,64,32], index: 13, kind: output, shape index: {}]  }
   0x1   :  { %6306 = sst [smem:[#allocation54_spill]] %s6257_s3 }
   0x2   :  { %6307 = sst [smem:[#allocation55_spill]] %s6261_s7 }
   0x3   :  { %6308 = sst [smem:[#allocation56_spill]] %s6263_s9 }
   0x4   :  { %6309 = sst [smem:[#allocation57_spill]] %s6266_s12 }
   0x5   :  { %6310 = sst [smem:[#allocation58_spill]] %s6267_s13 }
   0x6   :  { %18 = vsyncpa [#allocation4], 0 }
   0x7   :  { %20 = vsyncpa [#allocation4 + $0x1], 0 }
   0x8   :  { %21 = vsyncpa [#allocation6], 0 }
   0x9   :  { %22 = vsyncpa [#allocation9], 0 }
   0xa   :  { %23 = vsyncpa [#allocation12], 0  ;;  %s4155_s25 = smov 0   ;;  %s4157_s26 = smov 0  }
   0xb   :  { %s4159_s27 = smov 0   ;;  %s4161_s28 = smov 0  }
   0xc LB: > { %s6311_s3 = sld [smem:[#allocation54_spill]]  ;;  %s4179_s15 = sadd.s32 4294967295, %s4070_s28   ;;  %s4070_s28 = sphi %s4161_s28, %s6449_s28   ;;  %s4066_s27 = sphi %s4159_s27, %s6448_s27   ;;  %s4062_s26 = sphi %s4157_s26, %s6447_s26   ;;  %s4058_s25 = sphi %s4155_s25, %s6446_s25  }
   0xd   : > { %p3454_p0 = scmp.ge.s32.totalorder %s4070_s28, 1  ;;  %p50_p1 = scmp.eq.s32.totalorder %s4179_s15, 0 }
   0xe   : > { %p338_p2 = scmp.lt.s32.totalorder %s4070_s28, 3  ;;  %s4072_s17 = smov [#allocation5]  }
   0xf   : > { %s357_s18 = sshll.u32 %s4072_s17, 4  ;;  %s6314_s7 = sld [smem:[#allocation55_spill]]  ;;  %s358_s18 = int_to_ptr.vmem [resolvable:$true] %s357_s18 }
  0x10   : > { %p4184_p3 = pnand %p3454_p0, %p338_p2  ;;  %s4073_s23 = smov 64  }
  0x11   : > { %s4074_s24 = smov 4   ;;  %s4075_s29 = smov [#allocation8]  }
  0x12   : > { %s355_s14 = sshll.u32 %s6311_s3, 4  ;;  %p3653_p4 = pneg %p4184_p3  ;;  %s356_s14 = int_to_ptr.hbm [resolvable:$true] %s355_s14 }
  0x13   : > { %s391_s30 = sshll.u32 %s4075_s29, 4  ;;  %s6315_s9 = sld [smem:[#allocation56_spill]]  ;;  %s392_s30 = int_to_ptr.vmem [resolvable:$true] %s391_s30 }
  0x14   : > { %p4192_p5 = pnand %p3653_p4, %p50_p1  ;;  %s4076_s20 = smov 128  }
  0x15   : > { %s389_s22 = sshll.u32 %s6314_s7, 4  ;;  %s4077_s21 = smov 8   ;;  %s390_s22 = int_to_ptr.hbm [resolvable:$true] %s389_s22 }
  0x16   : > { %3656 = dma.hbm_to_vmem [thread:$0]  (!%p4192_p5), %s356_s14, 256, %s358_s18, [#allocation6], %s4073_s23, %s4073_s23, %s4074_s24  }
  0x17   : > { %3662 = dma.hbm_to_vmem [thread:$0]  (!%p4192_p5), %s390_s22, 256, %s392_s30, [#allocation9], %s4076_s20, %s4076_s20, %s4077_s21  }
  0x18   : > { %s375_s14 = sshll.u32 %s6260_s6, 4  ;;  %s4078_s18 = smov [#allocation11]   ;;  %s376_s14 = int_to_ptr.hbm [resolvable:$true] %s375_s14 }
  0x19   : > { %s417_s13 = sshll.u32 %s6315_s9, 4  ;;  %s419_s29 = sshll.u32 %s4078_s18, 4  ;;  %s418_s13 = int_to_ptr.hbm [resolvable:$true] %s417_s13  ;;  %s420_s29 = int_to_ptr.vmem [resolvable:$true] %s419_s29 }
  0x1a   : > { %3668 = dma.hbm_to_vmem [thread:$0]  (!%p4192_p5), %s418_s13, 256, %s420_s29, [#allocation12], %s4073_s23, %s4073_s23, %s4074_s24  }
  0x1b   : > { %s4079_s3 = smov [#allocation7]   ;;  %s403_s7 = sshll.u32 %s6262_s8, 4  ;;  %s404_s7 = int_to_ptr.hbm [resolvable:$true] %s403_s7 }
  0x1c   : > { %s377_s17 = sshll.u32 %s4079_s3, 4  ;;  %s431_s30 = sshll.u32 %s6264_s10, 4  ;;  %s378_s17 = int_to_ptr.vmem [resolvable:$true] %s377_s17  ;;  %s432_s30 = int_to_ptr.hbm [resolvable:$true] %s431_s30 }
  0x1d   : > { %3659 = dma.hbm_to_vmem [thread:$0]  (!%p4192_p5), %s376_s14, 256, %s378_s17, [#allocation6], %s4076_s20, %s4076_s20, %s4077_s21  }
  0x1e   : > { %s4080_s9 = smov [#allocation10]   ;;  %s4081_s14 = smov [#allocation13]  }
  0x1f   : > { %s405_s18 = sshll.u32 %s4080_s9, 4  ;;  %s433_s29 = sshll.u32 %s4081_s14, 4  ;;  %s406_s18 = int_to_ptr.vmem [resolvable:$true] %s405_s18  ;;  %s434_s29 = int_to_ptr.vmem [resolvable:$true] %s433_s29 }
  0x20   : > { %3665 = dma.hbm_to_vmem [thread:$0]  (!%p4192_p5), %s404_s7, 256, %s406_s18, [#allocation9], %s4076_s20, %s4076_s20, %s4077_s21  }
  0x21   : > { %3671 = dma.hbm_to_vmem [thread:$0]  (!%p4192_p5), %s432_s30, 256, %s434_s29, [#allocation12], %s4073_s23, %s4073_s23, %s4074_s24  }
  0x22   : > { %s4242_s3 = sadd.s32 1, %s4070_s28   ;;  %s36_s22 = sadd.s32 1, %s4066_s27 }
  0x23   : > { %s33_s17 = ssub.s32 %s4070_s28, %s4242_s3  ;;  %p43_p7 = scmp.ne.s32.totalorder %s4066_s27, %s4062_s26 }
  0x24   : > { %p34_p6 = scmp.eq.s32.totalorder %s33_s17, 0  ;;  %p44_p8 = scmp.eq.s32.totalorder %s4070_s28, 0 }
  0x25   : > { %p49_p9 = scmp.ne.s32.totalorder %s4062_s26, %s4058_s25  ;;  %p3682_p11 = scmp.lt.s32.totalorder %s4070_s28, 2 }
  0x26   : > { %s4253_s12 = scalar_select %p34_p6, %s4066_s27, %s36_s22  }
  0x27   : > { %p4257_p10 = por %p50_p1, %p49_p9  ;;  %s453_s19 = sand.u32 1, %s4066_s27  }
  0x28   : > { %s3601_s13 = sshll.u32 %s4070_s28, 6  ;;  %p45_p12 = por %p44_p8, %p43_p7 }
  0x29   : > { %s3462_s23 = sshll.u32 %s453_s19, 6  ;;  %s462_s9 = scalar_lea.hbm %s6254_s0, %s3601_s13 }
  0x2a   : > { %s463_s18 = sshll.u32 %s462_s9, 4  ;;  %s457_s14 = scalar_lea.vmem [#allocation3], %s3462_s23  ;;  %s464_s18 = int_to_ptr.hbm [resolvable:$true] %s463_s18 }
  0x2b   : > { %s465_s29 = sshll.u32 %s457_s14, 4  ;;  %p4267_p13 = pnand %p3682_p11, %p45_p12  ;;  %s466_s29 = int_to_ptr.vmem [resolvable:$true] %s465_s29 }
  0x2c   : > { %s454_s17 = scalar_lea.sflag [#allocation4], %s453_s19  ;;  %s3994_s22 = sshra.s32 %s464_s18, 4  ;;  %s3995_s22 = int_to_ptr.hbm [resolvable:$true] %s3994_s22 }
  0x2d   : > { %s3996_s28 = scalar_lea.hbm %s3995_s22, 64  ;;  %p3998_p2 = pneg %p4267_p13 }
  0x2e   : > { %p3997_p0 = scmp.ne.s32.totalorder %s3995_s22, %s3996_s28  ;;  %s4001_s23 = scalar_lea.hbm %s6254_s0, 128 }
  0x2f   : > { %p4002_p6 = scmp.lt.s32.totalorder %s3995_s22, %s6254_s0  ;;  %p4003_p7 = scmp.lt.s32.totalorder %s4001_s23, %s3996_s28 }
  0x30   : > { %p3999_p4 = pnand %p3998_p2, %p3997_p0 }
  0x31   : > { %p4004_p8 = por %p4003_p7, %p4002_p6 }
  0x32   : > { %p4000_p5 = pneg %p3999_p4 }
  0x34   : > { %p4005_p9 = pnand %p4004_p8, %p4000_p5 }
  0x36   : > { %4008 = shalt.err (!%p4005_p9)
}
  0x37   : > { %3675 = dma.hbm_to_vmem [thread:$0]  (!%p4267_p13), %s464_s18, 1024, %s466_s29, %s454_s17, %s4076_s20, %s4076_s20, %s4077_s21  }
  0x38   : > { %477 = sbr.rel (%p4184_p3) target bundleno = 1087 (0x43f), region = 72 }
  0x3d   : > { %s479_s19 = sand.u32 1, %s4062_s26  }
  0x3e   : > { %s3466_s14 = sshll.u32 %s479_s19, 6  ;;  %s480_s13 = scalar_lea.sflag [#allocation4], %s479_s19 }
  0x3f   : > { %s483_s24 = scalar_lea.vmem [#allocation3], %s3466_s14 }
  0x40   : > { %4041 = dma.done.wait (%p4257_p10), %s480_s13, 1024  }
  0x41   : > { %4043 = vsyncadd (%p4257_p10), %s480_s13, 4294966272 }
  0x42   : > { %4045 = dma.done.wait (%p50_p1), [#allocation6], 512  }
  0x43   : > { %4047 = vsyncadd (%p50_p1), [#allocation6], 4294966784 }
  0x44   : > { %4049 = dma.done.wait (%p50_p1), [#allocation9], 512  }
  0x45   : > { %4051 = vsyncadd (%p50_p1), [#allocation9], 4294966784 }
  0x46   : > { %4053 = dma.done.wait (%p50_p1), [#allocation12], 512  }
  0x47   : > { %4055 = vsyncadd (%p50_p1), [#allocation12], 4294966784  ;;  %v3610_v0 = vld [vmem:[%s6259_s5 + $0x1c] sm:$0xf]  ;;  %v3531_v1 = vld [vmem:[%s6259_s5 + $0x24] sm:$0xf0] }
  0x48   : > { %v3607_v2 = vld [vmem:[%s6259_s5 + $0x4] sm:$0xf]  ;;  %v3534_v3 = vor.u32 %v3610_v0, %v3531_v1  ;;  %v3519_v4 = vld [vmem:[%s6259_s5 + $0xc] sm:$0xf0]  ;;  %v3529_v5 = vld [vmem:[%s6259_s5 + $0x18] sm:$0xf] }
  0x49   : > { %v3611_v6 = vld [vmem:[%s6259_s5 + $0x20] sm:$0xf0]  ;;  %v4321_v8 = vld [vmem:[%s483_s24] sm:$0xff]  ;;  %v4323_v9 = vld [vmem:[%s483_s24 + $0x8] sm:$0xff]  ;;  %vm601_vm0 = vcmask 261120   ;;  %v3522_v11 = vor.u32 %v3607_v2, %v3519_v4  ;;  %vm1930_vm1 = vcmask 1041409  }
  0x4a   : > { %v3530_v7 = vor.u32 %v3611_v6, %v3529_v5  ;;  %v4325_v10 = vld [vmem:[%s483_s24 + $0x10] sm:$0xff]  ;;  %2020 = vmatpush.bf16.msra.mxu3 %v3534_v3  ;;  %v4327_v12 = vld [vmem:[%s483_s24 + $0x18] sm:$0xff]  ;;  %v4329_v13 = vld [vmem:[%s483_s24 + $0x20] sm:$0xff]  ;;  %602 = vst.msk [vmem:[#allocation2 + $0x11] sm:$0xff] %vm601_vm0, %v4321_v8  ;;  %v1761_v15 = vadd.f32 %v4323_v9, %v4321_v8  ;;  %vm1933_vm2 = vcmask 1042434   ;;  %vm1936_vm3 = vcmask 1043459  }
  0x4b   : > { %v4331_v14 = vld [vmem:[%s483_s24 + $0x28] sm:$0xff]  ;;  %v4337_v16 = vld [vmem:[%s483_s24 + $0x30] sm:$0xff]  ;;  %v4339_v17 = vld [vmem:[%s483_s24 + $0x38] sm:$0xff]  ;;  %603 = vst.msk [vmem:[#allocation2 + $0x21] sm:$0xff] %vm601_vm0, %v4323_v9  ;;  %v1762_v18 = vadd.f32 %v4327_v12, %v4325_v10  ;;  %vm1939_vm4 = vcmask 1044484   ;;  %vm1942_vm5 = vcmask 1045509  }
  0x4c   : > { %2006 = vmatpush.bf16.msra.mxu2 %v3530_v7  ;;  %v1763_v19 = vadd.f32 %v4331_v14, %v4329_v13  ;;  %604 = vst.msk [vmem:[#allocation2 + $0x31] sm:$0xff] %vm601_vm0, %v4325_v10  ;;  %v1764_v20 = vadd.f32 %v4339_v17, %v4337_v16  ;;  %v1769_v21 = vrot.slane %v1761_v15, 2  ;;  %v1770_v22 = vrot.slane %v1761_v15, 4  ;;  %p557_p1 = scmp.lt.s32.totalorder %s4179_s15, 1  ;;  %s6444_s25 = sld [smem:[#allocation57_spill]] }
  0x4d   : > { %v1771_v23 = vrot.slane %v1761_v15, 6  ;;  %605 = vst.msk [vmem:[#allocation2 + $0x41] sm:$0xff] %vm601_vm0, %v4327_v12  ;;  %v1772_v24 = vrot.slane %v1762_v18, 2  ;;  %v1773_v25 = vrot.slane %v1762_v18, 4  ;;  %v1774_v26 = vrot.slane %v1762_v18, 6  ;;  %s6445_s28 = sld [smem:[#allocation58_spill]] }
  0x4e   : > { %v1775_v27 = vrot.slane %v1763_v19, 2  ;;  %2021 = vmatpush.bf16.msra.mxu3 %v3522_v11  ;;  %606 = vst.msk [vmem:[#allocation2 + $0x51] sm:$0xff] %vm601_vm0, %v4329_v13  ;;  %v1776_v28 = vrot.slane %v1763_v19, 4  ;;  %v1777_v29 = vrot.slane %v1763_v19, 6  ;;  %v1778_v30 = vrot.slane %v1764_v20, 2  ;;  %s6451_s15 = smov (!%p557_p1, %s4179_s15), 1 }
  0x4f   : > { %607 = vst.msk [vmem:[#allocation2 + $0x61] sm:$0xff] %vm601_vm0, %v4331_v14  ;;  %v1779_v31 = vrot.slane %v1764_v20, 4  ;;  %v1780_v32 = vrot.slane %v1764_v20, 6  ;;  %v3500_v33 = vrot.slane %v1769_v21, 9  ;;  %v3501_v34 = vrot.slane %v1770_v22, 9  ;;  %s3602_s7 = sshll.u32 %s6451_s15, 6 }
  0x50   : > { %608 = vst.msk [vmem:[#allocation2 + $0x71] sm:$0xff] %vm601_vm0, %v4337_v16  ;;  %v3499_v35 = vrot.slane %v1761_v15, 9  ;;  %v3502_v36 = vrot.slane %v1771_v23, 9  ;;  %v3503_v37 = vrot.slane %v1762_v18, 9  ;;  %v3504_v38 = vrot.slane %v1772_v24, 9 }
  0x51   : > { %609 = vst.msk [vmem:[#allocation2 + $0x81] sm:$0xff] %vm601_vm0, %v4339_v17  ;;  %v3505_v39 = vrot.slane %v1773_v25, 9  ;;  %v3506_v40 = vrot.slane %v1774_v26, 9  ;;  %v3508_v41 = vrot.slane %v1775_v27, 9  ;;  %v3509_v42 = vrot.slane %v1776_v28, 9 }
  0x52   : > { %v3507_v43 = vrot.slane %v1763_v19, 9  ;;  %v3510_v44 = vrot.slane %v1777_v29, 9  ;;  %v3511_v45 = vrot.slane %v1764_v20, 9  ;;  %v3512_v46 = vrot.slane %v1778_v30, 9 }
  0x53   : > { %v3513_v47 = vrot.slane %v1779_v31, 9  ;;  %v3514_v48 = vrot.slane %v1780_v32, 9  ;;  %v1842_v49 = vadd.f32 %v3500_v33, %v1769_v21  ;;  %v1843_v50 = vadd.f32 %v3501_v34, %v1770_v22  ;;  %s6223_s23 = scalar_lea.vmem %s6445_s28, %s3602_s7 }
  0x54   : > { %v1844_v51 = vadd.f32 %v3502_v36, %v1771_v23  ;;  %v1845_v52 = vadd.f32 %v3503_v37, %v1762_v18  ;;  %v1846_v53 = vadd.f32 %v3504_v38, %v1772_v24  ;;  %v1841_v54 = vadd.f32 %v3499_v35, %v1761_v15 }
  0x55   : > { %v1847_v55 = vadd.f32 %v3505_v39, %v1773_v25  ;;  %v1850_v56 = vadd.f32 %v3508_v41, %v1775_v27  ;;  %v1851_v57 = vadd.f32 %v3509_v42, %v1776_v28  ;;  %v1848_v58 = vadd.f32 %v3506_v40, %v1774_v26 }
  0x56   : > { %v1849_v59 = vadd.f32 %v3507_v43, %v1763_v19  ;;  %v1852_v60 = vadd.f32 %v3510_v44, %v1777_v29  ;;  %v1853_v61 = vadd.f32 %v3511_v45, %v1764_v20  ;;  %v1854_v62 = vadd.f32 %v3512_v46, %v1778_v30 }
  0x57   : > { %v1855_v63 = vadd.f32 %v3513_v47, %v1779_v31  ;;  %v1858_v0 = vmul.f32 0.25, %v1842_v49  ;;  %v1859_v1 = vmul.f32 0.25, %v1843_v50  ;;  %v1856_v2 = vadd.f32 %v3514_v48, %v1780_v32 }
  0x58   : > { %v1860_v3 = vmul.f32 0.25, %v1844_v51  ;;  %v1861_v4 = vmul.f32 0.25, %v1845_v52  ;;  %v1862_v5 = vmul.f32 0.25, %v1846_v53  ;;  %v1857_v6 = vmul.f32 0.25, %v1841_v54 }
  0x59   : > { %v1863_v7 = vmul.f32 0.25, %v1847_v55  ;;  %v1866_v11 = vmul.f32 0.25, %v1850_v56  ;;  %v1867_v18 = vmul.f32 0.25, %v1851_v57  ;;  %v1864_v15 = vmul.f32 0.25, %v1848_v58 }
  0x5a   : > { %v1865_v21 = vmul.f32 0.25, %v1849_v59  ;;  %v1868_v22 = vmul.f32 0.25, %v1852_v60  ;;  %v1869_v23 = vmul.f32 0.25, %v1853_v61  ;;  %v1870_v19 = vmul.f32 0.25, %v1854_v62  ;;  %v3517_v62 = vld [vmem:[%s6259_s5] sm:$0xf] }
  0x5b   : > { %v1871_v24 = vmul.f32 0.25, %v1855_v63  ;;  %v1874_v20 = vpack.c.bf16 %v1858_v0, %v1858_v0  ;;  %v1875_v25 = vpack.c.bf16 %v1859_v1, %v1859_v1  ;;  %v1872_v26 = vmul.f32 0.25, %v1856_v2  ;;  %v3608_v63 = vld [vmem:[%s6259_s5 + $0x8] sm:$0xf0] }
  0x5c   : > { %v1876_v27 = vpack.c.bf16 %v1860_v3, %v1860_v3  ;;  %v1877_v28 = vpack.c.bf16 %v1861_v4, %v1861_v4  ;;  %v1878_v29 = vpack.c.bf16 %v1862_v5, %v1862_v5  ;;  %v1873_v30 = vpack.c.bf16 %v1857_v6, %v1857_v6 }
  0x5d   : > { %v1879_v31 = vpack.c.bf16 %v1863_v7, %v1863_v7  ;;  %v1882_v32 = vpack.c.bf16 %v1866_v11, %v1866_v11  ;;  %v1883_v33 = vpack.c.bf16 %v1867_v18, %v1867_v18  ;;  %v1880_v34 = vpack.c.bf16 %v1864_v15, %v1864_v15 }
  0x5e   : > { %v1881_v35 = vpack.c.bf16 %v1865_v21, %v1865_v21  ;;  %v1884_v36 = vpack.c.bf16 %v1868_v22, %v1868_v22  ;;  %v1885_v37 = vpack.c.bf16 %v1869_v23, %v1869_v23  ;;  %v1886_v38 = vpack.c.bf16 %v1870_v19, %v1870_v19 }
  0x5f   : > { %v1887_v39 = vpack.c.bf16 %v1871_v24, %v1871_v24  ;;  %v1914_v40 = vunpack.c.l.b16 %v1874_v20  ;;  %v1915_v41 = vunpack.c.l.b16 %v1875_v25  ;;  %vm1945_vm6 = vcmask 1046534  }
  0x60   : > { %v1888_v42 = vpack.c.bf16 %v1872_v26, %v1872_v26  ;;  %v1916_v43 = vunpack.c.l.b16 %v1876_v27  ;;  %v1917_v44 = vunpack.c.l.b16 %v1877_v28  ;;  %v1918_v45 = vunpack.c.l.b16 %v1878_v29 }
  0x61   : > { %v1913_v46 = vunpack.c.l.b16 %v1873_v30  ;;  %v1919_v47 = vunpack.c.l.b16 %v1879_v31  ;;  %v1922_v48 = vunpack.c.l.b16 %v1882_v32  ;;  %v1923_v49 = vunpack.c.l.b16 %v1883_v33  ;;  %v3604_v33 = vld [vmem:[#allocation5 + $0x8] sm:$0xff] }
  0x62   : > { %v1920_v50 = vunpack.c.l.b16 %v1880_v34  ;;  %v1921_v51 = vunpack.c.l.b16 %v1881_v35  ;;  %v1924_v52 = vunpack.c.l.b16 %v1884_v36  ;;  %v1925_v53 = vunpack.c.l.b16 %v1885_v37  ;;  %3625 = vmatpush.bf16.msra.mxu1 %v3604_v33  ;;  %v3603_v35 = vld [vmem:[#allocation5] sm:$0xff]  ;;  %789 = vmatpush.bf16.msra.mxu0 %v3604_v33  ;;  %v4394_v37 = vld [vmem:[#allocation2 + $0x51] sm:$0xff] }
  0x63   : > { %v1926_v54 = vunpack.c.l.b16 %v1886_v38  ;;  %v1929_v55 = vrot.slane %v1914_v40, 7  ;;  %v1932_v56 = vrot.slane %v1915_v41, 6  ;;  %v1935_v57 = vrot.slane %v1916_v43, 5  ;;  %v4391_v36 = vld [vmem:[#allocation2 + $0x41] sm:$0xff] }
  0x64   : > { %v1927_v58 = vunpack.c.l.b16 %v1887_v39  ;;  %v1928_v59 = vunpack.c.l.b16 %v1888_v42  ;;  %v1938_v60 = vrot.slane %v1917_v44, 4  ;;  %v1941_v61 = vrot.slane %v1918_v45, 3  ;;  %v671_v43 = vld [vmem:[#allocation2 + $0x61] sm:$0xff] }
  0x65   : > { %v1931_v0 = vsel %vm1930_vm1, %v1929_v55, %v1913_v46  ;;  %v1950_v1 = vrot.slane %v1922_v48, 7  ;;  %v1952_v2 = vrot.slane %v1923_v49, 6  ;;  %v1954_v3 = vrot.slane %v1924_v52, 5 }
  0x66   : > { %v1934_v4 = vsel %vm1933_vm2, %v1932_v56, %v1931_v0  ;;  %v1944_v5 = vrot.slane %v1919_v47, 2  ;;  %v1947_v6 = vrot.slane %v1920_v50, 1  ;;  %v1956_v7 = vrot.slane %v1925_v53, 4  ;;  %3626 = vmatpush.bf16.msra.mxu1 %v3603_v35  ;;  %790 = vmatpush.bf16.msra.mxu0 %v3603_v35 }
  0x67   : > { %v1937_v11 = vsel %vm1936_vm3, %v1935_v57, %v1934_v4  ;;  %v1951_v18 = vsel %vm1930_vm1, %v1950_v1, %v1921_v51  ;;  %v1958_v15 = vrot.slane %v1926_v54, 3  ;;  %v3518_v21 = vor.u32 %v3608_v63, %v3517_v62 }
  0x68   : > { %v1940_v22 = vsel %vm1939_vm4, %v1938_v60, %v1937_v11  ;;  %vm1948_vm7 = vcmask 1047559   ;;  %v1953_v23 = vsel %vm1933_vm2, %v1952_v2, %v1951_v18  ;;  %v1960_v19 = vrot.slane %v1927_v58, 2  ;;  %v720_v58 = vld [vmem:[#allocation2 + $0x71] sm:$0xff] }
  0x69   : > { %v1943_v24 = vsel %vm1942_vm5, %v1941_v61, %v1940_v22  ;;  %v1955_v20 = vsel %vm1936_vm3, %v1954_v3, %v1953_v23  ;;  %v1962_v25 = vrot.slane %v1928_v59, 1  ;;  %2007 = vmatpush.bf16.msra.mxu2 %v3518_v21  ;;  %v4082_v34 = vmov -3.4028235e+38   ;;  %v673_v21 = vld [vmem:[#allocation2 + $0x81] sm:$0xff] }
  0x6a   : > { %v1946_v26 = vsel %vm1945_vm6, %v1944_v5, %v1943_v24  ;;  %v1957_v27 = vsel %vm1939_vm4, %v1956_v7, %v1955_v20  ;;  %584 = vst [vmem:[#allocation2 + $0x40] sm:$0x1] %v4082_v34  ;;  %v4083_v44 = vmov 0.0   ;;  %vm2060_vm8 = vcmask 130048  }
  0x6b   : > { %v1949_v28 = vsel %vm1948_vm7, %v1947_v6, %v1946_v26  ;;  %v1959_v29 = vsel %vm1942_vm5, %v1958_v15, %v1957_v27  ;;  %585 = vst [vmem:[#allocation2 + $0x50] sm:$0x1] %v4082_v34  ;;  %vm1213_vm2 = vcmask 228352  }
  0x6c   : > { %v1961_v30 = vsel %vm1945_vm6, %v1960_v19, %v1959_v29  ;;  %586 = vst [vmem:[#allocation2 + $0x60] sm:$0x1] %v4082_v34 }
  0x6d   : > { %v1963_v31 = vsel %vm1948_vm7, %v1962_v25, %v1961_v30  ;;  %587 = vst [vmem:[#allocation2 + $0x70] sm:$0x1] %v4082_v34 }
  0x6e   : > { %v4379_v32 = vpack.c.b16 %v1963_v31, %v1949_v28  ;;  %594 = vst [vmem:[#allocation2 + $0x49] sm:$0x1] %v4082_v34 }
  0x6f   : > { %595 = vst [vmem:[#allocation2 + $0x59] sm:$0x1] %v4082_v34 }
  0x70   : > { %3540 = vmatmul.msk.bf16.vlgmr.msra.gmra.mxu3 %vm601_vm0, %v4379_v32  ;;  %3539 = vmatmul.msk.bf16.vlgmr.msra.gmra.mxu2 %vm601_vm0, %v4379_v32  ;;  %596 = vst [vmem:[#allocation2 + $0x69] sm:$0x1] %v4082_v34 }
  0x71   : > { %597 = vst [vmem:[#allocation2 + $0x79] sm:$0x1] %v4082_v34  ;;  %v4397_v38 = vld [vmem:[#allocation2 + $0x40] sm:$0xff] }
  0x72   : > { %v4399_v39 = vld [vmem:[#allocation2 + $0x50] sm:$0xff]  ;;  %v630_v40 = vmax.f32 %v4397_v38, %v4391_v36  ;;  %575 = vst [vmem:[#allocation2] sm:$0xff] %v4082_v34 }
  0x73   : > { %v616_v41 = vld [vmem:[#allocation2 + $0x60] sm:$0xff]  ;;  %v631_v42 = vmax.f32 %v4399_v39, %v4394_v37  ;;  %576 = vst [vmem:[#allocation2 + $0x8] sm:$0x3] %v4082_v34 }
  0x74   : > { %1142 = vst [vmem:[#allocation2 + $0x60] sm:$0x1] %v4083_v44  ;;  %v632_v45 = vmax.f32 %v616_v41, %v671_v43  ;;  %v704_v57 = vld [vmem:[#allocation2 + $0x70] sm:$0xff] }
  0x75   : > { %v4408_v46 = vld [vmem:[#allocation2 + $0x42] sm:$0xff]  ;;  %578 = vst [vmem:[#allocation2 + $0x90] sm:$0xff] %v4082_v34  ;;  %v633_v60 = vmax.f32 %v704_v57, %v720_v58 }
  0x76   : > { %v4411_v47 = vld [vmem:[#allocation2 + $0x52] sm:$0xff]  ;;  %v646_v48 = vmax.f32 %v630_v40, %v4408_v46  ;;  %579 = vst [vmem:[#allocation2 + $0x98] sm:$0x3] %v4082_v34 }
  0x77   : > { %v640_v50 = vld [vmem:[#allocation2 + $0x62] sm:$0xff]  ;;  %v647_v51 = vmax.f32 %v631_v42, %v4411_v47  ;;  %581 = vst [vmem:[#allocation2 + $0x10] sm:$0x1] %v4082_v34 }
  0x78   : > { %v662_v52 = vmax.f32 %v646_v48, %v4399_v39  ;;  %1152 = vst [vmem:[#allocation2 + $0x69] sm:$0x1] %v4083_v44  ;;  %v648_v53 = vmax.f32 %v632_v45, %v640_v50  ;;  %v736_v1 = vld [vmem:[#allocation2 + $0x72] sm:$0xff]  ;;  %v3606_v45 = vld [vmem:[%s6255_s1 + $0x8] sm:$0xff] }
  0x79   : > { %v663_v54 = vmax.f32 %v647_v51, %v616_v41  ;;  %582 = vst [vmem:[#allocation2 + $0x20] sm:$0x1] %v4082_v34  ;;  %v649_v4 = vmax.f32 %v633_v60, %v736_v1  ;;  %1190 = vmatpush.bf16.msrb.mxu1 %v3606_v45  ;;  %v3605_v48 = vld [vmem:[%s6255_s1] sm:$0xff]  ;;  %v572_v60 = vpack.c.bf16 %v4327_v12, %v4325_v10 }
  0x7a   : > { %v678_v56 = vmax.f32 %v662_v52, %v4394_v37  ;;  %583 = vst [vmem:[#allocation2 + $0x30] sm:$0x1] %v4082_v34  ;;  %v664_v61 = vmax.f32 %v648_v53, %v704_v57  ;;  %v618_v52 = vld [vmem:[#allocation2 + $0x1] sm:$0xff]  ;;  %v619_v53 = vld [vmem:[#allocation2 + $0x11] sm:$0xff] }
  0x7b   : > { %v679_v59 = vmax.f32 %v663_v54, %v671_v43  ;;  %588 = vst [vmem:[#allocation2 + $0x80] sm:$0x1] %v4082_v34 }
  0x7c   : > { %v694_v62 = vmax.f32 %v678_v56, %v4411_v47  ;;  %591 = vst [vmem:[#allocation2 + $0x19] sm:$0x1] %v4082_v34  ;;  %v680_v5 = vmax.f32 %v664_v61, %v720_v58 }
  0x7d   : > { %v695_v63 = vmax.f32 %v679_v59, %v640_v50  ;;  %592 = vst [vmem:[#allocation2 + $0x29] sm:$0x1] %v4082_v34  ;;  %v722_v31 = vld [vmem:[#allocation2 + $0x91] sm:$0xff]  ;;  %1191 = vmatpush.bf16.msrb.mxu1 %v3605_v48  ;;  %v667_v59 = vld [vmem:[#allocation2 + $0x21] sm:$0xff] }
  0x7e   : > { %v711_v0 = vmax.f32 %v694_v62, %v616_v41  ;;  %593 = vst [vmem:[#allocation2 + $0x39] sm:$0x1] %v4082_v34  ;;  %v696_v19 = vmax.f32 %v680_v5, %v736_v1  ;;  %v611_v51 = vld [vmem:[#allocation2 + $0x10] sm:$0xff] }
  0x7f   : > { %v712_v3 = vmax.f32 %v695_v63, %v704_v57  ;;  %598 = vst [vmem:[#allocation2 + $0x89] sm:$0x1] %v4082_v34  ;;  %v627_v57 = vmax.f32 %v611_v51, %v619_v53 }
  0x80   : > { %v727_v7 = vmax.f32 %v711_v0, %v671_v43  ;;  %589 = vst [vmem:[#allocation2 + $0x90] sm:$0x1] %v4082_v34 }
  0x81   : > { %v728_v11 = vmax.f32 %v712_v3, %v720_v58  ;;  %599 = vst [vmem:[#allocation2 + $0x99] sm:$0x1] %v4082_v34 }
  0x82   : > { %v743_v18 = vmax.f32 %v727_v7, %v640_v50  ;;  %v657_v15 = vld [vmem:[#allocation2 + $0x80] sm:$0xff]  ;;  %1143 = vst [vmem:[#allocation2 + $0x70] sm:$0x1] %v4083_v44 }
  0x83   : > { %v744_v22 = vmax.f32 %v728_v11, %v736_v1  ;;  %v665_v23 = vmax.f32 %v649_v4, %v657_v15  ;;  %1144 = vst [vmem:[#allocation2 + $0x80] sm:$0x1] %v4083_v44  ;;  %v713_v30 = vmax.f32 %v696_v19, %v657_v15  ;;  %v635_v58 = vld [vmem:[#allocation2 + $0x12] sm:$0xff]  ;;  %v3612_v7 = vld [vmem:[%s6259_s5 + $0x28] sm:$0xf0] }
  0x84   : > { %1153 = vst [vmem:[#allocation2 + $0x79] sm:$0x1] %v4083_v44  ;;  %v636_v62 = vld [vmem:[#allocation2 + $0x22] sm:$0xff]  ;;  %v643_v0 = vmax.f32 %v627_v57, %v635_v58 }
  0x85   : > { %v749_v20 = vpack.c.bf16 %v744_v22, %v743_v18  ;;  %v681_v25 = vmax.f32 %v665_v23, %v673_v21  ;;  %580 = vst [vmem:[#allocation2] sm:$0x1] %v4082_v34  ;;  %v729_v40 = vmax.f32 %v713_v30, %v673_v21 }
  0x86   : > { %v689_v26 = vld [vmem:[#allocation2 + $0x82] sm:$0xff]  ;;  %590 = vst [vmem:[#allocation2 + $0x9] sm:$0x1] %v4082_v34 }
  0x87   : > { %3485 = vmatmul.msk.bf16.vlgmr.msra.gmra.mxu1 %vm601_vm0, %v749_v20  ;;  %v697_v28 = vmax.f32 %v681_v25, %v689_v26  ;;  %v706_v29 = vld [vmem:[#allocation2 + $0x90] sm:$0xff]  ;;  %1154 = vst [vmem:[#allocation2 + $0x89] sm:$0x1] %v4083_v44  ;;  %v745_v41 = vmax.f32 %v729_v40, %v689_v26 }
  0x88   : > { %v738_v33 = vld [vmem:[#allocation2 + $0x92] sm:$0xff]  ;;  %1140 = vst [vmem:[#allocation2 + $0x40] sm:$0x1] %v4083_v44 }
  0x89   : > { %v714_v35 = vmax.f32 %v697_v28, %v706_v29  ;;  %1134 = vst [vmem:[#allocation2 + $0x90] sm:$0xff] %v4083_v44 }
  0x8a   : > { %1135 = vst [vmem:[#allocation2 + $0x98] sm:$0x3] %v4083_v44 }
  0x8b   : > { %v730_v34 = vmax.f32 %v714_v35, %v722_v31  ;;  %1155 = vst [vmem:[#allocation2 + $0x99] sm:$0x1] %v4083_v44  ;;  %v573_v35 = vpack.c.bf16 %v4331_v14, %v4329_v13 }
  0x8c   : > { %1145 = vst [vmem:[#allocation2 + $0x90] sm:$0x1] %v4083_v44  ;;  %v610_v50 = vld [vmem:[#allocation2] sm:$0xff] }
  0x8d   : > { %1141 = vst [vmem:[#allocation2 + $0x50] sm:$0x1] %v4083_v44  ;;  %v746_v42 = vmax.f32 %v730_v34, %v738_v33  ;;  %v634_v54 = vld [vmem:[#allocation2 + $0x2] sm:$0xff]  ;;  %v626_v56 = vmax.f32 %v610_v50, %v618_v52 }
  0x8e   : > { %1150 = vst [vmem:[#allocation2 + $0x49] sm:$0x1] %v4083_v44  ;;  %v3525_v50 = vld [vmem:[%s6259_s5 + $0x8] sm:$0xf] }
  0x8f   : > { %1151 = vst [vmem:[#allocation2 + $0x59] sm:$0x1] %v4083_v44  ;;  %v750_v43 = vpack.c.bf16 %v746_v42, %v745_v41  ;;  %v642_v63 = vmax.f32 %v626_v56, %v634_v54 }
  0x90   : > { %1137 = vst [vmem:[#allocation2 + $0x10] sm:$0x1] %v4083_v44 }
  0x91   : > { %1132 = vst [vmem:[#allocation2] sm:$0xff] %v4083_v44  ;;  %v658_v4 = vmax.f32 %v642_v63, %v611_v51  ;;  %v4510_v51 = vld [vmem:[%s6258_s4] ss:$0 sm:$0xff] }
  0x92   : > { %1133 = vst [vmem:[#allocation2 + $0x8] sm:$0x3] %v4083_v44 }
  0x93   : > { %1136 = vst [vmem:[#allocation2] sm:$0x1] %v4083_v44  ;;  %v674_v11 = vmax.f32 %v658_v4, %v619_v53 }
  0x94   : > { %1146 = vst [vmem:[#allocation2 + $0x9] sm:$0x1] %v4083_v44 }
  0x95   : > { %1147 = vst [vmem:[#allocation2 + $0x19] sm:$0x1] %v4083_v44  ;;  %v690_v22 = vmax.f32 %v674_v11, %v635_v58 }
  0x96   : > { %1148 = vst [vmem:[#allocation2 + $0x29] sm:$0x1] %v4083_v44 }
  0x97   : > { %3486 = vmatmul.msk.bf16.gmra.mxu1 %vm601_vm0, %v750_v43 }
  0xf3   : > { %v2023_v49 = vpop.f32.mrf.mxu3  ;;  %v2009_v55 = vpop.f32.mrf.mxu2 }
  0xfb   : > { %v2025_v2 = vpop.f32.mrf.mxu3  ;;  %v2011_v24 = vpop.f32.mrf.mxu2 }
  0xfc   : > { %v2043_v6 = vpack.c.bf16 %v2025_v2, %v2023_v49  ;;  %v2042_v27 = vpack.c.bf16 %v2011_v24, %v2009_v55  ;;  %v571_v49 = vpack.c.bf16 %v4323_v9, %v4321_v8  ;;  %v612_v55 = vld [vmem:[#allocation2 + $0x20] sm:$0xff]  ;;  %v700_v8 = vld [vmem:[#allocation2 + $0x30] sm:$0xff] }
  0xfd   : > { %v716_v9 = vld [vmem:[#allocation2 + $0x31] sm:$0xff]  ;;  %v628_v61 = vmax.f32 %v612_v55, %v667_v59  ;;  %1138 = vst [vmem:[#allocation2 + $0x20] sm:$0x1] %v4083_v44  ;;  %v659_v5 = vmax.f32 %v643_v0, %v612_v55  ;;  %v707_v19 = vmax.f32 %v690_v22, %v612_v55 }
  0xfe   : > { %2051 = vmatpush.bf16.xpose.msrb.mxu3 %v2043_v6  ;;  %3495 = vmatmul.msk.bf16.vlgmr.msrb.gmra.mxu1 %vm601_vm0, %v571_v49  ;;  %v629_v1 = vmax.f32 %v700_v8, %v716_v9  ;;  %v732_v2 = vld [vmem:[#allocation2 + $0x32] sm:$0xff]  ;;  %1139 = vst [vmem:[#allocation2 + $0x30] sm:$0x1] %v4083_v44 }
  0xff   : > { %v644_v3 = vmax.f32 %v628_v61, %v636_v62  ;;  %v3537_v6 = vld [vmem:[%s6259_s5 + $0x20] sm:$0xf]  ;;  %v675_v18 = vmax.f32 %v659_v5, %v667_v59  ;;  %1149 = vst [vmem:[#allocation2 + $0x39] sm:$0x1] %v4083_v44  ;;  %v723_v26 = vmax.f32 %v707_v19, %v667_v59 }
 0x100   : > { %v645_v10 = vmax.f32 %v629_v1, %v732_v2  ;;  %v3538_v21 = vor.u32 %v3612_v7, %v3537_v6 }
 0x101   : > { %v660_v12 = vmax.f32 %v644_v3, %v700_v8  ;;  %v691_v23 = vmax.f32 %v675_v18, %v636_v62  ;;  %v739_v28 = vmax.f32 %v723_v26, %v636_v62 }
 0x102   : > { %v661_v15 = vmax.f32 %v645_v10, %v4397_v38  ;;  %2034 = vmatpush.bf16.msrb.mxu2 %v3538_v21 }
 0x103   : > { %v708_v24 = vmax.f32 %v691_v23, %v700_v8  ;;  %v676_v20 = vmax.f32 %v660_v12, %v716_v9 }
 0x104   : > { %v677_v25 = vmax.f32 %v661_v15, %v4391_v36 }
 0x105   : > { %2052 = vmatmul.bf16.vlgmr.msrb.gmra.mxu3 %v2042_v27  ;;  %v724_v27 = vmax.f32 %v708_v24, %v716_v9  ;;  %v692_v30 = vmax.f32 %v676_v20, %v732_v2 }
 0x106   : > { %v693_v31 = vmax.f32 %v677_v25, %v4408_v46 }
 0x107   : > { %v740_v29 = vmax.f32 %v724_v27, %v732_v2  ;;  %v709_v44 = vmax.f32 %v692_v30, %v4397_v38 }
 0x108   : > { %v710_v34 = vmax.f32 %v693_v31, %v4399_v39 }
 0x109   : > { %v747_v33 = vpack.c.bf16 %v740_v29, %v739_v28  ;;  %v725_v43 = vmax.f32 %v709_v44, %v4391_v36  ;;  %v3609_v36 = vld [vmem:[%s6259_s5 + $0x10] sm:$0xf0]  ;;  %v4547_v28 = vld [vmem:[%s6256_s2] sm:$0xff] }
 0x10a   : > { %v726_v13 = vmax.f32 %v710_v34, %v4394_v37  ;;  %v574_v37 = vpack.c.bf16 %v4339_v17, %v4337_v16  ;;  %v4559_v44 = vperm.slane %v4547_v28, 1  ;;  %v1224_v34 = vld [vmem:[#allocation2] sm:$0xff] }
 0x10b   : > { %3483 = vmatmul.msk.bf16.vlgmr.msra.gmra.mxu0 %vm601_vm0, %v747_v33  ;;  %v741_v45 = vmax.f32 %v725_v43, %v4408_v46  ;;  %v3526_v46 = vor.u32 %v3609_v36, %v3525_v50 }
 0x10c   : > { %v742_v48 = vmax.f32 %v726_v13, %v4411_v47  ;;  %v802_v47 = vpop.f32.mrf.mxu1 }
 0x10d   : > { %2035 = vmatpush.bf16.msrb.mxu2 %v3526_v46  ;;  %v4513_v52 = vadd.f32 %v4510_v51, %v802_v47  ;;  %v1266_v47 = vld [vmem:[#allocation2 + $0x2] sm:$0xff] }
 0x10e   : > { %3496 = vmatmul.msk.bf16.gmra.mxu1 %vm601_vm0, %v572_v60  ;;  %v748_v49 = vpack.c.bf16 %v742_v48, %v741_v45 }
 0x10f   : > { %v4519_v17 = vmul.f32 0.70710677, %v4513_v52 }
 0x110   : > { %3541 = vmatmul.msk.bf16.vlgmr.msrb.gmra.mxu2 %vm601_vm0, %v4379_v32 }
 0x111   : > { %v4525_v32 = vand.u32 2147483647, %v4519_v17  ;;  %vm832_vm7 = vcmp.ge.f32.partialorder %v4519_v17, 0.0 }
 0x113   : > { %v856_v56 = vmul.f32 0.3275911, %v4525_v32  ;;  %v1064_v13 = vsub.f32 0.0, %v4525_v32 }
 0x114   : > { %v804_v53 = vpop.f32.mrf.mxu1 }
 0x115   : > { %v4516_v16 = vadd.f32 %v4510_v51, %v804_v53  ;;  %v864_v58 = vadd.f32 1.0, %v856_v56  ;;  %v1072_v36 = vmul.f32 %v1064_v13, %v4525_v32 }
 0x117   : > { %v4522_v54 = vmul.f32 0.70710677, %v4516_v16  ;;  %3740 = vrcp.f32 %v864_v58  ;;  %vm933_vm9 = vweird.f32 %v864_v58  ;;  %v939_v2 = vand.u32 2147483648, %v864_v58 }
 0x118   : > { %v937_v4 = vand.u32 2147483647, %v864_v58 }
 0x119   : > { %v4528_v55 = vand.u32 2147483647, %v4522_v54  ;;  %v940_v7 = vor.u32 1.1754944e-38, %v939_v2 }
 0x11a   : > { %vm938_vm15 = vcmp.eq.f32.partialorder %v937_v4, 8.507059e+37 }
 0x11b   : > { %3484 = vmatmul.msk.bf16.gmra.mxu0 %vm601_vm0, %v748_v49  ;;  %v857_v57 = vmul.f32 0.3275911, %v4528_v55  ;;  %v4565_v49 = vperm.slane %v4547_v28, 2 }
 0x11c   : > { %v807_v6 = vpop.f32.mrf.mxu1 }
 0x11d   : > { %v865_v59 = vadd.f32 1.0, %v857_v57  ;;  %v3741_v60 = vpop.eup %3740  ;;  %v4539_v25 = vadd.f32 %v4510_v51, %v807_v6 }
 0x11e   : > { %3497 = vmatmul.msk.bf16.gmra.mxu1 %vm601_vm0, %v573_v35  ;;  %v929_v9 = vmul.f32 %v3741_v60, %v864_v58  ;;  %vm934_vm10 = vweird.f32 %v3741_v60  ;;  %v1275_v58 = vmul.f32 %v4565_v49, %v1266_v47 }
 0x11f   : > { %3742 = vrcp.f32 %v865_v59  ;;  %vm948_vm11 = vweird.f32 %v865_v59  ;;  %vm935_vm13 = vmor %vm933_vm9, %vm934_vm10  ;;  %v954_v5 = vand.u32 2147483648, %v865_v59  ;;  %v952_v12 = vand.u32 2147483647, %v865_v59 }
 0x120   : > { %v930_v62 = vsub.f32 1.0, %v929_v9  ;;  %v4542_v27 = vmul.f32 0.70710677, %v4539_v25  ;;  %vm833_vm9 = vcmp.ge.f32.partialorder %v4522_v54, 0.0 }
 0x121   : > { %v955_v18 = vor.u32 1.1754944e-38, %v954_v5  ;;  %vm953_vm1 = vcmp.eq.f32.partialorder %v952_v12, 8.507059e+37 }
 0x122   : > { %v931_v0 = vmul.f32 %v3741_v60, %v930_v62  ;;  %v4551_v30 = vand.u32 2147483647, %v4542_v27  ;;  %vm834_vm10 = vcmp.ge.f32.partialorder %v4542_v27, 0.0 }
 0x124   : > { %v932_v3 = vadd.f32 %v3741_v60, %v931_v0  ;;  %v809_v19 = vpop.f32.mrf.mxu1  ;;  %v858_v35 = vmul.f32 0.3275911, %v4551_v30  ;;  %v4576_v0 = vperm.slane %v4547_v28, 3 }
 0x125   : > { %v3743_v8 = vpop.eup %3742 }
 0x126   : > { %v944_v61 = vmul.f32 %v3743_v8, %v865_v59  ;;  %vm949_vm12 = vweird.f32 %v3743_v8  ;;  %v936_v11 = vsel %vm935_vm13, %v3741_v60, %v932_v3  ;;  %v1084_v60 = vmul.f32 1.442695, %v1072_v36 }
 0x127   : > { %vm950_vm14 = vmor %vm948_vm11, %vm949_vm12  ;;  %v4532_v21 = vsel %vm938_vm15, %v940_v7, %v936_v11 }
 0x128   : > { %v945_v63 = vsub.f32 1.0, %v944_v61  ;;  %v992_v23 = vmul.f32 1.0614054, %v4532_v21 }
 0x12a   : > { %v946_v1 = vmul.f32 %v3743_v8, %v945_v63  ;;  %v1000_v20 = vadd.f32 -1.4531521, %v992_v23 }
 0x12c   : > { %v947_v10 = vadd.f32 %v3743_v8, %v946_v1  ;;  %v1008_v29 = vmul.f32 %v1000_v20, %v4532_v21 }
 0x12e   : > { %3498 = vmatmul.msk.bf16.gmra.mxu1 %vm601_vm0, %v574_v37  ;;  %v951_v15 = vsel %vm950_vm14, %v3743_v8, %v947_v10  ;;  %v1016_v43 = vadd.f32 1.4214138, %v1008_v29  ;;  %v1065_v37 = vsub.f32 0.0, %v4528_v55 }
 0x12f   : > { %v4534_v22 = vsel %vm953_vm1, %v955_v18, %v951_v15 }
 0x130   : > { %v993_v24 = vmul.f32 1.0614054, %v4534_v22  ;;  %v1024_v50 = vmul.f32 %v1016_v43, %v4532_v21  ;;  %v1073_v8 = vmul.f32 %v1065_v37, %v4528_v55  ;;  %v4580_v55 = vadd.f32 %v4510_v51, %v809_v19 }
 0x131   : > { %v4594_v19 = vperm.slane %v4547_v28, 4  ;;  %v4604_v43 = vperm.slane %v4547_v28, 5 }
 0x132   : > { %v1001_v26 = vadd.f32 -1.4531521, %v993_v24  ;;  %v1032_v59 = vadd.f32 -0.28449672, %v1024_v50  ;;  %v1086_v3 = vmul.f32 1.442695, %v1073_v8 }
 0x133   : > { %6318 = vst [vmem:[#allocation18_spill] sm:$0xff] %v4580_v55 }
 0x134   : > { %v1009_v33 = vmul.f32 %v1001_v26, %v4534_v22  ;;  %v1040_v2 = vmul.f32 %v1032_v59, %v4532_v21  ;;  %6321 = vst [vmem:[#allocation19_spill] sm:$0xff] %v4594_v19  ;;  %v4597_v26 = vmul.f32 0.70710677, %v4580_v55 }
 0x135   : > { %6323 = vst [vmem:[#allocation21_spill] sm:$0xff] %v4604_v43 }
 0x136   : > { %v1017_v45 = vadd.f32 1.4214138, %v1009_v33  ;;  %6322 = vst [vmem:[#allocation20_spill] sm:$0xff] %v4597_v26  ;;  %v4611_v47 = vand.u32 2147483647, %v4597_v26 }
 0x138   : > { %v1025_v53 = vmul.f32 %v1017_v45, %v4534_v22  ;;  %v1048_v45 = vadd.f32 0.2548296, %v1040_v2  ;;  %6324 = vst [vmem:[#allocation22_spill] sm:$0xff] %v4611_v47 }
 0x13a   : > { %v1033_v9 = vadd.f32 -0.28449672, %v1025_v53 }
 0x13c   : > { %v1041_v11 = vmul.f32 %v1033_v9, %v4534_v22 }
 0x17b   : > { %v1193_v31 = vpop.f32.mrf.mxu1 }
 0x17c   : > { %1214 = vst.msk [vmem:[#allocation2 + $0x11] sm:$0xff] %vm1213_vm2, %v1193_v31 }
 0x183   : > { %v1195_v46 = vpop.f32.mrf.mxu1  ;;  %v1225_v4 = vld [vmem:[#allocation2 + $0x10] sm:$0xff] }
 0x184   : > { %1215 = vst.msk [vmem:[#allocation2 + $0x21] sm:$0xff] %vm1213_vm2, %v1195_v46  ;;  %v1242_v5 = vld [vmem:[#allocation2 + $0x11] sm:$0xff]  ;;  %v1300_v24 = vmul.f32 %v4576_v0, %v1225_v4 }
 0x185   : > { %v1251_v7 = vmul.f32 %v4559_v44, %v1242_v5  ;;  %v1267_v23 = vld [vmem:[#allocation2 + $0x12] sm:$0xff] }
 0x186   : > { %v1276_v31 = vmul.f32 %v4565_v49, %v1267_v23 }
 0x188   : > { %v2053_v40 = vpop.f32.mrf.mxu3 }
 0x189   : > { %v4482_v41 = vmul.f32 0.5, %v2053_v40  ;;  %v4556_v40 = vperm.slane %v4547_v28, 0 }
 0x18b   : > { %v2061_v42 = vsel %vm2060_vm8, %v4482_v41, -inf  ;;  %v1233_v48 = vmul.f32 %v4556_v40, %v1224_v34  ;;  %v1198_v10 = vpop.f32.mrf.mxu1  ;;  %v1234_v6 = vmul.f32 %v4556_v40, %v1225_v4  ;;  %v1243_v36 = vld [vmem:[#allocation2 + $0x21] sm:$0xff]  ;;  %v859_v4 = vmul.f32 0.3275911, %v4611_v47 }
 0x18c   : > { %2062 = vmax.xlane.f32.xlu0 %v2061_v42  ;;  %v1241_v42 = vld [vmem:[#allocation2 + $0x1] sm:$0xff]  ;;  %1216 = vst.msk [vmem:[#allocation2 + $0x31] sm:$0xff] %vm1213_vm2, %v1198_v10  ;;  %v6337_v47 = vmov -1.0  }
 0x18d   : > { %v1259_v29 = vadd.f32 %v1251_v7, %v1234_v6 }
 0x18f   : > { %v1284_v50 = vadd.f32 %v1276_v31, %v1259_v29  ;;  %v4639_v29 = vadd.f32 1.0, %v859_v4 }
 0x190   : > { %v2055_v14 = vpop.f32.mrf.mxu3 }
 0x191   : > { %v4491_v38 = vmul.f32 0.5, %v2055_v14  ;;  %v866_v14 = vadd.f32 1.0, %v858_v35  ;;  %v1226_v35 = vld [vmem:[#allocation2 + $0x20] sm:$0xff] }
 0x192   : > { %v1301_v13 = vmul.f32 %v4576_v0, %v1226_v35  ;;  %v1235_v53 = vmul.f32 %v4556_v40, %v1226_v35 }
 0x193   : > { %v2064_v39 = vsel %vm2060_vm8, %v4491_v38, -inf  ;;  %3744 = vrcp.f32 %v866_v14  ;;  %vm963_vm3 = vweird.f32 %v866_v14  ;;  %v969_v61 = vand.u32 2147483648, %v866_v14  ;;  %v1200_v8 = vpop.f32.mrf.mxu1 }
 0x194   : > { %2065 = vmax.xlane.f32.xlu0 %v2064_v39  ;;  %v1250_v39 = vmul.f32 %v4559_v44, %v1241_v42  ;;  %v967_v63 = vand.u32 2147483647, %v866_v14  ;;  %3746 = vpow2.f32 %v1084_v60  ;;  %v1325_v42 = vmul.f32 %v4594_v19, %v1242_v5  ;;  %1217 = vst.msk [vmem:[#allocation2 + $0x41] sm:$0xff] %vm1213_vm2, %v1200_v8  ;;  %v1269_v8 = vld [vmem:[#allocation2 + $0x32] sm:$0xff] }
 0x195   : > { %v970_v15 = vor.u32 1.1754944e-38, %v969_v61  ;;  %3748 = vpow2.f32 %v1086_v3  ;;  %v1309_v59 = vadd.f32 %v1301_v13, %v1284_v50  ;;  %v1326_v60 = vmul.f32 %v4594_v19, %v1243_v36  ;;  %v1244_v50 = vld [vmem:[#allocation2 + $0x31] sm:$0xff] }
 0x196   : > { %v1258_v56 = vadd.f32 %v1250_v39, %v1233_v48  ;;  %vm968_vm6 = vcmp.eq.f32.partialorder %v967_v63, 8.507059e+37  ;;  %v1049_v48 = vadd.f32 0.2548296, %v1041_v11  ;;  %v1350_v61 = vmul.f32 %v4604_v43, %v1267_v23  ;;  %v1227_v23 = vld [vmem:[#allocation2 + $0x30] sm:$0xff] }
 0x197   : > { %v1056_v63 = vmul.f32 %v1048_v45, %v4532_v21  ;;  %v4631_v21 = vld [vmem:[%s6256_s2 + $0x8] ss:$0 sm:$0xff]  ;;  %v4634_v11 = vperm.slane %v4547_v28, 6  ;;  %v1327_v17 = vmul.f32 %v4594_v19, %v1244_v50 }
 0x198   : > { %v1283_v1 = vadd.f32 %v1275_v58, %v1258_v56  ;;  %v1268_v58 = vld [vmem:[#allocation2 + $0x22] sm:$0xff] }
 0x199   : > { %v3745_v57 = vpop.eup %3744  ;;  %v1277_v5 = vmul.f32 %v4565_v49, %v1268_v58  ;;  %v1351_v6 = vmul.f32 %v4604_v43, %v1268_v58  ;;  %6325 = vst [vmem:[#allocation23_spill] sm:$0xff] %v4634_v11  ;;  %v1375_v31 = vmul.f32 %v4634_v11, %v1226_v35 }
 0x19a   : > { %v959_v32 = vmul.f32 %v3745_v57, %v866_v14  ;;  %vm964_vm4 = vweird.f32 %v3745_v57  ;;  %v1308_v33 = vadd.f32 %v1300_v24, %v1283_v1  ;;  %v3747_v14 = vpop.eup %3746  ;;  %v1057_v1 = vmul.f32 %v1049_v48, %v4534_v22 }
 0x19b   : > { %vm4588_vm5 = vmor %vm963_vm3, %vm964_vm4  ;;  %v1096_v18 = vmul.f32 %v3747_v14, %v1056_v63  ;;  %v1066_v24 = vsub.f32 0.0, %v4551_v30  ;;  %v1203_v14 = vpop.f32.mrf.mxu1  ;;  %v1425_v48 = vmul.f32 %v4631_v21, %v1268_v58 }
 0x19c   : > { %v960_v62 = vsub.f32 1.0, %v959_v32  ;;  %v1333_v9 = vadd.f32 %v1325_v42, %v1308_v33  ;;  %1218 = vst.msk [vmem:[#allocation2 + $0x51] sm:$0xff] %vm1213_vm2, %v1203_v14  ;;  %v1398_v14 = vld [vmem:[#allocation2 + $0x91] sm:$0xff] }
 0x19e   : > { %v961_v12 = vmul.f32 %v3745_v57, %v960_v62  ;;  %v3749_v62 = vpop.eup %3748  ;;  %v1358_v7 = vadd.f32 %v1350_v61, %v1333_v9 }
 0x1a0   : > { %v962_v20 = vadd.f32 %v3745_v57, %v961_v12  ;;  %v1334_v12 = vadd.f32 %v1326_v60, %v1309_v59  ;;  %v1383_v45 = vadd.f32 %v1375_v31, %v1358_v7  ;;  %v1074_v59 = vmul.f32 %v1066_v24, %v4551_v30 }
 0x1a1   : > { %v816_v31 = vmul.f32 0.5, %v4513_v52 }
 0x1a2   : > { %v966_v34 = vsel %vm4588_vm5, %v3745_v57, %v962_v20  ;;  %v1252_v57 = vmul.f32 %v4559_v44, %v1243_v36  ;;  %v1359_v13 = vadd.f32 %v1351_v6, %v1334_v12  ;;  %v1088_v4 = vmul.f32 1.442695, %v1074_v59 }
 0x1a3   : > { %v4607_v39 = vsel %vm968_vm6, %v970_v15, %v966_v34  ;;  %v1097_v15 = vmul.f32 %v3749_v62, %v1057_v1  ;;  %v1236_v12 = vmul.f32 %v4556_v40, %v1227_v23  ;;  %v1352_v6 = vmul.f32 %v4604_v43, %v1269_v8 }
 0x1a4   : > { %v994_v46 = vmul.f32 1.0614054, %v4607_v39  ;;  %v1260_v10 = vadd.f32 %v1252_v57, %v1235_v53  ;;  %v1104_v53 = vsub.f32 1.0, %v1096_v18  ;;  %v1253_v18 = vmul.f32 %v4559_v44, %v1244_v50 }
 0x1a6   : > { %v1002_v32 = vadd.f32 -1.4531521, %v994_v46  ;;  %v1285_v42 = vadd.f32 %v1277_v5, %v1260_v10  ;;  %v1376_v46 = vmul.f32 %v4634_v11, %v1227_v23 }
 0x1a8   : > { %v1010_v3 = vmul.f32 %v1002_v32, %v4607_v39  ;;  %v1384_v30 = vadd.f32 %v1376_v46, %v1359_v13  ;;  %v1228_v13 = vld [vmem:[#allocation2 + $0x40] sm:$0xff] }
 0x1aa   : > { %v1018_v22 = vadd.f32 1.4214138, %v1010_v3 }
 0x1ac   : > { %v1026_v34 = vmul.f32 %v1018_v22, %v4607_v39 }
 0x1ae   : > { %v1034_v9 = vadd.f32 -0.28449672, %v1026_v34  ;;  %v817_v34 = vmul.f32 0.5, %v4516_v16  ;;  %v1261_v16 = vadd.f32 %v1253_v18, %v1236_v12 }
 0x1b0   : > { %v1042_v10 = vmul.f32 %v1034_v9, %v4607_v39  ;;  %v1270_v9 = vld [vmem:[#allocation2 + $0x42] sm:$0xff] }
 0x1ff   : > { %v2063_v37 = vpop.xlane.xlu0 %2062 }
 0x200   : > { %v2067_v56 = vsub.f32 %v4482_v41, %v2063_v37  ;;  %v4622_v41 = vperm.slane %v4547_v28, 7  ;;  %v1302_v37 = vmul.f32 %v4576_v0, %v1227_v23 }
 0x202   : > { %v2069_v2 = vmul.f32 1.442695, %v2067_v56  ;;  %v1400_v33 = vmul.f32 %v4622_v41, %v1243_v36  ;;  %v6268_v36 = vmov -1.0   ;;  %v1105_v56 = vsub.f32 1.0, %v1097_v15 }
 0x203   : > { %v841_v32 = vsel %vm833_vm9, 1.0, %v6268_v36  ;;  %v1310_v62 = vadd.f32 %v1302_v37, %v1285_v42  ;;  %v1401_v63 = vmul.f32 %v4622_v41, %v1244_v50  ;;  %v1278_v37 = vmul.f32 %v4565_v49, %v1269_v8 }
 0x204   : > { %3750 = vpow2.f32 %v2069_v2  ;;  %v1408_v60 = vadd.f32 %v1400_v33, %v1383_v45  ;;  %v1426_v2 = vmul.f32 %v4631_v21, %v1269_v8  ;;  %v1113_v3 = vmul.f32 %v1105_v56, %v841_v32  ;;  %v1245_v32 = vld [vmem:[#allocation2 + $0x41] sm:$0xff] }
 0x205   : > { %3752 = vrcp.f32 %v4639_v29  ;;  %v1409_v54 = vadd.f32 %v1401_v63, %v1384_v30  ;;  %v1335_v15 = vadd.f32 %v1327_v17, %v1310_v62  ;;  %v1050_v45 = vadd.f32 0.2548296, %v1042_v10 }
 0x206   : > { %v4662_v61 = vadd.f32 %v1425_v48, %v1408_v60  ;;  %v1121_v23 = vadd.f32 1.0, %v1113_v3  ;;  %v4701_v56 = vmul.f32 %v4622_v41, %v1398_v14  ;;  %v4714_v62 = vsel %vm834_vm10, 1.0, %v6268_v36 }
 0x207   : > { %v2066_v20 = vpop.xlane.xlu0 %2065  ;;  %v4678_v24 = vadd.f32 %v1426_v2, %v1409_v54  ;;  %v1360_v46 = vadd.f32 %v1352_v6, %v1335_v15  ;;  %v1058_v60 = vmul.f32 %v1050_v45, %v4607_v39  ;;  %6330 = vst [vmem:[#allocation28_spill] sm:$0xff] %v4714_v62  ;;  %v1286_v30 = vadd.f32 %v1278_v37, %v1261_v16  ;;  %v1205_v54 = vpop.f32.mrf.mxu1 }
 0x208   : > { %v2068_v28 = vsub.f32 %v4491_v38, %v2066_v20  ;;  %v840_v38 = vsel %vm832_vm7, 1.0, %v6268_v36  ;;  %v4667_v5 = vmul.f32 0.70710677, %v4662_v61  ;;  %6327 = vst [vmem:[#allocation25_spill] sm:$0xff] %v4701_v56  ;;  %v4705_v59 = vmul.f32 %v1121_v23, %v817_v34 }
 0x209   : > { %v1112_v1 = vmul.f32 %v1104_v53, %v840_v38  ;;  %v4690_v50 = vmul.f32 0.70710677, %v4678_v24  ;;  %v1377_v53 = vmul.f32 %v4634_v11, %v1228_v13  ;;  %v1303_v63 = vmul.f32 %v4576_v0, %v1228_v13  ;;  %1219 = vst.msk [vmem:[#allocation2 + $0x61] sm:$0xff] %vm1213_vm2, %v1205_v54  ;;  %v4765_v54 = vld [vmem:[#allocation2 + $0x51] sm:$0xff] }
 0x20a   : > { %v4649_v35 = vpop.eup %3750  ;;  %v2071_v57 = vmul.f32 1.442695, %v2068_v28  ;;  %v4675_v7 = vand.u32 2147483647, %v4667_v5  ;;  %v1237_v39 = vmul.f32 %v4556_v40, %v1228_v13  ;;  %v1254_v10 = vmul.f32 %v4559_v44, %v1245_v32 }
 0x20b   : > { %v2073_v58 = vsel %vm2060_vm8, %v4649_v35, 0.0  ;;  %v4672_v22 = vpop.eup %3752  ;;  %v1120_v33 = vadd.f32 1.0, %v1112_v1  ;;  %v4697_v38 = vand.u32 2147483647, %v4690_v50  ;;  %v1385_v1 = vadd.f32 %v1377_v53, %v1360_v46 }
 0x20c   : > { %3754 = vpow2.f32 %v2071_v57  ;;  %2074 = vadd.xlane.f32.xlu1 %v2073_v58  ;;  %6326 = vst [vmem:[#allocation24_spill] sm:$0xff] %v4672_v22  ;;  %v1481_v42 = vmul.f32 0.3275911, %v4675_v7  ;;  %v974_v48 = vmul.f32 %v4672_v22, %v4639_v29  ;;  %v4709_v58 = vmul.f32 0.5, %v4539_v25 }
 0x20d   : > { %3756 = vpow2.f32 %v1088_v4  ;;  %v4703_v57 = vmul.f32 %v1120_v33, %v816_v31  ;;  %v1482_v8 = vmul.f32 0.3275911, %v4697_v38  ;;  %v792_v4 = vpop.f32.mrf.mxu0  ;;  %v1402_v12 = vmul.f32 %v4622_v41, %v1245_v32 }
 0x20e   : > { %v4692_v52 = vadd.f32 1.0, %v1481_v42  ;;  %6329 = vst [vmem:[#allocation27_spill] sm:$0xff] %v4709_v58  ;;  %v975_v27 = vsub.f32 1.0, %v974_v48  ;;  %v1427_v6 = vmul.f32 %v4631_v21, %v1270_v9  ;;  %v4726_v18 = vadd.f32 %v4510_v51, %v792_v4 }
 0x20f   : > { %6328 = vst [vmem:[#allocation26_spill] sm:$0xff] %v4703_v57  ;;  %v4719_v3 = vadd.f32 1.0, %v1482_v8  ;;  %v1328_v33 = vmul.f32 %v4594_v19, %v1245_v32  ;;  %v1410_v42 = vadd.f32 %v1402_v12, %v1385_v1  ;;  %vm1457_vm11 = vcmp.ge.f32.partialorder %v4667_v5, 0.0 }
 0x210   : > { %3758 = vrcp.f32 %v4692_v52  ;;  %v4732_v31 = vmul.f32 %v4672_v22, %v975_v27  ;;  %v1506_v23 = vand.u32 2147483647, %v4692_v52  ;;  %v4738_v13 = vmul.f32 0.70710677, %v4726_v18 }
 0x211   : > { %3760 = vrcp.f32 %v4719_v3  ;;  %v1508_v45 = vand.u32 2147483648, %v4692_v52  ;;  %v1689_v48 = vsub.f32 0.0, %v4675_v7  ;;  %v1262_v16 = vadd.f32 %v1254_v10, %v1237_v39 }
 0x212   : > { %v4680_v20 = vpop.eup %3754  ;;  %6332 = vst [vmem:[#allocation30_spill] sm:$0xff] %v4732_v31  ;;  %v1279_v37 = vmul.f32 %v4565_v49, %v1270_v9  ;;  %v4745_v46 = vadd.f32 %v1427_v6, %v1410_v42  ;;  %v4748_v53 = vand.u32 2147483647, %v4738_v13  ;;  %vm1502_vm12 = vweird.f32 %v4692_v52 }
 0x213   : > { %v2076_v28 = vsel %vm2060_vm8, %v4680_v20, 0.0  ;;  %v3757_v17 = vpop.eup %3756  ;;  %v1353_v27 = vmul.f32 %v4604_v43, %v1270_v9  ;;  %vm4752_vm14 = vcmp.eq.f32.partialorder %v1506_v23, 8.507059e+37  ;;  %v1509_v4 = vor.u32 1.1754944e-38, %v1508_v45 }
 0x214   : > { %2077 = vadd.xlane.f32.xlu1 %v2076_v28  ;;  %v4729_v15 = vmul.f32 %v3757_v17, %v1058_v60  ;;  %v1311_v28 = vadd.f32 %v1303_v63, %v1286_v30  ;;  %v4757_v17 = vmul.f32 0.70710677, %v4745_v46  ;;  %v852_v30 = vmul.f32 0.3275911, %v4748_v53  ;;  %v4760_v63 = vld [vmem:[#allocation2 + $0x50] sm:$0xff] }
 0x215   : > { %v1238_v9 = vmul.f32 %v4556_v40, %v4760_v63  ;;  %v1255_v23 = vmul.f32 %v4559_v44, %v4765_v54  ;;  %vm1517_vm1 = vweird.f32 %v4719_v3  ;;  %v1523_v42 = vand.u32 2147483648, %v4719_v3 }
 0x216   : > { %6331 = vst [vmem:[#allocation29_spill] sm:$0xff] %v4729_v15  ;;  %v3759_v34 = vpop.eup %3758  ;;  %v1336_v32 = vadd.f32 %v1328_v33, %v1311_v28  ;;  %v4773_v6 = vand.u32 2147483647, %v4757_v17  ;;  %v4775_v33 = vadd.f32 1.0, %v852_v30  ;;  %v1521_v28 = vand.u32 2147483647, %v4719_v3 }
 0x217   : > { %v1498_v14 = vmul.f32 %v3759_v34, %v4692_v52  ;;  %vm1503_vm13 = vweird.f32 %v3759_v34  ;;  %v3761_v1 = vpop.eup %3760  ;;  %v1697_v52 = vmul.f32 %v1689_v48, %v4675_v7  ;;  %v1690_v45 = vsub.f32 0.0, %v4697_v38 }
 0x218   : > { %vm4767_vm15 = vmor %vm1502_vm12, %vm1503_vm13  ;;  %v1513_v12 = vmul.f32 %v3761_v1, %v4719_v3  ;;  %vm1518_vm3 = vweird.f32 %v3761_v1  ;;  %v1483_v48 = vmul.f32 0.3275911, %v4773_v6  ;;  %3762 = vrcp.f32 %v4775_v33 }
 0x219   : > { %v1499_v60 = vsub.f32 1.0, %v1498_v14  ;;  %v1705_v25 = vmul.f32 1.442695, %v1697_v52  ;;  %v1263_v55 = vadd.f32 %v1255_v23, %v1238_v9  ;;  %v4798_v26 = vmul.f32 0.5, %v4662_v61  ;;  %vm4809_vm4 = vmor %vm1517_vm1, %vm1518_vm3 }
 0x21a   : > { %v1514_v14 = vsub.f32 1.0, %v1513_v12  ;;  %v4795_v36 = vadd.f32 1.0, %v1483_v48  ;;  %vm1522_vm5 = vcmp.eq.f32.partialorder %v1521_v28, 8.507059e+37  ;;  %v1698_v61 = vmul.f32 %v1690_v45, %v4697_v38 }
 0x21b   : > { %v1500_v39 = vmul.f32 %v3759_v34, %v1499_v60  ;;  %v4784_v60 = vld [vmem:[#allocation2 + $0x52] sm:$0xff]  ;;  %vm1458_vm6 = vcmp.ge.f32.partialorder %v4690_v50, 0.0  ;;  %v1287_v5 = vadd.f32 %v1279_v37, %v1262_v16  ;;  %v4823_v28 = vmul.f32 0.5, %v4678_v24 }
 0x21c   : > { %v1515_v12 = vmul.f32 %v3761_v1, %v1514_v14  ;;  %3764 = vrcp.f32 %v4795_v36  ;;  %v1304_v50 = vmul.f32 %v4576_v0, %v4760_v63  ;;  %v4830_v16 = vsel %vm1458_vm6, 1.0, %v6337_v47 }
 0x21d   : > { %v1501_v7 = vadd.f32 %v3759_v34, %v1500_v39  ;;  %v1280_v39 = vmul.f32 %v4565_v49, %v4784_v60  ;;  %3766 = vpow2.f32 %v1705_v25  ;;  %v1707_v37 = vmul.f32 1.442695, %v1698_v61 }
 0x21e   : > { %v1516_v10 = vadd.f32 %v3761_v1, %v1515_v12  ;;  %vm1459_vm7 = vcmp.ge.f32.partialorder %v4757_v17, 0.0  ;;  %vm873_vm9 = vweird.f32 %v4775_v33  ;;  %v877_v24 = vand.u32 2147483647, %v4775_v33 }
 0x21f   : > { %v1505_v30 = vsel %vm4767_vm15, %v3759_v34, %v1501_v7  ;;  %v4803_v34 = vsel %vm1457_vm11, 1.0, %v6337_v47  ;;  %v1361_v7 = vadd.f32 %v1353_v27, %v1336_v32  ;;  %v4819_v14 = vadd.f32 %v1280_v39, %v1263_v55 }
 0x220   : > { %v4793_v2 = vsel %vm4752_vm14, %v1509_v4, %v1505_v30  ;;  %v1524_v4 = vor.u32 1.1754944e-38, %v1523_v42  ;;  %v1520_v3 = vsel %vm4809_vm4, %v3761_v1, %v1516_v10  ;;  %v3763_v42 = vpop.eup %3762  ;;  %v1536_v1 = vand.u32 2147483647, %v4795_v36 }
 0x221   : > { %v1617_v52 = vmul.f32 1.0614054, %v4793_v2  ;;  %v869_v55 = vmul.f32 %v3763_v42, %v4775_v33  ;;  %v879_v30 = vand.u32 2147483648, %v4775_v33  ;;  %v1691_v8 = vsub.f32 0.0, %v4773_v6 }
 0x222   : > { %v4825_v38 = vsel %vm1522_vm5, %v1524_v4, %v1520_v3  ;;  %v3765_v39 = vpop.eup %3764  ;;  %vm874_vm10 = vweird.f32 %v3763_v42  ;;  %3768 = vpow2.f32 %v1707_v37  ;;  %v4846_v10 = vsel %vm1459_vm7, 1.0, %v6337_v47 }
 0x223   : > { %v1625_v23 = vadd.f32 -1.4531521, %v1617_v52  ;;  %v1618_v25 = vmul.f32 1.0614054, %v4825_v38  ;;  %v870_v45 = vsub.f32 1.0, %v869_v55  ;;  %v4841_v52 = vmul.f32 0.5, %v4745_v46  ;;  %v3767_v17 = vpop.eup %3766  ;;  %v1208_v46 = vpop.f32.mrf.mxu1  ;;  %vm4858_vm14 = vmor %vm873_vm9, %vm874_vm10 }
 0x224   : > { %v1528_v61 = vmul.f32 %v3765_v39, %v4795_v36  ;;  %vm1532_vm11 = vweird.f32 %v4795_v36  ;;  %v1538_v3 = vand.u32 2147483648, %v4795_v36  ;;  %vm1533_vm12 = vweird.f32 %v3765_v39  ;;  %1220 = vst.msk [vmem:[#allocation2 + $0x71] sm:$0xff] %vm1213_vm2, %v1208_v46 }
 0x225   : > { %v1633_v48 = vmul.f32 %v1625_v23, %v4793_v2  ;;  %v1626_v32 = vadd.f32 -1.4531521, %v1618_v25  ;;  %vm4851_vm13 = vcmp.eq.f32.partialorder %v1536_v1, 8.507059e+37  ;;  %vm878_vm15 = vcmp.eq.f32.partialorder %v877_v24, 8.507059e+37  ;;  %vm4870_vm1 = vmor %vm1532_vm11, %vm1533_vm12 }
 0x226   : > { %v1529_v55 = vsub.f32 1.0, %v1528_v61  ;;  %v1378_v9 = vmul.f32 %v4634_v11, %v4760_v63  ;;  %v1539_v46 = vor.u32 1.1754944e-38, %v1538_v3  ;;  %v1312_v63 = vadd.f32 %v1304_v50, %v1287_v5 }
 0x227   : > { %v1641_v27 = vadd.f32 1.4214138, %v1633_v48  ;;  %v1634_v4 = vmul.f32 %v1626_v32, %v4825_v38  ;;  %v871_v48 = vmul.f32 %v3763_v42, %v870_v45  ;;  %v1699_v45 = vmul.f32 %v1691_v8, %v4773_v6 }
 0x228   : > { %v1530_v61 = vmul.f32 %v3765_v39, %v1529_v55  ;;  %v3769_v8 = vpop.eup %3768  ;;  %vm828_vm3 = vcmp.ge.f32.partialorder %v4738_v13, 0.0 }
 0x229   : > { %v1649_v12 = vmul.f32 %v1641_v27, %v4793_v2  ;;  %v1642_v25 = vadd.f32 1.4214138, %v1634_v4  ;;  %v880_v4 = vor.u32 1.1754944e-38, %v879_v30  ;;  %v1403_v30 = vmul.f32 %v4622_v41, %v4765_v54 }
 0x22a   : > { %v1531_v24 = vadd.f32 %v3765_v39, %v1530_v61  ;;  %v1709_v36 = vmul.f32 1.442695, %v1699_v45 }
 0x22b   : > { %v1657_v23 = vadd.f32 -0.28449672, %v1649_v12  ;;  %v872_v12 = vadd.f32 %v3763_v42, %v871_v48  ;;  %v1650_v1 = vmul.f32 %v1642_v25, %v4825_v38  ;;  %v1060_v48 = vsub.f32 0.0, %v4748_v53  ;;  %v4987_v58 = vld [vmem:[#allocation2 + $0x71] sm:$0xff] }
 0x22c   : > { %3770 = vpow2.f32 %v1709_v36 }
 0x22d   : > { %v1665_v32 = vmul.f32 %v1657_v23, %v4793_v2  ;;  %v876_v6 = vsel %vm4858_vm14, %v3763_v42, %v872_v12  ;;  %v1658_v23 = vadd.f32 -0.28449672, %v1650_v1  ;;  %v1535_v42 = vsel %vm4870_vm1, %v3765_v39, %v1531_v24  ;;  %v794_v1 = vpop.f32.mrf.mxu0 }
 0x22e   : > { %v4880_v55 = vsel %vm878_vm15, %v880_v4, %v876_v6  ;;  %v1428_v12 = vmul.f32 %v4631_v21, %v4784_v60  ;;  %v4890_v5 = vsel %vm4851_vm13, %v1539_v46, %v1535_v42  ;;  %v4893_v50 = vadd.f32 %v4510_v51, %v794_v1 }
 0x22f   : > { %v1673_v33 = vadd.f32 0.2548296, %v1665_v32  ;;  %v1386_v32 = vadd.f32 %v1378_v9, %v1361_v7  ;;  %v1666_v3 = vmul.f32 %v1658_v23, %v4825_v38  ;;  %v988_v37 = vmul.f32 1.0614054, %v4880_v55 }
 0x230   : > { %v1619_v7 = vmul.f32 1.0614054, %v4890_v5  ;;  %v1068_v39 = vmul.f32 %v1060_v48, %v4748_v53  ;;  %v1329_v4 = vmul.f32 %v4594_v19, %v4765_v54  ;;  %v1354_v23 = vmul.f32 %v4604_v43, %v4784_v60 }
 0x231   : > { %v1681_v25 = vmul.f32 %v1673_v33, %v4793_v2  ;;  %v1411_v2 = vadd.f32 %v1403_v30, %v1386_v32  ;;  %v1674_v9 = vadd.f32 0.2548296, %v1666_v3  ;;  %v996_v56 = vadd.f32 -1.4531521, %v988_v37 }
 0x232   : > { %v1627_v46 = vadd.f32 -1.4531521, %v1619_v7  ;;  %v1076_v32 = vmul.f32 1.442695, %v1068_v39  ;;  %v1337_v3 = vadd.f32 %v1329_v4, %v1312_v63  ;;  %v3771_v63 = vpop.eup %3770 }
 0x233   : > { %v1721_v61 = vmul.f32 %v3767_v17, %v1681_v25  ;;  %v1436_v33 = vadd.f32 %v1428_v12, %v1411_v2  ;;  %v4900_v17 = vmul.f32 0.70710677, %v4893_v50  ;;  %v1682_v27 = vmul.f32 %v1674_v9, %v4825_v38 }
 0x234   : > { %v1004_v6 = vmul.f32 %v996_v56, %v4880_v55  ;;  %v1635_v48 = vmul.f32 %v1627_v46, %v4890_v5  ;;  %3772 = vpow2.f32 %v1076_v32 }
 0x235   : > { %v1729_v45 = vsub.f32 1.0, %v1721_v61  ;;  %v4907_v53 = vmul.f32 0.70710677, %v1436_v33  ;;  %v4910_v24 = vand.u32 2147483647, %v4900_v17  ;;  %v1722_v54 = vmul.f32 %v3769_v8, %v1682_v27 }
 0x236   : > { %v1012_v25 = vadd.f32 1.4214138, %v1004_v6  ;;  %v1643_v60 = vadd.f32 1.4214138, %v1635_v48  ;;  %vm829_vm14 = vcmp.ge.f32.partialorder %v4900_v17, 0.0 }
 0x237   : > { %v1737_v30 = vmul.f32 %v1729_v45, %v4803_v34  ;;  %v1476_v36 = vand.u32 2147483647, %v4907_v53  ;;  %v853_v42 = vmul.f32 0.3275911, %v4910_v24  ;;  %v4915_v34 = vld [vmem:[#allocation2 + $0x60] sm:$0xff]  ;;  %v1730_v37 = vsub.f32 1.0, %v1722_v54 }
 0x238   : > { %v1020_v12 = vmul.f32 %v1012_v25, %v4880_v55  ;;  %v1305_v1 = vmul.f32 %v4576_v0, %v4915_v34  ;;  %v1651_v56 = vmul.f32 %v1643_v60, %v4890_v5  ;;  %v4927_v45 = vld [vmem:[#allocation2 + $0x61] sm:$0xff]  ;;  %v1362_v54 = vadd.f32 %v1354_v23, %v1337_v3  ;;  %v1210_v3 = vpop.f32.mrf.mxu1 }
 0x239   : > { %v1745_v38 = vadd.f32 1.0, %v1737_v30  ;;  %v1484_v61 = vmul.f32 0.3275911, %v1476_v36  ;;  %v1692_v2 = vsub.f32 0.0, %v1476_v36  ;;  %v4923_v9 = vadd.f32 1.0, %v853_v42  ;;  %1221 = vst.msk [vmem:[#allocation2 + $0x81] sm:$0xff] %vm1213_vm2, %v1210_v3 }
 0x23a   : > { %v1738_v7 = vmul.f32 %v1730_v37, %v4830_v16  ;;  %v1028_v39 = vadd.f32 -0.28449672, %v1020_v12  ;;  %v1330_v4 = vmul.f32 %v4594_v19, %v4927_v45  ;;  %v1659_v16 = vadd.f32 -0.28449672, %v1651_v56  ;;  %v4985_v3 = vld [vmem:[#allocation2 + $0x70] sm:$0xff] }
 0x23b   : > { %v4921_v8 = vmul.f32 %v1745_v38, %v4798_v26  ;;  %v4932_v26 = vadd.f32 1.0, %v1484_v61  ;;  %3774 = vrcp.f32 %v4923_v9  ;;  %v1313_v6 = vadd.f32 %v1305_v1, %v4819_v14  ;;  %v4961_v1 = vld [vmem:[#allocation2 + $0x62] sm:$0xff] }
 0x23c   : > { %v1746_v27 = vadd.f32 1.0, %v1738_v7  ;;  %v1036_v46 = vmul.f32 %v1028_v39, %v4880_v55  ;;  %v4940_v30 = vmul.f32 0.5, %v4726_v18  ;;  %v1700_v48 = vmul.f32 %v1692_v2, %v1476_v36  ;;  %v3773_v36 = vpop.eup %3772 }
 0x23d   : > { %6346 = vst [vmem:[#allocation31_spill] sm:$0xff] %v4921_v8  ;;  %3776 = vrcp.f32 %v4932_v26  ;;  %v1667_v32 = vmul.f32 %v1659_v16, %v4890_v5  ;;  %v1551_v42 = vand.u32 2147483647, %v4932_v26  ;;  %v4951_v37 = vsel %vm828_vm3, 1.0, %v6337_v47 }
 0x23e   : > { %2150 = vst.msk [vmem:[#allocation2 + $0x11] sm:$0xff] %vm1213_vm2, %v4921_v8  ;;  %v4944_v25 = vmul.f32 %v1746_v27, %v4823_v28  ;;  %v1044_v38 = vadd.f32 0.2548296, %v1036_v46  ;;  %v4953_v14 = vmul.f32 0.5, %v1436_v33  ;;  %v1553_v18 = vand.u32 2147483648, %v4932_v26 }
 0x23f   : > { %v892_v23 = vand.u32 2147483647, %v4923_v9  ;;  %v1675_v28 = vadd.f32 0.2548296, %v1667_v32  ;;  %v894_v12 = vand.u32 2147483648, %v4923_v9  ;;  %v1338_v13 = vadd.f32 %v1330_v4, %v1313_v6 }
 0x240   : > { %6347 = vst [vmem:[#allocation32_spill] sm:$0xff] %v4944_v25  ;;  %v1052_v60 = vmul.f32 %v1044_v38, %v4880_v55  ;;  %vm1547_vm4 = vweird.f32 %v4932_v26  ;;  %vm888_vm5 = vweird.f32 %v4923_v9  ;;  %v1061_v33 = vsub.f32 0.0, %v4910_v24 }
 0x241   : > { %2151 = vst.msk [vmem:[#allocation2 + $0x21] sm:$0xff] %vm1213_vm2, %v4944_v25  ;;  %v3775_v61 = vpop.eup %3774  ;;  %v1355_v2 = vmul.f32 %v4604_v43, %v4961_v1  ;;  %v1683_v7 = vmul.f32 %v1675_v28, %v4890_v5  ;;  %vm4970_vm6 = vcmp.eq.f32.partialorder %v1551_v42, 8.507059e+37  ;;  %v1711_v56 = vmul.f32 1.442695, %v1700_v48  ;;  %v797_v42 = vpop.f32.mrf.mxu0 }
 0x242   : > { %v884_v39 = vmul.f32 %v3775_v61, %v4923_v9  ;;  %vm1460_vm7 = vcmp.ge.f32.partialorder %v4907_v53, 0.0  ;;  %v1554_v27 = vor.u32 1.1754944e-38, %v1553_v18  ;;  %vm4976_vm9 = vcmp.eq.f32.partialorder %v892_v23, 8.507059e+37 }
 0x243   : > { %v3777_v4 = vpop.eup %3776  ;;  %v1379_v46 = vmul.f32 %v4634_v11, %v4915_v34  ;;  %v1404_v5 = vmul.f32 %v4622_v41, %v4927_v45  ;;  %v1723_v6 = vmul.f32 %v3771_v63, %v1683_v7  ;;  %v1092_v32 = vmul.f32 %v3773_v36, %v1052_v60 }
 0x244   : > { %v1543_v48 = vmul.f32 %v3777_v4, %v4932_v26  ;;  %v895_v38 = vor.u32 1.1754944e-38, %v894_v12  ;;  %v885_v28 = vsub.f32 1.0, %v884_v39  ;;  %vm889_vm10 = vweird.f32 %v3775_v61 }
 0x245   : > { %v1363_v18 = vadd.f32 %v1355_v2, %v1338_v13  ;;  %v1387_v23 = vadd.f32 %v1379_v46, %v1362_v54  ;;  %v1731_v31 = vsub.f32 1.0, %v1723_v6  ;;  %vm1548_vm11 = vweird.f32 %v3777_v4  ;;  %vm5000_vm12 = vmor %vm888_vm5, %vm889_vm10  ;;  %v5006_v46 = vld [vmem:[#allocation2 + $0x72] sm:$0xff] }
 0x246   : > { %v1544_v25 = vsub.f32 1.0, %v1543_v48  ;;  %v1429_v22 = vmul.f32 %v4631_v21, %v4961_v1  ;;  %v886_v63 = vmul.f32 %v3775_v61, %v885_v28  ;;  %v4992_v60 = vadd.f32 %v4510_v51, %v797_v42  ;;  %vm5010_vm13 = vmor %vm1547_vm4, %vm1548_vm11 }
 0x247   : > { %v1412_v36 = vadd.f32 %v1404_v5, %v1387_v23  ;;  %v1380_v12 = vmul.f32 %v4634_v11, %v4985_v3  ;;  %v1739_v7 = vmul.f32 %v1731_v31, %v4846_v10  ;;  %v1100_v13 = vsub.f32 1.0, %v1092_v32 }
 0x248   : > { %v1545_v54 = vmul.f32 %v3777_v4, %v1544_v25  ;;  %v1405_v39 = vmul.f32 %v4622_v41, %v4987_v58  ;;  %v887_v31 = vadd.f32 %v3775_v61, %v886_v63  ;;  %v5015_v25 = vmul.f32 0.70710677, %v4992_v60 }
 0x249   : > { %v1437_v10 = vadd.f32 %v1429_v22, %v1412_v36  ;;  %v1388_v9 = vadd.f32 %v1380_v12, %v1363_v18  ;;  %v1747_v5 = vadd.f32 1.0, %v1739_v7  ;;  %v1069_v32 = vmul.f32 %v1061_v33, %v4910_v24 }
 0x24a   : > { %v1546_v6 = vadd.f32 %v3777_v4, %v1545_v54  ;;  %v891_v48 = vsel %vm5000_vm12, %v3775_v61, %v887_v31  ;;  %v846_v42 = vand.u32 2147483647, %v5015_v25  ;;  %v1430_v28 = vmul.f32 %v4631_v21, %v5006_v46 }
 0x24b   : > { %v1453_v26 = vmul.f32 0.70710677, %v1437_v10  ;;  %v5025_v22 = vmul.f32 %v1747_v5, %v4841_v52  ;;  %v5031_v23 = vsel %vm4976_vm9, %v895_v38, %v891_v48  ;;  %v1413_v24 = vadd.f32 %v1405_v39, %v1388_v9  ;;  %v799_v5 = vpop.f32.mrf.mxu0 }
 0x24c   : > { %v1550_v18 = vsel %vm5010_vm13, %v3777_v4, %v1546_v6  ;;  %v1108_v33 = vmul.f32 %v1100_v13, %v4951_v37  ;;  %v989_v63 = vmul.f32 1.0614054, %v5031_v23  ;;  %v5044_v52 = vsel %vm1460_vm7, 1.0, %v6337_v47 }
 0x24d   : > { %6356 = vst [vmem:[#allocation33_spill] sm:$0xff] %v5025_v22  ;;  %v5036_v61 = vsel %vm4970_vm6, %v1554_v27, %v1550_v18  ;;  %v1477_v21 = vand.u32 2147483647, %v1453_v26  ;;  %3778 = vpow2.f32 %v1711_v56  ;;  %v854_v16 = vmul.f32 0.3275911, %v846_v42 }
 0x24e   : > { %2152 = vst.msk [vmem:[#allocation2 + $0x31] sm:$0xff] %vm1213_vm2, %v5025_v22  ;;  %v1620_v4 = vmul.f32 1.0614054, %v5036_v61  ;;  %v997_v37 = vadd.f32 -1.4531521, %v989_v63  ;;  %v5047_v27 = vadd.f32 %v1430_v28, %v1413_v24  ;;  %v5052_v12 = vsel %vm829_vm14, 1.0, %v6337_v47 }
 0x24f   : > { %v1485_v38 = vmul.f32 0.3275911, %v1477_v21  ;;  %v1693_v55 = vsub.f32 0.0, %v1477_v21  ;;  %v1078_v7 = vmul.f32 1.442695, %v1069_v32  ;;  %v862_v13 = vadd.f32 1.0, %v854_v16 }
 0x250   : > { %v1628_v36 = vadd.f32 -1.4531521, %v1620_v4  ;;  %v1116_v53 = vadd.f32 1.0, %v1108_v33  ;;  %v1005_v54 = vmul.f32 %v997_v37, %v5031_v23  ;;  %v1062_v39 = vsub.f32 0.0, %v846_v42  ;;  %v3812_v16 = vld [vmem:[%s6258_s4] ss:$0 sm:$0xff] }
 0x251   : > { %v1493_v2 = vadd.f32 1.0, %v1485_v38  ;;  %v5057_v51 = vmul.f32 0.5, %v4893_v50  ;;  %vm1461_vm15 = vcmp.ge.f32.partialorder %v1453_v26, 0.0  ;;  %3780 = vrcp.f32 %v862_v13 }
 0x252   : > { %v1636_v56 = vmul.f32 %v1628_v36, %v5036_v61  ;;  %v1013_v31 = vadd.f32 1.4214138, %v1005_v54  ;;  %v1701_v9 = vmul.f32 %v1693_v55, %v1477_v21  ;;  %v5060_v17 = vmul.f32 0.70710677, %v5047_v27 }
 0x253   : > { %3782 = vrcp.f32 %v1493_v2  ;;  %v3779_v6 = vpop.eup %3778  ;;  %v1566_v48 = vand.u32 2147483647, %v1493_v2  ;;  %v907_v28 = vand.u32 2147483647, %v862_v13  ;;  %v5063_v18 = vmul.f32 %v1116_v53, %v4940_v30 }
 0x254   : > { %v1644_v32 = vadd.f32 1.4214138, %v1636_v56  ;;  %3784 = vpow2.f32 %v1078_v7  ;;  %v1021_v50 = vmul.f32 %v1013_v31, %v5031_v23  ;;  %v5066_v24 = vmul.f32 0.5, %v1437_v10 }
 0x255   : > { %v1070_v33 = vmul.f32 %v1062_v39, %v846_v42  ;;  %v5071_v21 = vsel %vm1461_vm15, 1.0, %v6337_v47  ;;  %v1568_v4 = vand.u32 2147483648, %v1493_v2  ;;  %v5076_v37 = vadd.f32 %v3812_v16, %v799_v5 }
 0x256   : > { %v1652_v63 = vmul.f32 %v1644_v32, %v5036_v61  ;;  %v1029_v30 = vadd.f32 -0.28449672, %v1021_v50  ;;  %vm1562_vm1 = vweird.f32 %v1493_v2  ;;  %v1713_v38 = vmul.f32 1.442695, %v1701_v9 }
 0x257   : > { %vm903_vm3 = vweird.f32 %v862_v13  ;;  %v3781_v10 = vpop.eup %3780  ;;  %vm5078_vm4 = vcmp.eq.f32.partialorder %v1566_v48, 8.507059e+37  ;;  %vm5082_vm5 = vcmp.eq.f32.partialorder %v907_v28, 8.507059e+37  ;;  %v1478_v36 = vand.u32 2147483647, %v5060_v17 }
 0x258   : > { %v1660_v55 = vadd.f32 -0.28449672, %v1652_v63  ;;  %v1037_v53 = vmul.f32 %v1029_v30, %v5031_v23  ;;  %v899_v54 = vmul.f32 %v3781_v10, %v862_v13  ;;  %v909_v39 = vand.u32 2147483648, %v862_v13 }
 0x259   : > { %v3783_v7 = vpop.eup %3782  ;;  %v1080_v56 = vmul.f32 1.442695, %v1070_v33  ;;  %v1569_v32 = vor.u32 1.1754944e-38, %v1568_v4  ;;  %vm830_vm6 = vcmp.ge.f32.partialorder %v5015_v25, 0.0  ;;  %vm904_vm7 = vweird.f32 %v3781_v10 }
 0x25a   : > { %v3785_v31 = vpop.eup %3784  ;;  %v1668_v9 = vmul.f32 %v1660_v55, %v5036_v61  ;;  %v1558_v5 = vmul.f32 %v3783_v7, %v1493_v2  ;;  %v1045_v48 = vadd.f32 0.2548296, %v1037_v53  ;;  %v900_v28 = vsub.f32 1.0, %v899_v54  ;;  %vm5096_vm10 = vmor %vm903_vm3, %vm904_vm7 }
 0x25b   : > { %v1486_v50 = vmul.f32 0.3275911, %v1478_v36  ;;  %vm1563_vm9 = vweird.f32 %v3783_v7  ;;  %v5091_v22 = vmul.f32 0.70710677, %v5076_v37  ;;  %3786 = vpow2.f32 %v1713_v38 }
 0x25c   : > { %v1676_v63 = vadd.f32 0.2548296, %v1668_v9  ;;  %v1559_v16 = vsub.f32 1.0, %v1558_v5  ;;  %v1053_v30 = vmul.f32 %v1045_v48, %v5031_v23  ;;  %v901_v33 = vmul.f32 %v3781_v10, %v900_v28  ;;  %vm5101_vm11 = vmor %vm1562_vm1, %vm1563_vm9 }
 0x25d   : > { %v1494_v8 = vadd.f32 1.0, %v1486_v50  ;;  %v910_v54 = vor.u32 1.1754944e-38, %v909_v39  ;;  %3788 = vpow2.f32 %v1080_v56  ;;  %v5108_v23 = vsel %vm830_vm6, 1.0, %v6337_v47 }
 0x25e   : > { %v1684_v55 = vmul.f32 %v1676_v63, %v5036_v61  ;;  %v1560_v4 = vmul.f32 %v3783_v7, %v1559_v16  ;;  %v1093_v9 = vmul.f32 %v3785_v31, %v1053_v30  ;;  %v902_v61 = vadd.f32 %v3781_v10, %v901_v33 }
 0x25f   : > { %3790 = vrcp.f32 %v1494_v8  ;;  %v1694_v48 = vsub.f32 0.0, %v1478_v36  ;;  %v5111_v28 = vand.u32 2147483647, %v5091_v22  ;;  %v1239_v56 = vmul.f32 %v4556_v40, %v4915_v34 }
 0x260   : > { %v1724_v13 = vmul.f32 %v3779_v6, %v1684_v55  ;;  %v1561_v38 = vadd.f32 %v3783_v7, %v1560_v4  ;;  %v1101_v39 = vsub.f32 1.0, %v1093_v9  ;;  %v906_v2 = vsel %vm5096_vm10, %v3781_v10, %v902_v61 }
 0x261   : > { %v1240_v25 = vmul.f32 %v4985_v3, %v4556_v40  ;;  %v5122_v6 = vmul.f32 0.5, %v4992_v60  ;;  %v5126_v63 = vsel %vm5082_vm5, %v910_v54, %v906_v2  ;;  %v5128_v16 = vpop.eup %3786  ;;  %v1702_v33 = vmul.f32 %v1694_v48, %v1478_v36 }
 0x262   : > { %v1732_v31 = vsub.f32 1.0, %v1724_v13  ;;  %v1565_v50 = vsel %vm5101_vm11, %v3783_v7, %v1561_v38  ;;  %v1109_v10 = vmul.f32 %v1101_v39, %v5052_v12  ;;  %v990_v40 = vmul.f32 1.0614054, %v5126_v63 }
 0x263   : > { %v5133_v34 = vsel %vm5078_vm4, %v1569_v32, %v1565_v50  ;;  %v1256_v7 = vmul.f32 %v4559_v44, %v4927_v45  ;;  %v5138_v30 = vpop.eup %3788  ;;  %v855_v55 = vmul.f32 0.3275911, %v5111_v28  ;;  %vm1462_vm12 = vcmp.ge.f32.partialorder %v5060_v17, 0.0 }
 0x264   : > { %v1740_v60 = vmul.f32 %v1732_v31, %v5044_v52  ;;  %v1621_v26 = vmul.f32 1.0614054, %v5133_v34  ;;  %v998_v12 = vadd.f32 -1.4531521, %v990_v40  ;;  %vm1577_vm13 = vweird.f32 %v1494_v8 }
 0x265   : > { %v3791_v4 = vpop.eup %3790  ;;  %v1257_v42 = vmul.f32 %v4987_v58, %v4559_v44  ;;  %v1581_v54 = vand.u32 2147483647, %v1494_v8  ;;  %v1117_v9 = vadd.f32 1.0, %v1109_v10  ;;  %v1583_v5 = vand.u32 2147483648, %v1494_v8 }
 0x266   : > { %v1748_v32 = vadd.f32 1.0, %v1740_v60  ;;  %v1629_v53 = vadd.f32 -1.4531521, %v1621_v26  ;;  %v1573_v45 = vmul.f32 %v3791_v4, %v1494_v8  ;;  %v1006_v52 = vmul.f32 %v998_v12, %v5126_v63 }
 0x267   : > { %vm1578_vm14 = vweird.f32 %v3791_v4  ;;  %v5151_v38 = vadd.f32 1.0, %v855_v55  ;;  %v5154_v44 = vmul.f32 0.5, %v5047_v27  ;;  %v5159_v39 = vsel %vm1462_vm12, 1.0, %v6337_v47  ;;  %v5218_v27 = vld [vmem:[#allocation2 + $0x80] sm:$0xff] }
 0x268   : > { %v5148_v36 = vmul.f32 %v1748_v32, %v4953_v14  ;;  %v1637_v61 = vmul.f32 %v1629_v53, %v5133_v34  ;;  %v1574_v13 = vsub.f32 1.0, %v1573_v45  ;;  %v1014_v48 = vadd.f32 1.4214138, %v1006_v52  ;;  %vm5167_vm15 = vmor %vm1577_vm13, %vm1578_vm14 }
 0x269   : > { %v1715_v2 = vmul.f32 1.442695, %v1702_v33  ;;  %3792 = vrcp.f32 %v5151_v38  ;;  %v1264_v50 = vadd.f32 %v1256_v7, %v1239_v56  ;;  %vm5171_vm1 = vcmp.eq.f32.partialorder %v1581_v54, 8.507059e+37 }
 0x26a   : > { %6365 = vst [vmem:[#allocation34_spill] sm:$0xff] %v5148_v36  ;;  %v1645_v14 = vadd.f32 1.4214138, %v1637_v61  ;;  %v1575_v31 = vmul.f32 %v3791_v4, %v1574_v13  ;;  %v1022_v10 = vmul.f32 %v1014_v48, %v5126_v63  ;;  %v1584_v40 = vor.u32 1.1754944e-38, %v1583_v5 }
 0x26b   : > { %2153 = vst.msk [vmem:[#allocation2 + $0x41] sm:$0xff] %vm1213_vm2, %v5148_v36  ;;  %v5176_v60 = vmul.f32 0.5, %v5076_v37  ;;  %v5179_v26 = vmul.f32 %v1117_v9, %v5057_v51  ;;  %v1281_v8 = vmul.f32 %v4565_v49, %v4961_v1  ;;  %3794 = vpow2.f32 %v1715_v2  ;;  %v5202_v9 = vld [vmem:[#allocation2 + $0x12] sm:$0xff] }
 0x26c   : > { %v1653_v56 = vmul.f32 %v1645_v14, %v5133_v34  ;;  %v1576_v7 = vadd.f32 %v3791_v4, %v1575_v31  ;;  %v1030_v33 = vadd.f32 -0.28449672, %v1022_v10  ;;  %v1063_v55 = vsub.f32 0.0, %v5111_v28 }
 0x26d   : > { %v5185_v12 = vadd.f32 %v1257_v42, %v1240_v25  ;;  %vm918_vm3 = vweird.f32 %v5151_v38  ;;  %v1289_v51 = vadd.f32 %v1281_v8, %v1264_v50  ;;  %v922_v1 = vand.u32 2147483647, %v5151_v38  ;;  %v5198_v25 = vld [vmem:[#allocation2 + $0x10] sm:$0xff]  ;;  %v5227_v8 = vld [vmem:[#allocation2 + $0x20] sm:$0xff] }
 0x26e   : > { %v1661_v32 = vadd.f32 -0.28449672, %v1653_v56  ;;  %v1580_v37 = vsel %vm5167_vm15, %v3791_v4, %v1576_v7  ;;  %v1038_v53 = vmul.f32 %v1030_v33, %v5126_v63  ;;  %v1306_v54 = vmul.f32 %v4985_v3, %v4576_v0  ;;  %v5200_v42 = vld [vmem:[#allocation2 + $0x11] sm:$0xff]  ;;  %v5229_v33 = vld [vmem:[#allocation2 + $0x21] sm:$0xff] }
 0x26f   : > { %v5193_v45 = vsel %vm5171_vm1, %v1584_v40, %v1580_v37  ;;  %v3793_v4 = vpop.eup %3792  ;;  %v924_v61 = vand.u32 2147483648, %v5151_v38  ;;  %v1331_v13 = vmul.f32 %v4987_v58, %v4594_v19  ;;  %2385 = vst.msk [vmem:[#allocation2 + $0x11] sm:$0xff] %vm1213_vm2, %v5063_v18  ;;  %v1071_v2 = vmul.f32 %v1063_v55, %v5111_v28  ;;  %v5220_v58 = vld [vmem:[#allocation2 + $0x81] sm:$0xff] }
 0x270   : > { %v1669_v52 = vmul.f32 %v1661_v32, %v5133_v34  ;;  %v1622_v5 = vmul.f32 1.0614054, %v5193_v45  ;;  %v1046_v3 = vadd.f32 0.2548296, %v1038_v53  ;;  %v914_v48 = vmul.f32 %v3793_v4, %v5151_v38  ;;  %6370 = vst [vmem:[#allocation35_spill] sm:$0xff] %v5220_v58  ;;  %v5231_v55 = vld [vmem:[#allocation2 + $0x22] sm:$0xff] }
 0x271   : > { %v1314_v14 = vadd.f32 %v1306_v54, %v1289_v51  ;;  %vm831_vm4 = vcmp.ge.f32.partialorder %v5091_v22, 0.0  ;;  %vm919_vm5 = vweird.f32 %v3793_v4  ;;  %v5216_v10 = vmul.f32 %v5006_v46, %v4565_v49  ;;  %v5222_v17 = vpop.eup %3794  ;;  %v5239_v51 = vld [vmem:[#allocation2 + $0x82] sm:$0xff]  ;;  %2386 = vst.msk [vmem:[#allocation2 + $0x21] sm:$0xff] %vm1213_vm2, %v5179_v26 }
 0x272   : > { %v1677_v31 = vadd.f32 0.2548296, %v1669_v52  ;;  %v1630_v50 = vadd.f32 -1.4531521, %v1622_v5  ;;  %v1054_v40 = vmul.f32 %v1046_v3, %v5126_v63  ;;  %v915_v56 = vsub.f32 1.0, %v914_v48  ;;  %6373 = vst [vmem:[#allocation36_spill] sm:$0xff] %v5239_v51  ;;  %vm5252_vm7 = vmor %vm918_vm3, %vm919_vm5 }
 0x273   : > { %v1339_v28 = vadd.f32 %v1331_v13, %v1314_v14  ;;  %v1356_v7 = vmul.f32 %v5006_v46, %v4604_v43  ;;  %vm5235_vm6 = vcmp.eq.f32.partialorder %v922_v1, 8.507059e+37  ;;  %v925_v63 = vor.u32 1.1754944e-38, %v924_v61  ;;  %v5265_v38 = vld [vmem:[#allocation2] sm:$0xff] }
 0x274   : > { %v1685_v49 = vmul.f32 %v1677_v31, %v5133_v34  ;;  %v1638_v32 = vmul.f32 %v1630_v50, %v5193_v45  ;;  %v1094_v46 = vmul.f32 %v5138_v30, %v1054_v40  ;;  %v916_v53 = vmul.f32 %v3793_v4, %v915_v56  ;;  %v5246_v34 = vld [vmem:[#allocation8] sm:$0xff] }
 0x275   : > { %v1364_v54 = vadd.f32 %v1356_v7, %v1339_v28  ;;  %v1381_v52 = vmul.f32 %v4634_v11, %v5218_v27  ;;  %v1082_v13 = vmul.f32 1.442695, %v1071_v2  ;;  %v1406_v30 = vmul.f32 %v4622_v41, %v5220_v58  ;;  %v5261_v31 = vld [vmem:[%s6256_s2 + $0x8] ss:$0 sm:$0xff] }
 0x276   : > { %v1725_v1 = vmul.f32 %v5128_v16, %v1685_v49  ;;  %v1646_v5 = vadd.f32 1.4214138, %v1638_v32  ;;  %v1102_v3 = vsub.f32 1.0, %v1094_v46  ;;  %v917_v48 = vadd.f32 %v3793_v4, %v916_v53  ;;  %6376 = vst [vmem:[#allocation37_spill] sm:$0xff] %v5261_v31  ;;  %v2396_v2 = vld [vmem:[#allocation2 + $0x10] sm:$0xff]  ;;  %v5277_v32 = vld [vmem:[#allocation2 + $0x1] sm:$0xff] }
 0x277   : > { %v1389_v14 = vadd.f32 %v1381_v52, %v1364_v54  ;;  %v1431_v16 = vmul.f32 %v5261_v31, %v5239_v51  ;;  %v5269_v56 = vperm.slane %v5246_v34, 0  ;;  %v5272_v41 = vperm.slane %v5246_v34, 1  ;;  %v5279_v46 = vld [vmem:[#allocation2 + $0x11] sm:$0xff]  ;;  %v3616_v51 = vld [vmem:[#allocation13 + $0x8] sm:$0x30] }
 0x278   : > { %v1733_v50 = vsub.f32 1.0, %v1725_v1  ;;  %v1654_v40 = vmul.f32 %v1646_v5, %v5193_v45  ;;  %v1110_v28 = vmul.f32 %v1102_v3, %v5108_v23  ;;  %v921_v7 = vsel %vm5252_vm7, %v3793_v4, %v917_v48  ;;  %v2488_v19 = vld [vmem:[#allocation2 + $0x21] sm:$0xff] }
 0x279   : > { %6377 = vst [vmem:[#allocation38_spill] sm:$0xff] %v5272_v41  ;;  %v1414_v49 = vadd.f32 %v1406_v30, %v1389_v14  ;;  %v5282_v53 = vperm.slane %v5246_v34, 2  ;;  %v5287_v1 = vsel %vm5235_vm6, %v925_v63, %v921_v7  ;;  %v2404_v23 = vmul.f32 %v5269_v56, %v5265_v38  ;;  %v5292_v30 = vld [vmem:[#allocation2 + $0x30] sm:$0xff] }
 0x27a   : > { %v1741_v54 = vmul.f32 %v1733_v50, %v5071_v21  ;;  %v1662_v52 = vadd.f32 -0.28449672, %v1654_v40  ;;  %v1118_v5 = vadd.f32 1.0, %v1110_v28  ;;  %v991_v4 = vmul.f32 1.0614054, %v5287_v1  ;;  %v5296_v21 = vld [vmem:[#allocation2 + $0x31] sm:$0xff] }
 0x27b   : > { %v1439_v61 = vadd.f32 %v1431_v16, %v1414_v49  ;;  %v2405_v3 = vmul.f32 %v5269_v56, %v2396_v2  ;;  %v5298_v50 = vld [vmem:[#allocation2 + $0x32] sm:$0xff]  ;;  %v2421_v37 = vmul.f32 %v5272_v41, %v5277_v32  ;;  %v2422_v63 = vmul.f32 %v5272_v41, %v5279_v46  ;;  %v5304_v40 = vld [vmem:[#allocation2 + $0x2] sm:$0xff] }
 0x27c   : > { %v1749_v48 = vadd.f32 1.0, %v1741_v54  ;;  %v1670_v14 = vmul.f32 %v1662_v52, %v5193_v45  ;;  %6378 = vst [vmem:[#allocation39_spill] sm:$0xff] %v5298_v50  ;;  %v5307_v16 = vmul.f32 %v1118_v5, %v5122_v6  ;;  %v5312_v28 = vsel %vm831_vm4, 1.0, %v6337_v47  ;;  %v5316_v54 = vld [vmem:[#allocation2 + $0x12] sm:$0xff]  ;;  %v5442_v50 = vld [vmem:[#allocation2 + $0x41] sm:$0xff] }
 0x27d   : > { %v999_v7 = vadd.f32 -1.4531521, %v991_v4  ;;  %v5314_v49 = vmul.f32 0.70710677, %v1439_v61  ;;  %v2429_v31 = vadd.f32 %v2421_v37, %v2404_v23  ;;  %v2430_v11 = vadd.f32 %v2422_v63, %v2405_v3  ;;  %v5331_v4 = vld [vmem:[#allocation2 + $0x20] sm:$0xff] }
 0x27e   : > { %6379 = vst [vmem:[#allocation40_spill] sm:$0xff] %v5307_v16  ;;  %v5319_v52 = vmul.f32 %v1749_v48, %v5066_v24  ;;  %v1678_v36 = vadd.f32 0.2548296, %v1670_v14  ;;  %v5324_v6 = vadd.f32 %v5216_v10, %v5185_v12  ;;  %v2446_v5 = vmul.f32 %v5282_v53, %v5304_v40 }
 0x27f   : > { %v1007_v43 = vmul.f32 %v999_v7, %v5287_v1  ;;  %v1479_v22 = vand.u32 2147483647, %v5314_v49  ;;  %2387 = vst.msk [vmem:[#allocation2 + $0x31] sm:$0xff] %vm1213_vm2, %v5307_v16  ;;  %3796 = vpow2.f32 %v1082_v13  ;;  %v2447_v12 = vmul.f32 %v5282_v53, %v5316_v54 }
 0x280   : > { %6380 = vst [vmem:[#allocation41_spill] sm:$0xff] %v5319_v52  ;;  %v1686_v24 = vmul.f32 %v1678_v36, %v5193_v45  ;;  %v5339_v10 = vperm.slane %v5246_v34, 3  ;;  %v2454_v14 = vadd.f32 %v2446_v5, %v2429_v31  ;;  %v5348_v45 = vmul.f32 %v4576_v0, %v5218_v27 }
 0x281   : > { %6381 = vst [vmem:[#allocation42_spill] sm:$0xff] %v5324_v6  ;;  %v1015_v23 = vadd.f32 1.4214138, %v1007_v43  ;;  %v1487_v3 = vmul.f32 0.3275911, %v1479_v22  ;;  %v1695_v48 = vsub.f32 0.0, %v1479_v22  ;;  %v2455_v63 = vadd.f32 %v2447_v12, %v2430_v11  ;;  %v2075_v6 = vpop.xlane.xlu1 %2074 }
 0x282   : > { %2154 = vst.msk [vmem:[#allocation2 + $0x51] sm:$0xff] %vm1213_vm2, %v5319_v52  ;;  %v1726_v37 = vmul.f32 %v5222_v17, %v1686_v24  ;;  %v2471_v7 = vmul.f32 %v5339_v10, %v2396_v2  ;;  %v2472_v52 = vmul.f32 %v5339_v10, %v5331_v4  ;;  %v3549_v43 = vld [vmem:[#allocation13 + $0x8] sm:$0xf]  ;;  %v5353_v31 = vperm.slane %v5246_v34, 4 }
 0x283   : > { %v1023_v36 = vmul.f32 %v1015_v23, %v5287_v1  ;;  %6382 = vst [vmem:[#allocation43_spill] sm:$0xff] %v5348_v45  ;;  %v5350_v13 = vadd.f32 1.0, %v1487_v3  ;;  %v5355_v11 = vmul.f32 0.5, %v1439_v61  ;;  %v1703_v2 = vmul.f32 %v1695_v48, %v1479_v22  ;;  %v5361_v45 = vld [vmem:[#allocation8 + $0x8] ss:$0 sm:$0xff] }
 0x284   : > { %v1734_v17 = vsub.f32 1.0, %v1726_v37  ;;  %v3550_v5 = vor.u32 %v3616_v51, %v3549_v43  ;;  %v2479_v12 = vadd.f32 %v2471_v7, %v2454_v14  ;;  %v2480_v23 = vadd.f32 %v2472_v52, %v2455_v63  ;;  %v2513_v37 = vld [vmem:[#allocation2 + $0x22] sm:$0xff]  ;;  %v3615_v43 = vld [vmem:[#allocation13] sm:$0xff] }
 0x285   : > { %6383 = vst [vmem:[#allocation44_spill] sm:$0xff] %v5355_v11  ;;  %v1031_v24 = vadd.f32 -0.28449672, %v1023_v36  ;;  %3798 = vrcp.f32 %v5350_v13  ;;  %v3797_v0 = vpop.eup %3796  ;;  %v1596_v3 = vand.u32 2147483647, %v5350_v13  ;;  %v1598_v58 = vand.u32 2147483648, %v5350_v13  ;;  %v5374_v36 = vpop.f32.mrf.mxu2 }
 0x286   : > { %v1742_v27 = vmul.f32 %v1734_v17, %v5159_v39  ;;  %vm3029_vm9 = vcmask 1045504   ;;  %vm1592_vm10 = vweird.f32 %v5350_v13  ;;  %v2496_v52 = vmul.f32 %v5353_v31, %v5279_v46  ;;  %v5371_v63 = vld [vmem:[#allocation2 + $0x30] sm:$0xff] }
 0x287   : > { %v1039_v61 = vmul.f32 %v1031_v24, %v5287_v1  ;;  %v3031_v51 = vsel %vm3029_vm9, %v3550_v5, 0  ;;  %v5368_v48 = vor.u32 1.1754944e-38, %v1598_v58  ;;  %v1717_v39 = vmul.f32 1.442695, %v1703_v2 }
 0x288   : > { %v1750_v22 = vadd.f32 1.0, %v1742_v27  ;;  %3039 = vmatpush.bf16.msra.mxu3 %v3031_v51  ;;  %v2497_v14 = vmul.f32 %v5353_v31, %v2488_v19  ;;  %vm1463_vm11 = vcmp.ge.f32.partialorder %v5314_v49, 0.0  ;;  %v2504_v17 = vadd.f32 %v2496_v52, %v2479_v12 }
 0x289   : > { %v1047_v7 = vadd.f32 0.2548296, %v1039_v61  ;;  %v5377_v5 = vperm.slane %v5246_v34, 5  ;;  %v5380_v58 = vperm.slane %v5246_v34, 6  ;;  %v5382_v46 = vld [vmem:[#allocation2 + $0x50] sm:$0xff]  ;;  %vm5387_vm12 = vcmp.eq.f32.partialorder %v1596_v3, 8.507059e+37 }
 0x28a   : > { %6385 = vst [vmem:[#allocation46_spill] sm:$0xff] %v5382_v46  ;;  %v5385_v2 = vmul.f32 %v1750_v22, %v5154_v44  ;;  %v2505_v27 = vadd.f32 %v2497_v14, %v2480_v23  ;;  %v5392_v61 = vperm.slane %v5246_v34, 7  ;;  %v2596_v12 = vmul.f32 %v5361_v45, %v2513_v37  ;;  %v5395_v51 = vld [vmem:[#allocation2 + $0x51] sm:$0xff] }
 0x28b   : > { %6384 = vst [vmem:[#allocation45_spill] sm:$0xff] %v5380_v58  ;;  %v5397_v52 = vld [vmem:[#allocation2 + $0x52] sm:$0xff]  ;;  %v3799_v11 = vpop.eup %3798  ;;  %v1055_v46 = vmul.f32 %v1047_v7, %v5287_v1  ;;  %v2521_v44 = vmul.f32 %v5377_v5, %v5316_v54  ;;  %v2522_v3 = vmul.f32 %v5377_v5, %v2513_v37  ;;  %v2546_v23 = vmul.f32 %v5380_v58, %v5331_v4 }
 0x28c   : > { %6386 = vst [vmem:[#allocation47_spill] sm:$0xff] %v5385_v2  ;;  %v5405_v34 = vld [vmem:[#allocation2 + $0x31] sm:$0xff]  ;;  %v1588_v1 = vmul.f32 %v3799_v11, %v5350_v13  ;;  %vm1593_vm13 = vweird.f32 %v3799_v11  ;;  %3800 = vrcp.f32 %v2075_v6  ;;  %3040 = vmatpush.bf16.msra.mxu3 %v3615_v43  ;;  %v2547_v54 = vmul.f32 %v5380_v58, %v5371_v63  ;;  %v2078_v13 = vpop.xlane.xlu1 %2077 }
 0x28d   : > { %6389 = vst [vmem:[#allocation48_spill] sm:$0xff] %v5392_v61  ;;  %v5407_v22 = vld [vmem:[#allocation2 + $0x32] sm:$0xff]  ;;  %v1095_v14 = vmul.f32 %v3797_v0, %v1055_v46  ;;  %v2529_v7 = vadd.f32 %v2521_v44, %v2504_v17  ;;  %v2406_v62 = vmul.f32 %v5331_v4, %v5269_v56  ;;  %v2407_v0 = vmul.f32 %v5371_v63, %v5269_v56  ;;  %vm5433_vm14 = vmor %vm1592_vm10, %vm1593_vm13 }
 0x28e   : > { %6390 = vst [vmem:[#allocation49_spill] sm:$0xff] %v5395_v51  ;;  %v2571_v51 = vmul.f32 %v5392_v61, %v2488_v19  ;;  %v1589_v15 = vsub.f32 1.0, %v1588_v1  ;;  %v2423_v46 = vmul.f32 %v2488_v19, %v5272_v41  ;;  %v2448_v44 = vmul.f32 %v2513_v37, %v5282_v53 }
 0x28f   : > { %6391 = vst [vmem:[#allocation50_spill] sm:$0xff] %v5397_v52  ;;  %v2530_v52 = vadd.f32 %v2522_v3, %v2505_v27  ;;  %v1103_v6 = vsub.f32 1.0, %v1095_v14  ;;  %v2554_v43 = vadd.f32 %v2546_v23, %v2529_v7  ;;  %v2424_v27 = vmul.f32 %v5405_v34, %v5272_v41  ;;  %v5438_v14 = vld [vmem:[#allocation2 + $0x40] sm:$0xff] }
 0x290   : > { %2389 = vst.msk [vmem:[#allocation2 + $0x51] sm:$0xff] %vm1213_vm2, %v4703_v57  ;;  %v2572_v57 = vmul.f32 %v5392_v61, %v5405_v34  ;;  %v1590_v17 = vmul.f32 %v3799_v11, %v1589_v15  ;;  %3802 = vpow2.f32 %v1717_v39  ;;  %v2431_v37 = vadd.f32 %v2423_v46, %v2406_v62  ;;  %v5444_v39 = vld [vmem:[#allocation2 + $0x42] sm:$0xff] }
 0x291   : > { %2155 = vst.msk [vmem:[#allocation2 + $0x61] sm:$0xff] %vm1213_vm2, %v5385_v2  ;;  %v2597_v2 = vmul.f32 %v5361_v45, %v5407_v22  ;;  %v2555_v16 = vadd.f32 %v2547_v54, %v2530_v52  ;;  %v1111_v3 = vmul.f32 %v1103_v6, %v5312_v28  ;;  %v2039_v52 = vpop.f32.mrf.mxu2  ;;  %v2579_v23 = vadd.f32 %v2571_v51, %v2554_v43 }
 0x292   : > { %v3801_v1 = vpop.eup %3800  ;;  %v1591_v19 = vadd.f32 %v3799_v11, %v1590_v17  ;;  %v2084_v54 = vpack.c.bf16 %v2039_v52, %v5374_v36  ;;  %v2449_v28 = vmul.f32 %v5407_v22, %v5282_v53  ;;  %v2432_v51 = vadd.f32 %v2424_v27, %v2407_v0 }
 0x293   : > { %v2580_v15 = vadd.f32 %v2572_v57, %v2555_v16  ;;  %v1119_v7 = vadd.f32 1.0, %v1111_v3  ;;  %v2604_v6 = vadd.f32 %v2596_v12, %v2579_v23  ;;  %v5451_v16 = vsel %vm1463_vm11, 1.0, %v6337_v47  ;;  %v3561_v12 = vld [vmem:[#allocation11 + $0x8] sm:$0xf] }
 0x294   : > { %v1595_v62 = vsel %vm5433_vm14, %v3799_v11, %v1591_v19  ;;  %2095 = vmatpush.bf16.msra.mxu2 %v2084_v54  ;;  %3804 = vrcp.f32 %v2078_v13  ;;  %v2456_v36 = vadd.f32 %v2448_v44, %v2431_v37  ;;  %v5467_v11 = vld [vmem:[#allocation7] sm:$0xff]  ;;  %v2473_v4 = vmul.f32 %v5371_v63, %v5339_v10 }
 0x295   : > { %v2605_v41 = vadd.f32 %v2597_v2, %v2580_v15  ;;  %v3614_v2 = vld [vmem:[#allocation11 + $0x8] sm:$0x30]  ;;  %v5458_v17 = vmul.f32 %v1119_v7, %v5176_v60  ;;  %v5463_v0 = vsel %vm5387_vm12, %v5368_v48, %v1595_v62  ;;  %v2612_v49 = vadd.f32 %v2604_v6, %v5063_v18 }
 0x296   : > { %v1623_v3 = vmul.f32 1.0614054, %v5463_v0  ;;  %v2081_v60 = vmul.f32 %v3801_v1, %v4649_v35  ;;  %v2498_v48 = vmul.f32 %v5405_v34, %v5353_v31  ;;  %v5481_v18 = vpop.eup %3802  ;;  %v2523_v24 = vmul.f32 %v5407_v22, %v5377_v5 }
 0x297   : > { %v5446_v57 = vld [vmem:[#allocation2 + $0x50] sm:$0xff]  ;;  %v2613_v46 = vadd.f32 %v2605_v41, %v5179_v26  ;;  %2388 = vst.msk [vmem:[#allocation2 + $0x41] sm:$0xff] %vm1213_vm2, %v5458_v17  ;;  %v2457_v41 = vadd.f32 %v2449_v28, %v2432_v51  ;;  %v2481_v52 = vadd.f32 %v2473_v4, %v2456_v36  ;;  %v3562_v34 = vor.u32 %v3614_v2, %v3561_v12 }
 0x298   : > { %v5455_v43 = vld [vmem:[#allocation2 + $0x60] sm:$0xff]  ;;  %v5489_v35 = vmul.f32 %v5380_v58, %v5446_v57  ;;  %v1631_v63 = vadd.f32 -1.4531521, %v1623_v3  ;;  %v5492_v23 = vperm.slane %v5467_v11, 0  ;;  %v5496_v15 = vperm.slane %v5467_v11, 1 }
 0x299   : > { %6394 = vst [vmem:[#allocation51_spill] sm:$0xff] %v5455_v43  ;;  %v5469_v27 = vld [vmem:[#allocation2 + $0x61] sm:$0xff]  ;;  %v2998_v26 = vpack.c.bf16 %v2613_v46, %v2612_v49  ;;  %v5499_v1 = vperm.slane %v5467_v11, 2  ;;  %v5502_v22 = vperm.slane %v5467_v11, 3  ;;  %v5505_v19 = vperm.slane %v5467_v11, 4 }
 0x29a   : > { %6395 = vst [vmem:[#allocation52_spill] sm:$0xff] %v5469_v27  ;;  %v5471_v44 = vld [vmem:[#allocation2 + $0x62] sm:$0xff]  ;;  %v3805_v54 = vpop.eup %3804  ;;  %v1639_v37 = vmul.f32 %v1631_v63, %v5463_v0  ;;  %v2506_v28 = vadd.f32 %v2498_v48, %v2481_v52  ;;  %v3086_v7 = vsel %vm3029_vm9, %v3562_v34, 0  ;;  %v2169_v13 = vmul.f32 %v5265_v38, %v5492_v23 }
 0x29b   : > { %6396 = vst [vmem:[#allocation53_spill] sm:$0xff] %v5471_v44  ;;  %3551 = vmatmul.msk.bf16.vlgmr.msra.gmra.mxu3 %vm1213_vm2, %v2998_v26  ;;  %v2082_v6 = vmul.f32 %v3805_v54, %v4680_v20  ;;  %3094 = vmatpush.bf16.msrb.mxu2 %v3086_v7  ;;  %v2170_v51 = vmul.f32 %v5492_v23, %v5198_v25  ;;  %v3613_v49 = vld [vmem:[#allocation11] sm:$0xff]  ;;  %v5545_v27 = vperm.slane %v5467_v11, 6 }
 0x29c   : > { %2390 = vst.msk [vmem:[#allocation2 + $0x61] sm:$0xff] %vm1213_vm2, %v4705_v59  ;;  %v2186_v62 = vmul.f32 %v5277_v32, %v5496_v15  ;;  %v2187_v36 = vmul.f32 %v5496_v15, %v5200_v42  ;;  %v1647_v12 = vadd.f32 1.4214138, %v1639_v37  ;;  %v2531_v2 = vadd.f32 %v2523_v24, %v2506_v28 }
 0x29d   : > { %v2211_v46 = vmul.f32 %v5304_v40, %v5499_v1  ;;  %v2212_v38 = vmul.f32 %v5499_v1, %v5202_v9  ;;  %v2083_v20 = vpack.c.bf16 %v2082_v6, %v2081_v60  ;;  %v2236_v48 = vmul.f32 %v5502_v22, %v5198_v25 }
 0x29e   : > { %v2194_v3 = vadd.f32 %v2186_v62, %v2169_v13  ;;  %v2195_v4 = vadd.f32 %v2187_v36, %v2170_v51  ;;  %v1655_v32 = vmul.f32 %v1647_v12, %v5463_v0  ;;  %v2465_v26 = vld [vmem:[#allocation2 + $0x40] sm:$0xff]  ;;  %v2237_v24 = vmul.f32 %v5502_v22, %v5227_v8 }
 0x29f   : > { %v2490_v63 = vld [vmem:[#allocation2 + $0x41] sm:$0xff]  ;;  %v2261_v40 = vmul.f32 %v5505_v19, %v5200_v42  ;;  %v2262_v34 = vmul.f32 %v5505_v19, %v5229_v33  ;;  %3542 = vmatmul.msk.bf16.vlgmr.msra.gmra.mxu2 %vm2060_vm8, %v2083_v20  ;;  %v2474_v60 = vmul.f32 %v5339_v10, %v2465_v26  ;;  %v2548_v37 = vmul.f32 %v5380_v58, %v2465_v26  ;;  %v5542_v20 = vld [vmem:[#allocation2 + $0x51] sm:$0xff] }
 0x2a0   : > { %v2515_v52 = vld [vmem:[#allocation2 + $0x42] sm:$0xff]  ;;  %v2499_v25 = vmul.f32 %v5353_v31, %v2490_v63  ;;  %v1663_v28 = vadd.f32 -0.28449672, %v1655_v32  ;;  %v2573_v7 = vmul.f32 %v5392_v61, %v2490_v63  ;;  %3095 = vmatpush.bf16.msrb.mxu2 %v3613_v49  ;;  %v2219_v42 = vadd.f32 %v2211_v46, %v2194_v3 }
 0x2a1   : > { %v2524_v54 = vmul.f32 %v5377_v5, %v2515_v52  ;;  %v2598_v13 = vmul.f32 %v5361_v45, %v2515_v52  ;;  %v2482_v6 = vadd.f32 %v2474_v60, %v2457_v41  ;;  %v2556_v51 = vadd.f32 %v2548_v37, %v2531_v2  ;;  %v5558_v60 = vld [vmem:[#allocation7 + $0x8] ss:$0 sm:$0xff] }
 0x2a2   : > { %v2220_v62 = vadd.f32 %v2212_v38, %v2195_v4  ;;  %v5539_v36 = vperm.slane %v5467_v11, 5  ;;  %v1671_v12 = vmul.f32 %v1663_v28, %v5463_v0  ;;  %v2244_v44 = vadd.f32 %v2236_v48, %v2219_v42  ;;  %v5552_v38 = vld [vmem:[#allocation2 + $0x52] sm:$0xff] }
 0x2a3   : > { %v5548_v32 = vperm.slane %v5467_v11, 7  ;;  %v2507_v43 = vadd.f32 %v2499_v25, %v2482_v6  ;;  %v2581_v49 = vadd.f32 %v2573_v7, %v2556_v51  ;;  %v2311_v48 = vmul.f32 %v5545_v27, %v5227_v8 }
 0x2a4   : > { %v2245_v46 = vadd.f32 %v2237_v24, %v2220_v62  ;;  %v2286_v41 = vmul.f32 %v5539_v36, %v5202_v9  ;;  %v1679_v2 = vadd.f32 0.2548296, %v1671_v12  ;;  %v2269_v3 = vadd.f32 %v2261_v40, %v2244_v44 }
 0x2a5   : > { %v2287_v4 = vmul.f32 %v5539_v36, %v5231_v55  ;;  %v2532_v11 = vadd.f32 %v2524_v54, %v2507_v43  ;;  %v2574_v25 = vmul.f32 %v5392_v61, %v5542_v20  ;;  %v2312_v9 = vmul.f32 %v5545_v27, %v5292_v30 }
 0x2a6   : > { %v2270_v24 = vadd.f32 %v2262_v34, %v2245_v46  ;;  %v1687_v37 = vmul.f32 %v1679_v2, %v5463_v0  ;;  %v2606_v28 = vadd.f32 %v2598_v13, %v2581_v49  ;;  %v2294_v44 = vadd.f32 %v2286_v41, %v2269_v3  ;;  %v6398_v49 = vld [vmem:[#allocation38_spill] sm:$0xff]  ;;  %v6399_v2 = vld [vmem:[#allocation40_spill] sm:$0xff] }
 0x2a7   : > { %v2336_v40 = vmul.f32 %v5548_v32, %v5229_v33  ;;  %v2557_v7 = vadd.f32 %v5489_v35, %v2532_v11  ;;  %v2599_v42 = vmul.f32 %v5361_v45, %v5552_v38  ;;  %v2337_v54 = vmul.f32 %v5548_v32, %v5296_v21  ;;  %v6397_v35 = vld [vmem:[#allocation39_spill] sm:$0xff] }
 0x2a8   : > { %v2295_v43 = vadd.f32 %v2287_v4, %v2270_v24  ;;  %vm978_vm8 = vweird.f32 %v4639_v29  ;;  %v1727_v34 = vmul.f32 %v5481_v18, %v1687_v37  ;;  %v2319_v6 = vadd.f32 %v2311_v48, %v2294_v44  ;;  %v6400_v44 = vld [vmem:[#allocation28_spill] sm:$0xff] }
 0x2a9   : > { %v2361_v0 = vmul.f32 %v5558_v60, %v5231_v55  ;;  %v2408_v13 = vmul.f32 %v2465_v26, %v5269_v56  ;;  %v2582_v51 = vadd.f32 %v2574_v25, %v2557_v7  ;;  %v2362_v12 = vmul.f32 %v5558_v60, %v6397_v35 }
 0x2aa   : > { %v2320_v62 = vadd.f32 %v2312_v9, %v2295_v43  ;;  %v2425_v46 = vmul.f32 %v2490_v63, %v6398_v49  ;;  %v1735_v41 = vsub.f32 1.0, %v1727_v34  ;;  %v2614_v3 = vadd.f32 %v2606_v28, %v6399_v2  ;;  %v6401_v28 = vld [vmem:[#allocation29_spill] sm:$0xff]  ;;  %v6404_v34 = vld [vmem:[#allocation43_spill] sm:$0xff] }
 0x2ab   : > { %v2344_v4 = vadd.f32 %v2336_v40, %v2319_v6  ;;  %v2450_v11 = vmul.f32 %v2515_v52, %v5282_v53  ;;  %v2607_v18 = vadd.f32 %v2599_v42, %v2582_v51  ;;  %v2409_v24 = vmul.f32 %v5446_v57, %v5269_v56 }
 0x2ac   : > { %v2345_v48 = vadd.f32 %v2337_v54, %v2320_v62  ;;  %v2433_v37 = vadd.f32 %v2425_v46, %v2408_v13  ;;  %v1743_v26 = vmul.f32 %v1735_v41, %v5451_v16  ;;  %v2426_v9 = vmul.f32 %v5542_v20, %v6398_v49  ;;  %v6403_v54 = vld [vmem:[#allocation42_spill] sm:$0xff]  ;;  %v6405_v13 = vld [vmem:[#allocation35_spill] sm:$0xff]  ;;  %v6408_v41 = vld [vmem:[#allocation24_spill] sm:$0xff] }
 0x2ad   : > { %v2369_v25 = vadd.f32 %v2361_v0, %v2344_v4  ;;  %v2475_v63 = vmul.f32 %v5446_v57, %v5339_v10  ;;  %v6402_v40 = vsub.f32 1.0, %v6401_v28  ;;  %v2615_v52 = vadd.f32 %v2607_v18, %v5458_v17  ;;  %v6406_v16 = vld [vmem:[#allocation19_spill] sm:$0xff]  ;;  %v6413_v18 = vld [vmem:[#allocation44_spill] sm:$0xff] }
 0x2ae   : > { %v2370_v42 = vadd.f32 %v2362_v12, %v2345_v48  ;;  %v2458_v43 = vadd.f32 %v2450_v11, %v2433_v37  ;;  %v1315_v6 = vadd.f32 %v6404_v34, %v6403_v54  ;;  %v1332_v0 = vmul.f32 %v6406_v16, %v6405_v13  ;;  %v6407_v62 = vld [vmem:[#allocation31_spill] sm:$0xff]  ;;  %v6412_v12 = vld [vmem:[#allocation32_spill] sm:$0xff]  ;;  %v6418_v16 = vld [vmem:[#allocation21_spill] sm:$0xff] }
 0x2af   : > { %v1114_v7 = vmul.f32 %v6402_v40, %v6400_v44  ;;  %v1751_v51 = vadd.f32 1.0, %v1743_v26  ;;  %v2377_v46 = vadd.f32 %v2369_v25, %v6407_v62  ;;  %vm979_vm15 = vweird.f32 %v6408_v41  ;;  %v5611_v26 = vld [vmem:[#allocation2 + $0x60] sm:$0xff]  ;;  %v6417_v13 = vld [vmem:[#allocation36_spill] sm:$0xff] }
 0x2b0   : > { %v6409_v57 = vand.u32 2147483647, %v4639_v29  ;;  %v2999_v17 = vpack.c.bf16 %v2615_v52, %v2614_v3  ;;  %v2378_v4 = vadd.f32 %v2370_v42, %v6412_v12  ;;  %v2451_v11 = vmul.f32 %v5552_v38, %v5282_v53  ;;  %v6415_v40 = vld [vmem:[#allocation30_spill] sm:$0xff]  ;;  %vm5632_vm3 = vmor %vm978_vm8, %vm979_vm15 }
 0x2b1   : > { %v5609_v48 = vmul.f32 %v1751_v51, %v6413_v18  ;;  %v2434_v37 = vadd.f32 %v2426_v9, %v2409_v24  ;;  %v2483_v25 = vadd.f32 %v2475_v63, %v2458_v43  ;;  %v2500_v44 = vmul.f32 %v5542_v20, %v5353_v31  ;;  %v5639_v43 = vld [vmem:[#allocation2 + $0x61] sm:$0xff] }
 0x2b2   : > { %vm5601_vm1 = vcmp.eq.f32.partialorder %v6409_v57, 8.507059e+37  ;;  %v1122_v28 = vadd.f32 1.0, %v1114_v7  ;;  %v977_v54 = vadd.f32 %v6408_v41, %v6415_v40  ;;  %v6416_v3 = vand.u32 2147483648, %v4639_v29  ;;  %3552 = vmatmul.msk.bf16.gmra.mxu3 %vm1213_vm2, %v2999_v17  ;;  %v6423_v63 = vld [vmem:[#allocation23_spill] sm:$0xff] }
 0x2b3   : > { %6414 = vst [vmem:[#allocation39_spill] sm:$0xff] %v5609_v48  ;;  %v2990_v42 = vpack.c.bf16 %v2378_v4, %v2377_v46  ;;  %v1340_v34 = vadd.f32 %v1332_v0, %v1315_v6  ;;  %v1357_v24 = vmul.f32 %v6418_v16, %v6417_v13  ;;  %v2171_v20 = vmul.f32 %v5492_v23, %v5227_v8  ;;  %v6421_v4 = vld [vmem:[#allocation27_spill] sm:$0xff] }
 0x2b4   : > { %v985_v52 = vor.u32 1.1754944e-38, %v6416_v3  ;;  %2156 = vst.msk [vmem:[#allocation2 + $0x71] sm:$0xff] %vm1213_vm2, %v5609_v48  ;;  %v2172_v9 = vmul.f32 %v5492_v23, %v5292_v30  ;;  %v2476_v7 = vmul.f32 %v5339_v10, %v5611_v26  ;;  %v2188_v8 = vmul.f32 %v5496_v15, %v5229_v33 }
 0x2b5   : > { %3563 = vmatmul.msk.bf16.vlgmr.msrb.gmra.mxu2 %vm1213_vm2, %v2990_v42  ;;  %v2189_v6 = vmul.f32 %v5496_v15, %v5296_v21  ;;  %v2213_v29 = vmul.f32 %v5499_v1, %v5231_v55  ;;  %v2459_v0 = vadd.f32 %v2451_v11, %v2434_v37  ;;  %v2508_v51 = vadd.f32 %v2500_v44, %v2483_v25  ;;  %v5663_v37 = vld [vmem:[#allocation2 + $0x90] sm:$0xff]  ;;  %v5665_v44 = vld [vmem:[#allocation2 + $0x62] sm:$0xff] }
 0x2b6   : > { %v2525_v62 = vmul.f32 %v5552_v38, %v5377_v5  ;;  %v2214_v46 = vmul.f32 %v5499_v1, %v6397_v35  ;;  %v2196_v57 = vadd.f32 %v2188_v8, %v2171_v20  ;;  %v2238_v12 = vmul.f32 %v5502_v22, %v5292_v30  ;;  %v1423_v25 = vld [vmem:[#allocation2 + $0x92] sm:$0xff] }
 0x2b7   : > { %v2197_v17 = vadd.f32 %v2189_v6, %v2172_v9  ;;  %v2239_v33 = vmul.f32 %v5502_v22, %v5438_v14  ;;  %v5656_v18 = vmul.f32 %v1122_v28, %v6421_v4  ;;  %v981_v55 = vsel %vm5632_vm3, %v6408_v41, %v977_v54  ;;  %v6424_v8 = vld [vmem:[#allocation37_spill] sm:$0xff] }
 0x2b8   : > { %v1365_v11 = vadd.f32 %v1357_v24, %v1340_v34  ;;  %v2501_v38 = vmul.f32 %v5353_v31, %v5639_v43  ;;  %v2221_v30 = vadd.f32 %v2213_v29, %v2196_v57  ;;  %v2263_v3 = vmul.f32 %v5505_v19, %v5296_v21 }
 0x2b9   : > { %6422 = vst [vmem:[#allocation38_spill] sm:$0xff] %v5656_v18  ;;  %v2222_v40 = vadd.f32 %v2214_v46, %v2197_v17  ;;  %v2264_v28 = vmul.f32 %v5505_v19, %v5442_v50  ;;  %v2484_v42 = vadd.f32 %v2476_v7, %v2459_v0  ;;  %v2533_v13 = vadd.f32 %v2525_v62, %v2508_v51  ;;  %v6425_v46 = vld [vmem:[#allocation46_spill] sm:$0xff] }
 0x2ba   : > { %v2550_v41 = vmul.f32 %v5380_v58, %v5611_v26  ;;  %v2288_v54 = vmul.f32 %v5539_v36, %v6397_v35  ;;  %v2246_v20 = vadd.f32 %v2238_v12, %v2221_v30  ;;  %v2289_v21 = vmul.f32 %v5539_v36, %v5444_v39 }
 0x2bb   : > { %v5675_v34 = vld [vmem:[#allocation2 + $0x70] sm:$0xff]  ;;  %v2247_v9 = vadd.f32 %v2239_v33, %v2222_v40  ;;  %v1382_v7 = vmul.f32 %v6423_v63, %v5663_v37  ;;  %v1432_v6 = vmul.f32 %v6424_v8, %v1423_v25  ;;  %v5688_v29 = vsel %vm5601_vm1, %v985_v52, %v981_v55  ;;  %v6426_v25 = vld [vmem:[#allocation49_spill] sm:$0xff] }
 0x2bc   : > { %v5677_v16 = vld [vmem:[#allocation2 + $0x71] sm:$0xff]  ;;  %v2526_v35 = vmul.f32 %v5377_v5, %v5665_v44  ;;  %v2313_v0 = vmul.f32 %v5545_v27, %v5438_v14  ;;  %v2271_v51 = vadd.f32 %v2263_v3, %v2246_v20  ;;  %v2314_v57 = vmul.f32 %v5545_v27, %v6425_v46 }
 0x2bd   : > { %v5679_v24 = vld [vmem:[#allocation2 + $0x72] sm:$0xff]  ;;  %v2272_v62 = vadd.f32 %v2264_v28, %v2247_v9  ;;  %v1390_v17 = vadd.f32 %v1382_v7, %v1365_v11  ;;  %v2509_v12 = vadd.f32 %v2501_v38, %v2484_v42  ;;  %v2558_v33 = vadd.f32 %v2550_v41, %v2533_v13  ;;  %v6428_v38 = vld [vmem:[#allocation50_spill] sm:$0xff] }
 0x2be   : > { %2391 = vst.msk [vmem:[#allocation2 + $0x71] sm:$0xff] %vm1213_vm2, %v5656_v18  ;;  %v2575_v2 = vmul.f32 %v5392_v61, %v5639_v43  ;;  %v2338_v52 = vmul.f32 %v5548_v32, %v5442_v50  ;;  %v2296_v4 = vadd.f32 %v2288_v54, %v2271_v51  ;;  %v2339_v30 = vmul.f32 %v5548_v32, %v6426_v25  ;;  %v6427_v40 = vld [vmem:[#allocation25_spill] sm:$0xff] }
 0x2bf   : > { %v2297_v55 = vadd.f32 %v2289_v21, %v2272_v62  ;;  %v1415_v3 = vadd.f32 %v6427_v40, %v1390_v17  ;;  %v2363_v28 = vmul.f32 %v5558_v60, %v5444_v39  ;;  %v2364_v42 = vmul.f32 %v5558_v60, %v6428_v38  ;;  %v6430_v40 = vld [vmem:[#allocation34_spill] sm:$0xff] }
 0x2c0   : > { %v2321_v20 = vadd.f32 %v2313_v0, %v2296_v4  ;;  %v995_v41 = vmul.f32 1.0614054, %v5688_v29  ;;  %v2534_v9 = vadd.f32 %v2526_v35, %v2509_v12  ;;  %v2583_v54 = vadd.f32 %v2575_v2, %v2558_v33 }
 0x2c1   : > { %v2322_v11 = vadd.f32 %v2314_v57, %v2297_v55  ;;  %v5709_v13 = vadd.f32 %v1432_v6, %v1415_v3  ;;  %v2600_v21 = vmul.f32 %v5361_v45, %v5665_v44  ;;  %v6429_v55 = vld [vmem:[#allocation33_spill] sm:$0xff] }
 0x2c2   : > { %v2346_v0 = vadd.f32 %v2338_v52, %v2321_v20  ;;  %v1003_v52 = vadd.f32 -1.4531521, %v995_v41 }
 0x2c3   : > { %v2347_v51 = vadd.f32 %v2339_v30, %v2322_v11  ;;  %v5721_v62 = vmul.f32 0.70710677, %v5709_v13  ;;  %v2608_v4 = vadd.f32 %v2600_v21, %v2583_v54 }
 0x2c4   : > { %v2371_v57 = vadd.f32 %v2363_v28, %v2346_v0  ;;  %v6432_v0 = vld [vmem:[#allocation22_spill] sm:$0xff] }
 0x2c5   : > { %v5714_v63 = vld [vmem:[#allocation2 + $0x70] sm:$0xff]  ;;  %v2372_v17 = vadd.f32 %v2364_v42, %v2347_v51  ;;  %v1480_v12 = vand.u32 2147483647, %v5721_v62  ;;  %v1011_v42 = vmul.f32 %v1003_v52, %v5688_v29  ;;  %v1067_v51 = vsub.f32 0.0, %v6432_v0 }
 0x2c6   : > { %v5716_v7 = vld [vmem:[#allocation2 + $0x71] sm:$0xff]  ;;  %v2551_v6 = vmul.f32 %v5380_v58, %v5714_v63  ;;  %v2379_v30 = vadd.f32 %v2371_v57, %v6429_v55  ;;  %vm1464_vm10 = vcmp.ge.f32.partialorder %v5721_v62, 0.0  ;;  %v1448_v62 = vmul.f32 0.5, %v5709_v13 }
 0x2c7   : > { %v5718_v8 = vld [vmem:[#allocation2 + $0x72] sm:$0xff]  ;;  %v2576_v35 = vmul.f32 %v5392_v61, %v5716_v7  ;;  %v2380_v3 = vadd.f32 %v2372_v17, %v6430_v40  ;;  %v1488_v20 = vmul.f32 0.3275911, %v1480_v12  ;;  %v6431_v61 = vld [vmem:[#allocation26_spill] sm:$0xff]  ;;  %v1019_v41 = vadd.f32 1.4214138, %v1011_v42 }
 0x2c8   : > { %v2559_v33 = vadd.f32 %v2551_v6, %v2534_v9  ;;  %v2601_v2 = vmul.f32 %v5361_v45, %v5718_v8  ;;  %v2616_v28 = vadd.f32 %v2608_v4, %v6431_v61  ;;  %v1696_v4 = vsub.f32 0.0, %v1480_v12 }
 0x2c9   : > { %v2991_v18 = vpack.c.bf16 %v2380_v3, %v2379_v30  ;;  %v1496_v48 = vadd.f32 1.0, %v1488_v20  ;;  %v2191_v13 = vmul.f32 %v5496_v15, %v6426_v25 }
 0x2ca   : > { %v2584_v11 = vadd.f32 %v2576_v35, %v2559_v33  ;;  %v1027_v35 = vmul.f32 %v1019_v41, %v5688_v29  ;;  %v1704_v20 = vmul.f32 %v1696_v4, %v1480_v12 }
 0x2cb   : > { %3564 = vmatmul.msk.bf16.gmra.mxu2 %vm1213_vm2, %v2991_v18  ;;  %3806 = vrcp.f32 %v1496_v48  ;;  %v1613_v57 = vand.u32 2147483648, %v1496_v48  ;;  %vm1607_vm4 = vweird.f32 %v1496_v48  ;;  %v1611_v61 = vand.u32 2147483647, %v1496_v48 }
 0x2cc   : > { %v2609_v58 = vadd.f32 %v2601_v2, %v2584_v11  ;;  %v1075_v18 = vmul.f32 %v1067_v51, %v6432_v0  ;;  %v1035_v2 = vadd.f32 -0.28449672, %v1027_v35  ;;  %v1719_v42 = vmul.f32 1.442695, %v1704_v20 }
 0x2cd   : > { %vm1612_vm7 = vcmp.eq.f32.partialorder %v1611_v61, 8.507059e+37 }
 0x2ce   : > { %v2617_v9 = vadd.f32 %v2609_v58, %v4705_v59  ;;  %v1614_v59 = vor.u32 1.1754944e-38, %v1613_v57  ;;  %v1090_v52 = vmul.f32 1.442695, %v1075_v18  ;;  %v1043_v30 = vmul.f32 %v1035_v2, %v5688_v29 }
 0x2cf   : > { %v2410_v18 = vmul.f32 %v5611_v26, %v5269_v56 }
 0x2d0   : > { %v3000_v54 = vpack.c.bf16 %v2617_v9, %v2616_v28  ;;  %3808 = vpow2.f32 %v1090_v52  ;;  %v1051_v28 = vadd.f32 0.2548296, %v1043_v30 }
 0x2d1   : > { %v3807_v21 = vpop.eup %3806  ;;  %3810 = vpow2.f32 %v1719_v42  ;;  %v2411_v42 = vmul.f32 %v5714_v63, %v5269_v56  ;;  %v2502_v56 = vmul.f32 %v5716_v7, %v5353_v31 }
 0x2d2   : > { %3553 = vmatmul.msk.bf16.gmra.mxu3 %vm1213_vm2, %v3000_v54  ;;  %v1603_v6 = vmul.f32 %v3807_v21, %v1496_v48  ;;  %vm1608_vm5 = vweird.f32 %v3807_v21  ;;  %v1059_v54 = vmul.f32 %v1051_v28, %v5688_v29  ;;  %v2427_v29 = vmul.f32 %v5639_v43, %v6398_v49 }
 0x2d3   : > { %vm1609_vm6 = vmor %vm1607_vm4, %vm1608_vm5  ;;  %v2477_v43 = vmul.f32 %v5714_v63, %v5339_v10  ;;  %v2174_v28 = vmul.f32 %v5492_v23, %v6425_v46 }
 0x2d4   : > { %v1604_v17 = vsub.f32 1.0, %v1603_v6  ;;  %v2435_v52 = vadd.f32 %v2427_v29, %v2410_v18  ;;  %v2290_v29 = vmul.f32 %v5539_v36, %v6428_v38 }
 0x2d6   : > { %v1605_v33 = vmul.f32 %v3807_v21, %v1604_v17  ;;  %v3809_v41 = vpop.eup %3808 }
 0x2d7   : > { %v1099_v6 = vmul.f32 %v3809_v41, %v1059_v54  ;;  %v3811_v17 = vpop.eup %3810  ;;  %v2199_v41 = vadd.f32 %v2191_v13, %v2174_v28  ;;  %v2242_v28 = vmul.f32 %v5502_v22, %v5675_v34 }
 0x2d8   : > { %v1606_v58 = vadd.f32 %v3807_v21, %v1605_v33 }
 0x2d9   : > { %v1107_v61 = vsub.f32 1.0, %v1099_v6 }
 0x2da   : > { %v1610_v55 = vsel %vm1609_vm6, %v3807_v21, %v1606_v58  ;;  %v6433_v21 = vld [vmem:[#allocation20_spill] sm:$0xff] }
 0x2db   : > { %v1615_v40 = vsel %vm1612_vm7, %v1614_v59, %v1610_v55  ;;  %vm835_vm9 = vcmp.ge.f32.partialorder %v6433_v21, 0.0  ;;  %v1472_v59 = vsel %vm1464_vm10, 1.0, %v6337_v47  ;;  %v2452_v55 = vmul.f32 %v5665_v44, %v5282_v53 }
 0x2dc   : > { %v1624_v3 = vmul.f32 1.0614054, %v1615_v40  ;;  %v843_v33 = vsel %vm835_vm9, 1.0, %v6337_v47  ;;  %v2173_v47 = vmul.f32 %v5492_v23, %v5438_v14  ;;  %v2190_v44 = vmul.f32 %v5496_v15, %v5442_v50 }
 0x2dd   : > { %v1115_v58 = vmul.f32 %v1107_v61, %v843_v33  ;;  %v2215_v14 = vmul.f32 %v5499_v1, %v5444_v39  ;;  %v6436_v61 = vld [vmem:[#allocation52_spill] sm:$0xff]  ;;  %v6437_v33 = vld [vmem:[#allocation53_spill] sm:$0xff] }
 0x2de   : > { %v1632_v11 = vadd.f32 -1.4531521, %v1624_v3  ;;  %v2198_v54 = vadd.f32 %v2190_v44, %v2173_v47 }
 0x2df   : > { %v1123_v26 = vadd.f32 1.0, %v1115_v58 }
 0x2e0   : > { %v1640_v48 = vmul.f32 %v1632_v11, %v1615_v40  ;;  %v2460_v11 = vadd.f32 %v2452_v55, %v2435_v52  ;;  %v2223_v63 = vadd.f32 %v2215_v14, %v2198_v54  ;;  %v2192_v55 = vmul.f32 %v5496_v15, %v6436_v61 }
 0x2e1   : > { %v2267_v14 = vmul.f32 %v5505_v19, %v5677_v16 }
 0x2e2   : > { %v1648_v9 = vadd.f32 1.4214138, %v1640_v48 }
 0x2e4   : > { %v1656_v0 = vmul.f32 %v1648_v9, %v1615_v40  ;;  %v2428_v9 = vmul.f32 %v5716_v7, %v6398_v49  ;;  %v2240_v49 = vmul.f32 %v5502_v22, %v6425_v46  ;;  %v2291_v46 = vmul.f32 %v5539_v36, %v6437_v33 }
 0x2e6   : > { %v1664_v51 = vadd.f32 -0.28449672, %v1656_v0  ;;  %v2216_v0 = vmul.f32 %v5499_v1, %v6428_v38  ;;  %v2436_v21 = vadd.f32 %v2428_v9, %v2411_v42  ;;  %v2248_v18 = vadd.f32 %v2240_v49, %v2223_v63 }
 0x2e7   : > { %v2176_v38 = vmul.f32 %v5492_v23, %v5675_v34  ;;  %v2365_v42 = vmul.f32 %v5558_v60, %v6437_v33  ;;  %v2366_v9 = vmul.f32 %v5558_v60, %v5679_v24 }
 0x2e8   : > { %v1672_v35 = vmul.f32 %v1664_v51, %v1615_v40  ;;  %v2485_v51 = vadd.f32 %v2477_v43, %v2460_v11  ;;  %v2224_v6 = vadd.f32 %v2216_v0, %v2199_v41  ;;  %v2341_v43 = vmul.f32 %v5548_v32, %v5677_v16 }
 0x2ea   : > { %v1680_v57 = vadd.f32 0.2548296, %v1672_v35  ;;  %v6435_v35 = vld [vmem:[#allocation51_spill] sm:$0xff] }
 0x2eb   : > { %v2241_v39 = vmul.f32 %v5502_v22, %v6435_v35  ;;  %v2175_v52 = vmul.f32 %v5492_v23, %v6435_v35  ;;  %v2340_v23 = vmul.f32 %v5548_v32, %v6436_v61 }
 0x2ec   : > { %v1688_v12 = vmul.f32 %v1680_v57, %v1615_v40  ;;  %v6434_v40 = vld [vmem:[#allocation18_spill] sm:$0xff]  ;;  %v2453_v57 = vmul.f32 %v5718_v8, %v5282_v53  ;;  %v2315_v53 = vmul.f32 %v5545_v27, %v6435_v35  ;;  %v2292_v35 = vmul.f32 %v5539_v36, %v5679_v24 }
 0x2ed   : > { %v819_v3 = vmul.f32 0.5, %v6434_v40  ;;  %v2249_v7 = vadd.f32 %v2241_v39, %v2224_v6 }
 0x2ee   : > { %v1728_v2 = vmul.f32 %v3811_v17, %v1688_v12  ;;  %v2265_v17 = vmul.f32 %v5505_v19, %v6426_v25  ;;  %v2266_v12 = vmul.f32 %v5505_v19, %v6436_v61  ;;  %v2316_v25 = vmul.f32 %v5545_v27, %v5675_v34 }
 0x2ef   : > { %v5774_v50 = vmul.f32 %v1123_v26, %v819_v3 }
 0x2f0   : > { %v1736_v4 = vsub.f32 1.0, %v1728_v2  ;;  %v2510_v2 = vadd.f32 %v2502_v56, %v2485_v51  ;;  %v2273_v58 = vadd.f32 %v2265_v17, %v2248_v18 }
 0x2f2   : > { %v1744_v30 = vmul.f32 %v1736_v4, %v1472_v59  ;;  %v2527_v59 = vmul.f32 %v5718_v8, %v5377_v5  ;;  %v2274_v4 = vadd.f32 %v2266_v12, %v2249_v7  ;;  %v2193_v8 = vmul.f32 %v5496_v15, %v5677_v16 }
 0x2f3   : > { %v2200_v15 = vadd.f32 %v2192_v55, %v2175_v52 }
 0x2f4   : > { %v1752_v20 = vadd.f32 1.0, %v1744_v30  ;;  %v2218_v30 = vmul.f32 %v5499_v1, %v5679_v24  ;;  %v2299_v11 = vadd.f32 %v2291_v46, %v2274_v4  ;;  %v2201_v47 = vadd.f32 %v2193_v8, %v2176_v38 }
 0x2f5   : > { %v2535_v39 = vadd.f32 %v2527_v59, %v2510_v2  ;;  %v6440_v2 = vld [vmem:[#allocation45_spill] sm:$0xff] }
 0x2f6   : > { %v5764_v48 = vmul.f32 %v1752_v20, %v1448_v62  ;;  %v2217_v62 = vmul.f32 %v5499_v1, %v6437_v33  ;;  %v2298_v20 = vadd.f32 %v2290_v29, %v2273_v58  ;;  %v2324_v13 = vadd.f32 %v2316_v25, %v2299_v11  ;;  %v6438_v29 = vld [vmem:[#allocation41_spill] sm:$0xff]  ;;  %v6439_v33 = vld [vmem:[#allocation47_spill] sm:$0xff]  ;;  %v6441_v58 = vld [vmem:[#allocation48_spill] sm:$0xff] }
 0x2f7   : > { %v2226_v41 = vadd.f32 %v2218_v30, %v2201_v47  ;;  %v5839_v25 = vld [vmem:[#allocation2 + $0x91] sm:$0xff]  ;;  %v2553_v30 = vmul.f32 %v6440_v2, %v5663_v37 }
 0x2f8   : > { %2157 = vst.msk [vmem:[#allocation2 + $0x81] sm:$0xff] %vm1213_vm2, %v5764_v48  ;;  %v2323_v44 = vadd.f32 %v2315_v53, %v2298_v20  ;;  %v2225_v54 = vadd.f32 %v2217_v62, %v2200_v15  ;;  %v2349_v56 = vadd.f32 %v2341_v43, %v2324_v13  ;;  %v2343_v55 = vmul.f32 %v5839_v25, %v5548_v32 }
 0x2f9   : > { %v2578_v47 = vmul.f32 %v6441_v58, %v5839_v25 }
 0x2fa   : > { %v2348_v51 = vadd.f32 %v2340_v23, %v2323_v44  ;;  %v2250_v34 = vadd.f32 %v2242_v28, %v2225_v54  ;;  %v2374_v49 = vadd.f32 %v2366_v9, %v2349_v56 }
 0x2fc   : > { %v2373_v6 = vadd.f32 %v2365_v42, %v2348_v51  ;;  %v2275_v17 = vadd.f32 %v2267_v14, %v2250_v34  ;;  %v2382_v46 = vadd.f32 %v2374_v49, %v6439_v33 }
 0x2fe   : > { %v2300_v38 = vadd.f32 %v2292_v35, %v2275_v17 }
 0x2ff   : > { %v2234_v40 = vld [vmem:[#allocation2 + $0x80] sm:$0xff] }
 0x300   : > { %v2259_v3 = vld [vmem:[#allocation2 + $0x81] sm:$0xff]  ;;  %v2243_v1 = vmul.f32 %v5502_v22, %v2234_v40  ;;  %v2461_v22 = vadd.f32 %v2453_v57, %v2436_v21  ;;  %v2317_v53 = vmul.f32 %v5545_v27, %v2234_v40  ;;  %v2318_v21 = vmul.f32 %v5545_v27, %v5663_v37 }
 0x301   : > { %v2284_v26 = vld [vmem:[#allocation2 + $0x82] sm:$0xff]  ;;  %v2268_v0 = vmul.f32 %v5505_v19, %v2259_v3  ;;  %v2381_v19 = vadd.f32 %v2373_v6, %v6438_v29 }
 0x302   : > { %2392 = vst.msk [vmem:[#allocation2 + $0x81] sm:$0xff] %vm1213_vm2, %v5774_v50  ;;  %v2251_v63 = vadd.f32 %v2243_v1, %v2226_v41  ;;  %v2293_v12 = vmul.f32 %v5539_v36, %v2284_v26  ;;  %v2342_v36 = vmul.f32 %v5548_v32, %v2259_v3  ;;  %v2325_v40 = vadd.f32 %v2317_v53, %v2300_v38  ;;  %v2685_v53 = vld [vmem:[#allocation2] sm:$0xff] }
 0x303   : > { %v2992_v52 = vpack.c.bf16 %v2382_v46, %v2381_v19  ;;  %v2367_v3 = vmul.f32 %v5558_v60, %v2284_v26  ;;  %v2683_v46 = vld [vmem:[#allocation10] sm:$0xff] }
 0x304   : > { %v2276_v61 = vadd.f32 %v2268_v0, %v2251_v63  ;;  %v2350_v43 = vadd.f32 %v2342_v36, %v2325_v40  ;;  %v6443_v0 = vld [vmem:[#allocation38_spill] sm:$0xff] }
 0x305   : > { %3565 = vmatmul.msk.bf16.gmra.mxu2 %vm1213_vm2, %v2992_v52  ;;  %v2727_v52 = vld [vmem:[#allocation2 + $0x2] sm:$0xff] }
 0x306   : > { %v2375_v1 = vadd.f32 %v2367_v3, %v2350_v43  ;;  %v5922_v3 = vperm.slane %v2683_v46, 3 }
 0x309   : > { %v2469_v18 = vld [vmem:[#allocation2 + $0x80] sm:$0xff] }
 0x30a   : > { %v2494_v7 = vld [vmem:[#allocation2 + $0x81] sm:$0xff]  ;;  %v2478_v57 = vmul.f32 %v5339_v10, %v2469_v18  ;;  %v2552_v59 = vmul.f32 %v6440_v2, %v2469_v18  ;;  %v5846_v10 = vld [vmem:[#allocation2 + $0x92] sm:$0xff]  ;;  %v5898_v2 = vperm.slane %v2683_v46, 1 }
 0x30b   : > { %v2519_v16 = vld [vmem:[#allocation2 + $0x82] sm:$0xff]  ;;  %v2503_v24 = vmul.f32 %v5353_v31, %v2494_v7  ;;  %v2577_v4 = vmul.f32 %v6441_v58, %v2494_v7  ;;  %v2301_v31 = vadd.f32 %v2293_v12, %v2276_v61  ;;  %v2368_v20 = vmul.f32 %v5558_v60, %v5846_v10 }
 0x30c   : > { %v2486_v8 = vadd.f32 %v2478_v57, %v2461_v22  ;;  %v2528_v27 = vmul.f32 %v5377_v5, %v2519_v16  ;;  %v2560_v62 = vadd.f32 %v2552_v59, %v2535_v39  ;;  %v2602_v23 = vmul.f32 %v5361_v45, %v2519_v16  ;;  %v6442_v60 = vld [vmem:[#allocation39_spill] sm:$0xff] }
 0x30d   : > { %v2326_v5 = vadd.f32 %v2318_v21, %v2301_v31  ;;  %v2603_v13 = vmul.f32 %v5361_v45, %v5846_v10  ;;  %v2383_v54 = vadd.f32 %v2375_v1, %v6442_v60  ;;  %v5892_v21 = vperm.slane %v2683_v46, 0 }
 0x30e   : > { %v2511_v11 = vadd.f32 %v2503_v24, %v2486_v8  ;;  %v2585_v32 = vadd.f32 %v2577_v4, %v2560_v62  ;;  %v2702_v24 = vld [vmem:[#allocation2 + $0x1] sm:$0xff]  ;;  %v5906_v4 = vperm.slane %v2683_v46, 2 }
 0x30f   : > { %v2351_v28 = vadd.f32 %v2343_v55, %v2326_v5  ;;  %v2694_v36 = vmul.f32 %v5892_v21, %v2685_v53  ;;  %v2711_v58 = vmul.f32 %v5898_v2, %v2702_v24 }
 0x310   : > { %v2536_v15 = vadd.f32 %v2528_v27, %v2511_v11  ;;  %v2610_v26 = vadd.f32 %v2602_v23, %v2585_v32  ;;  %v2736_v62 = vmul.f32 %v5906_v4, %v2727_v52  ;;  %v5927_v11 = vperm.slane %v2683_v46, 4 }
 0x311   : > { %v2376_v42 = vadd.f32 %v2368_v20, %v2351_v28  ;;  %v2719_v27 = vadd.f32 %v2711_v58, %v2694_v36 }
 0x312   : > { %v2561_v44 = vadd.f32 %v2553_v30, %v2536_v15  ;;  %v2618_v51 = vadd.f32 %v2610_v26, %v6443_v0 }
 0x313   : > { %v2384_v41 = vadd.f32 %v2376_v42, %v5764_v48  ;;  %v2744_v23 = vadd.f32 %v2736_v62, %v2719_v27  ;;  %v5945_v42 = vperm.slane %v2683_v46, 6 }
 0x314   : > { %v2586_v9 = vadd.f32 %v2578_v47, %v2561_v44  ;;  %v5939_v44 = vperm.slane %v2683_v46, 5 }
 0x315   : > { %v2993_v34 = vpack.c.bf16 %v2384_v41, %v2383_v54 }
 0x316   : > { %v2611_v14 = vadd.f32 %v2603_v13, %v2586_v9 }
 0x317   : > { %3566 = vmatmul.msk.bf16.gmra.mxu2 %vm1213_vm2, %v2993_v34 }
 0x318   : > { %v2619_v56 = vadd.f32 %v2611_v14, %v5774_v50  ;;  %v5951_v14 = vperm.slane %v2683_v46, 7 }
 0x31a   : > { %v3001_v63 = vpack.c.bf16 %v2619_v56, %v2618_v51 }
 0x31c   : > { %3554 = vmatmul.msk.bf16.gmra.mxu3 %vm1213_vm2, %v3001_v63 }
 0x322   : > { %v2097_v22 = vpop.f32.mrf.mxu2 }
 0x323   : > { %v2104_v45 = vrot.slane %v2097_v22, 1  ;;  %v2105_v6 = vrot.slane %v2097_v22, 2  ;;  %v2106_v49 = vrot.slane %v2097_v22, 3  ;;  %v5865_v35 = vperm.slane %v2097_v22, 0 }
 0x324   : > { %v2107_v50 = vrot.slane %v2097_v22, 4  ;;  %v2108_v61 = vrot.slane %v2097_v22, 5  ;;  %v2109_v12 = vrot.slane %v2097_v22, 6  ;;  %v2110_v18 = vrot.slane %v2097_v22, 7 }
 0x325   : > { %v5867_v39 = vperm.slane %v2104_v45, 0  ;;  %v5869_v48 = vperm.slane %v2105_v6, 0  ;;  %v5871_v17 = vperm.slane %v2106_v49, 0  ;;  %2620 = vst [vmem:[#allocation1] ss:$4 sm:$0xff] %v5865_v35 }
 0x326   : > { %2629 = vst [vmem:[#allocation1 + $0x20] ss:$4 sm:$0xff] %v5865_v35  ;;  %v5881_v7 = vperm.slane %v2107_v50, 0  ;;  %v5883_v16 = vperm.slane %v2108_v61, 0  ;;  %v5885_v19 = vperm.slane %v2109_v12, 0  ;;  %v5888_v33 = vperm.slane %v2110_v18, 0 }
 0x327   : > { %2622 = vst [vmem:[#allocation1 + $0x1] ss:$4 sm:$0xff] %v5867_v39  ;;  %v5967_v18 = vld [vmem:[#allocation10 + $0x8] ss:$0 sm:$0xff] }
 0x328   : > { %2624 = vst [vmem:[#allocation1 + $0x2] ss:$4 sm:$0xff] %v5869_v48 }
 0x329   : > { %2626 = vst [vmem:[#allocation1 + $0x3] ss:$4 sm:$0xff] %v5871_v17 }
 0x32a   : > { %2631 = vst [vmem:[#allocation1 + $0x21] ss:$4 sm:$0xff] %v5867_v39  ;;  %v5901_v59 = vpop.f32.mrf.mxu2 }
 0x32b   : > { %2633 = vst [vmem:[#allocation1 + $0x22] ss:$4 sm:$0xff] %v5869_v48  ;;  %v2111_v38 = vrot.slane %v5901_v59, 1  ;;  %v2112_v55 = vrot.slane %v5901_v59, 2  ;;  %v2113_v31 = vrot.slane %v5901_v59, 3  ;;  %v5917_v30 = vperm.slane %v5901_v59, 0 }
 0x32c   : > { %2635 = vst [vmem:[#allocation1 + $0x23] ss:$4 sm:$0xff] %v5871_v17  ;;  %v2114_v41 = vrot.slane %v5901_v59, 4  ;;  %v2115_v0 = vrot.slane %v5901_v59, 5  ;;  %v2116_v51 = vrot.slane %v5901_v59, 6  ;;  %v2117_v49 = vrot.slane %v5901_v59, 7 }
 0x32d   : > { %v5920_v40 = vperm.slane %v2111_v38, 0  ;;  %v5924_v20 = vperm.slane %v2112_v55, 0  ;;  %v5932_v5 = vperm.slane %v2113_v31, 0 }
 0x32e   : > { %v5975_v24 = vperm.slane %v2115_v0, 0  ;;  %v5981_v38 = vperm.slane %v2116_v51, 0  ;;  %v5984_v55 = vperm.slane %v2117_v49, 0  ;;  %v3623_v49 = vld [vmem:[%s6265_s11 + $0x30] sm:$0xff] }
 0x330   : > { %v2627_v29 = vld.sshfl [vmem:[#allocation1] sm:$0xff pattern:$0x73625140] }
 0x331   : > { %2637 = vst [vmem:[#allocation1] ss:$4 sm:$0xff] %v5881_v7  ;;  %v2712_v28 = vmul.f32 %v5898_v2, %v2627_v29  ;;  %v2786_v26 = vmul.f32 %v5927_v11, %v2627_v29 }
 0x332   : > { %2638 = vst [vmem:[#allocation1 + $0x1] ss:$4 sm:$0xff] %v5883_v16 }
 0x333   : > { %2639 = vst [vmem:[#allocation1 + $0x2] ss:$4 sm:$0xff] %v5885_v19  ;;  %v5894_v57 = vld.sshfl [vmem:[#allocation1 + $0x20] sm:$0xff pattern:$0x73625140] }
 0x334   : > { %2640 = vst [vmem:[#allocation1 + $0x3] ss:$4 sm:$0xff] %v5888_v33  ;;  %v2787_v6 = vmul.f32 %v5927_v11, %v5894_v57  ;;  %v2861_v53 = vmul.f32 %v5951_v14, %v5894_v57 }
 0x335   : > { %2642 = vst [vmem:[#allocation1 + $0x20] ss:$4 sm:$0xff] %v5881_v7 }
 0x336   : > { %2643 = vst [vmem:[#allocation1 + $0x21] ss:$4 sm:$0xff] %v5883_v16 }
 0x337   : > { %2644 = vst [vmem:[#allocation1 + $0x22] ss:$4 sm:$0xff] %v5885_v19 }
 0x338   : > { %2645 = vst [vmem:[#allocation1 + $0x23] ss:$4 sm:$0xff] %v5888_v33 }
 0x339   : > { %2675 = vst [vmem:[#allocation2 + $0x11] sm:$0xff] %v2627_v29  ;;  %v5969_v29 = vperm.slane %v2114_v41, 0  ;;  %v3624_v41 = vld [vmem:[%s6265_s11 + $0x38] sm:$0xff] }
 0x33a   : > { %2676 = vst [vmem:[#allocation2 + $0x21] sm:$0xff] %v5894_v57  ;;  %3272 = vmatpush.bf16.msrb.mxu0 %v3624_v41 }
 0x33b   : > { %v5912_v8 = vld.sshfl [vmem:[#allocation1] sm:$0xff pattern:$0x73625140] }
 0x33c   : > { %2677 = vst [vmem:[#allocation2 + $0x31] sm:$0xff] %v5912_v8 }
 0x33d   : > { %2647 = vst [vmem:[#allocation1] ss:$4 sm:$0xff] %v5917_v30 }
 0x33e   : > { %2648 = vst [vmem:[#allocation1 + $0x1] ss:$4 sm:$0xff] %v5920_v40  ;;  %3273 = vmatpush.bf16.msrb.mxu0 %v3623_v49 }
 0x33f   : > { %v5930_v32 = vld.sshfl [vmem:[#allocation1 + $0x20] sm:$0xff pattern:$0x73625140]  ;;  %2649 = vst [vmem:[#allocation1 + $0x2] ss:$4 sm:$0xff] %v5924_v20 }
 0x340   : > { %2678 = vst [vmem:[#allocation2 + $0x41] sm:$0xff] %v5930_v32  ;;  %v2686_v43 = vld [vmem:[#allocation2 + $0x10] sm:$0xff] }
 0x341   : > { %v2728_v15 = vld [vmem:[#allocation2 + $0x12] sm:$0xff]  ;;  %v2695_v47 = vmul.f32 %v5892_v21, %v2686_v43  ;;  %v2761_v1 = vmul.f32 %v5922_v3, %v2686_v43  ;;  %2650 = vst [vmem:[#allocation1 + $0x3] ss:$4 sm:$0xff] %v5932_v5  ;;  %v5942_v13 = vld [vmem:[#allocation2 + $0x20] sm:$0xff] }
 0x342   : > { %2652 = vst [vmem:[#allocation1 + $0x20] ss:$4 sm:$0xff] %v5917_v30  ;;  %v2737_v60 = vmul.f32 %v5906_v4, %v2728_v15  ;;  %v2762_v34 = vmul.f32 %v5922_v3, %v5942_v13  ;;  %v2811_v22 = vmul.f32 %v5939_v44, %v2728_v15  ;;  %v5960_v45 = vld [vmem:[#allocation2 + $0x22] sm:$0xff]  ;;  %v2836_v12 = vmul.f32 %v5945_v42, %v5942_v13 }
 0x343   : > { %v2720_v9 = vadd.f32 %v2712_v28, %v2695_v47  ;;  %v2769_v54 = vadd.f32 %v2761_v1, %v2744_v23  ;;  %2653 = vst [vmem:[#allocation1 + $0x21] ss:$4 sm:$0xff] %v5920_v40  ;;  %v5971_v46 = vld [vmem:[#allocation2 + $0x30] sm:$0xff]  ;;  %v2812_v59 = vmul.f32 %v5939_v44, %v5960_v45  ;;  %v2886_v23 = vmul.f32 %v5967_v18, %v5960_v45 }
 0x344   : > { %2654 = vst [vmem:[#allocation1 + $0x22] ss:$4 sm:$0xff] %v5924_v20  ;;  %v2837_v62 = vmul.f32 %v5945_v42, %v5971_v46  ;;  %v5992_v43 = vld [vmem:[#allocation2 + $0x32] sm:$0xff]  ;;  %v2862_v28 = vmul.f32 %v5951_v14, %v5912_v8 }
 0x345   : > { %v2745_v56 = vadd.f32 %v2737_v60, %v2720_v9  ;;  %v2794_v63 = vadd.f32 %v2786_v26, %v2769_v54  ;;  %2655 = vst [vmem:[#allocation1 + $0x23] ss:$4 sm:$0xff] %v5932_v5  ;;  %v2887_v9 = vmul.f32 %v5967_v18, %v5992_v43 }
 0x347   : > { %v2770_v50 = vadd.f32 %v2762_v34, %v2745_v56  ;;  %v2819_v61 = vadd.f32 %v2811_v22, %v2794_v63 }
 0x348   : > { %v5977_v36 = vld.sshfl [vmem:[#allocation1] sm:$0xff pattern:$0x73625140] }
 0x349   : > { %v2795_v58 = vadd.f32 %v2787_v6, %v2770_v50  ;;  %v2844_v52 = vadd.f32 %v2836_v12, %v2819_v61  ;;  %2657 = vst [vmem:[#allocation1] ss:$4 sm:$0xff] %v5969_v29 }
 0x34a   : > { %2658 = vst [vmem:[#allocation1 + $0x1] ss:$4 sm:$0xff] %v5975_v24 }
 0x34b   : > { %v2820_v27 = vadd.f32 %v2812_v59, %v2795_v58  ;;  %v2869_v31 = vadd.f32 %v2861_v53, %v2844_v52  ;;  %2659 = vst [vmem:[#allocation1 + $0x2] ss:$4 sm:$0xff] %v5981_v38  ;;  %v2696_v58 = vmul.f32 %v5892_v21, %v5942_v13 }
 0x34c   : > { %v5994_v15 = vld.sshfl [vmem:[#allocation1 + $0x20] sm:$0xff pattern:$0x73625140]  ;;  %2660 = vst [vmem:[#allocation1 + $0x3] ss:$4 sm:$0xff] %v5984_v55 }
 0x34d   : > { %v2845_v47 = vadd.f32 %v2837_v62, %v2820_v27  ;;  %v2894_v1 = vadd.f32 %v2886_v23, %v2869_v31  ;;  %2662 = vst [vmem:[#allocation1 + $0x20] ss:$4 sm:$0xff] %v5969_v29 }
 0x34e   : > { %2663 = vst [vmem:[#allocation1 + $0x21] ss:$4 sm:$0xff] %v5975_v24 }
 0x34f   : > { %v2870_v26 = vadd.f32 %v2862_v28, %v2845_v47  ;;  %v2910_v60 = vrot.slane %v2894_v1, 2  ;;  %v2911_v54 = vrot.slane %v2894_v1, 4  ;;  %2664 = vst [vmem:[#allocation1 + $0x22] ss:$4 sm:$0xff] %v5981_v38  ;;  %v2912_v51 = vrot.slane %v2894_v1, 6 }
 0x350   : > { %2665 = vst [vmem:[#allocation1 + $0x23] ss:$4 sm:$0xff] %v5984_v55  ;;  %v2958_v56 = vadd.f32 %v2894_v1, %v5865_v35  ;;  %v2716_v47 = vmul.f32 %v5898_v2, %v5977_v36  ;;  %v2717_v1 = vmul.f32 %v5898_v2, %v5994_v15 }
 0x351   : > { %v2895_v0 = vadd.f32 %v2887_v9, %v2870_v26  ;;  %2679 = vst [vmem:[#allocation2 + $0x51] sm:$0xff] %v5977_v36  ;;  %v2959_v34 = vadd.f32 %v2910_v60, %v5867_v39  ;;  %v2960_v22 = vadd.f32 %v2911_v54, %v5869_v48  ;;  %v2961_v12 = vadd.f32 %v2912_v51, %v5871_v17 }
 0x352   : > { %2680 = vst [vmem:[#allocation2 + $0x61] sm:$0xff] %v5994_v15 }
 0x353   : > { %v2913_v63 = vrot.slane %v2895_v0, 2  ;;  %v6013_v6 = vld.sshfl [vmem:[#allocation1] sm:$0xff pattern:$0x73625140]  ;;  %v2914_v50 = vrot.slane %v2895_v0, 4  ;;  %v2915_v61 = vrot.slane %v2895_v0, 6  ;;  %v2962_v53 = vadd.f32 %v2895_v0, %v5865_v35 }
 0x354   : > { %2681 = vst [vmem:[#allocation2 + $0x71] sm:$0xff] %v6013_v6  ;;  %v2713_v35 = vmul.f32 %v5898_v2, %v5894_v57  ;;  %v2718_v9 = vmul.f32 %v5898_v2, %v6013_v6 }
 0x355   : > { %3149 = vst [vmem:[#allocation1] ss:$4 sm:$0xff] %v2958_v56  ;;  %v2963_v59 = vadd.f32 %v2913_v63, %v5867_v39  ;;  %v2964_v27 = vadd.f32 %v2914_v50, %v5869_v48  ;;  %v2965_v23 = vadd.f32 %v2915_v61, %v5871_v17  ;;  %v3622_v17 = vld [vmem:[%s6265_s11 + $0x28] sm:$0xff]  ;;  %v2738_v63 = vmul.f32 %v5906_v4, %v5960_v45 }
 0x356   : > { %3151 = vst [vmem:[#allocation1 + $0x1] ss:$4 sm:$0xff] %v2959_v34  ;;  %v2721_v57 = vadd.f32 %v2713_v35, %v2696_v58  ;;  %3274 = vmatpush.bf16.msrb.mxu0 %v3622_v17  ;;  %v3621_v58 = vld [vmem:[%s6265_s11 + $0x20] sm:$0xff]  ;;  %v2791_v35 = vmul.f32 %v5927_v11, %v5994_v15 }
 0x357   : > { %v6024_v52 = vld.sshfl [vmem:[#allocation1 + $0x20] sm:$0xff pattern:$0x73625140]  ;;  %3153 = vst [vmem:[#allocation1 + $0x2] ss:$4 sm:$0xff] %v2960_v22  ;;  %v2763_v22 = vmul.f32 %v5922_v3, %v5971_v46 }
 0x358   : > { %2682 = vst [vmem:[#allocation2 + $0x81] sm:$0xff] %v6024_v52  ;;  %v6028_v62 = vld [vmem:[#allocation2 + $0x50] sm:$0xff] }
 0x359   : > { %v6030_v31 = vld [vmem:[#allocation2 + $0x52] sm:$0xff]  ;;  %v6035_v13 = vld [vmem:[#allocation2 + $0x60] sm:$0xff]  ;;  %v2699_v39 = vmul.f32 %v5892_v21, %v6028_v62  ;;  %3155 = vst [vmem:[#allocation1 + $0x3] ss:$4 sm:$0xff] %v2961_v12 }
 0x35a   : > { %v6041_v48 = vld [vmem:[#allocation2 + $0x62] sm:$0xff]  ;;  %v2700_v28 = vmul.f32 %v5892_v21, %v6035_v13  ;;  %3157 = vst [vmem:[#allocation1 + $0x20] ss:$4 sm:$0xff] %v2962_v53  ;;  %v2741_v41 = vmul.f32 %v5906_v4, %v6030_v31  ;;  %v2766_v50 = vmul.f32 %v5922_v3, %v6035_v13  ;;  %3275 = vmatpush.bf16.msrb.mxu0 %v3621_v58 }
 0x35b   : > { %v2692_v26 = vld [vmem:[#allocation2 + $0x70] sm:$0xff]  ;;  %v2724_v60 = vadd.f32 %v2716_v47, %v2699_v39  ;;  %3159 = vst [vmem:[#allocation1 + $0x21] ss:$4 sm:$0xff] %v2963_v59  ;;  %v2742_v56 = vmul.f32 %v5906_v4, %v6041_v48  ;;  %v2746_v59 = vadd.f32 %v2738_v63, %v2721_v57  ;;  %v2788_v63 = vmul.f32 %v5927_v11, %v5912_v8 }
 0x35c   : > { %v2734_v54 = vld [vmem:[#allocation2 + $0x72] sm:$0xff]  ;;  %v2701_v0 = vmul.f32 %v5892_v21, %v2692_v26  ;;  %v2725_v51 = vadd.f32 %v2717_v1, %v2700_v28  ;;  %v2767_v34 = vmul.f32 %v5922_v3, %v2692_v26  ;;  %3161 = vst [vmem:[#allocation1 + $0x22] ss:$4 sm:$0xff] %v2964_v27 }
 0x35d   : > { %v2749_v49 = vadd.f32 %v2741_v41, %v2724_v60  ;;  %3163 = vst [vmem:[#allocation1 + $0x23] ss:$4 sm:$0xff] %v2965_v23  ;;  %v2743_v12 = vmul.f32 %v5906_v4, %v2734_v54  ;;  %v2792_v23 = vmul.f32 %v5927_v11, %v6013_v6  ;;  %v2771_v1 = vadd.f32 %v2763_v22, %v2746_v59  ;;  %v6075_v41 = vld [vmem:[#allocation2 + $0x40] sm:$0xff] }
 0x35e   : > { %v2726_v61 = vadd.f32 %v2718_v9, %v2701_v0  ;;  %v2750_v53 = vadd.f32 %v2742_v56, %v2725_v51  ;;  %v2816_v60 = vmul.f32 %v5939_v44, %v6041_v48  ;;  %v2793_v0 = vmul.f32 %v5927_v11, %v6024_v52 }
 0x35f   : > { %v2759_v27 = vld [vmem:[#allocation2 + $0x80] sm:$0xff]  ;;  %v2774_v45 = vadd.f32 %v2766_v50, %v2749_v49  ;;  %v2817_v56 = vmul.f32 %v5939_v44, %v2734_v54  ;;  %v2841_v49 = vmul.f32 %v5945_v42, %v2692_v26  ;;  %v2843_v50 = vmul.f32 %v5945_v42, %v5663_v37 }
 0x360   : > { %v2751_v39 = vadd.f32 %v2743_v12, %v2726_v61  ;;  %v2768_v47 = vmul.f32 %v5922_v3, %v2759_v27  ;;  %v2775_v28 = vadd.f32 %v2767_v34, %v2750_v53  ;;  %v2809_v17 = vld [vmem:[#allocation2 + $0x82] sm:$0xff]  ;;  %v3620_v34 = vld [vmem:[%s6265_s11 + $0x18] sm:$0xff]  ;;  %v2842_v59 = vmul.f32 %v5945_v42, %v2759_v27 }
 0x361   : > { %v2799_v9 = vadd.f32 %v2791_v35, %v2774_v45  ;;  %v2818_v12 = vmul.f32 %v5939_v44, %v2809_v17  ;;  %v2796_v58 = vadd.f32 %v2788_v63, %v2771_v1  ;;  %v2698_v45 = vmul.f32 %v6075_v41, %v5892_v21  ;;  %3276 = vmatpush.bf16.msrb.mxu0 %v3620_v34 }
 0x362   : > { %v2776_v57 = vadd.f32 %v2768_v47, %v2751_v39  ;;  %v2800_v51 = vadd.f32 %v2792_v23, %v2775_v28  ;;  %v2866_v39 = vmul.f32 %v5951_v14, %v6013_v6  ;;  %v6094_v47 = vld [vmem:[#allocation2 + $0x42] sm:$0xff]  ;;  %v2867_v37 = vmul.f32 %v5951_v14, %v6024_v52 }
 0x363   : > { %v2824_v22 = vadd.f32 %v2816_v60, %v2799_v9  ;;  %v2868_v23 = vmul.f32 %v5951_v14, %v5839_v25  ;;  %v2813_v27 = vmul.f32 %v5939_v44, %v5992_v43  ;;  %v2715_v1 = vmul.f32 %v5898_v2, %v5930_v32 }
 0x364   : > { %v2801_v61 = vadd.f32 %v2793_v0, %v2776_v57  ;;  %v2825_v53 = vadd.f32 %v2817_v56, %v2800_v51  ;;  %v2891_v6 = vmul.f32 %v5967_v18, %v2734_v54  ;;  %v2892_v0 = vmul.f32 %v5967_v18, %v2809_v17 }
 0x365   : > { %v2849_v35 = vadd.f32 %v2841_v49, %v2824_v22  ;;  %v2893_v52 = vmul.f32 %v5967_v18, %v5846_v10  ;;  %v2723_v51 = vadd.f32 %v2715_v1, %v2698_v45  ;;  %v2740_v25 = vmul.f32 %v6094_v47, %v5906_v4 }
 0x366   : > { %v2826_v26 = vadd.f32 %v2818_v12, %v2801_v61  ;;  %v2850_v28 = vadd.f32 %v2842_v59, %v2825_v53  ;;  %v2821_v34 = vadd.f32 %v2813_v27, %v2796_v58  ;;  %v2765_v63 = vmul.f32 %v5922_v3, %v6028_v62 }
 0x367   : > { %v2874_v9 = vadd.f32 %v2866_v39, %v2849_v35  ;;  %v2838_v27 = vmul.f32 %v5945_v42, %v6075_v41 }
 0x368   : > { %v2851_v60 = vadd.f32 %v2843_v50, %v2826_v26  ;;  %v2875_v57 = vadd.f32 %v2867_v37, %v2850_v28 }
 0x369   : > { %v2899_v56 = vadd.f32 %v2891_v6, %v2874_v9 }
 0x36a   : > { %v2876_v22 = vadd.f32 %v2868_v23, %v2851_v60  ;;  %v2900_v49 = vadd.f32 %v2892_v0, %v2875_v57  ;;  %v2748_v60 = vadd.f32 %v2740_v25, %v2723_v51  ;;  %v2714_v25 = vmul.f32 %v5898_v2, %v5912_v8 }
 0x36b   : > { %v2925_v61 = vrot.slane %v2899_v56, 2  ;;  %v2926_v54 = vrot.slane %v2899_v56, 4  ;;  %v2927_v50 = vrot.slane %v2899_v56, 6  ;;  %v6113_v12 = vadd.f32 %v2899_v56, %v5917_v30 }
 0x36c   : > { %v2901_v17 = vadd.f32 %v2893_v52, %v2876_v22  ;;  %v2928_v53 = vrot.slane %v2900_v49, 2  ;;  %v2929_v10 = vrot.slane %v2900_v49, 4  ;;  %v2930_v59 = vrot.slane %v2900_v49, 6 }
 0x36d   : > { %v6116_v45 = vadd.f32 %v2925_v61, %v5920_v40  ;;  %v6119_v58 = vadd.f32 %v2926_v54, %v5924_v20  ;;  %v6122_v35 = vadd.f32 %v2927_v50, %v5932_v5  ;;  %v6125_v39 = vadd.f32 %v2900_v49, %v5969_v29 }
 0x36e   : > { %v2931_v26 = vrot.slane %v2901_v17, 2  ;;  %v2932_v28 = vrot.slane %v2901_v17, 4  ;;  %v2933_v37 = vrot.slane %v2901_v17, 6  ;;  %v6128_v23 = vadd.f32 %v2928_v53, %v5975_v24 }
 0x36f   : > { %v6133_v1 = vadd.f32 %v2929_v10, %v5981_v38  ;;  %v6136_v9 = vadd.f32 %v2930_v59, %v5984_v55  ;;  %v6139_v6 = vadd.f32 %v2901_v17, %v5969_v29  ;;  %v2846_v56 = vadd.f32 %v2838_v27, %v2821_v34 }
 0x370   : > { %v6142_v57 = vadd.f32 %v2931_v26, %v5975_v24  ;;  %v6145_v0 = vadd.f32 %v2932_v28, %v5981_v38  ;;  %v6148_v52 = vadd.f32 %v2933_v37, %v5984_v55  ;;  %v2773_v22 = vadd.f32 %v2765_v63, %v2748_v60  ;;  %v3619_v63 = vld [vmem:[%s6265_s11 + $0x10] sm:$0xff] }
 0x371   : > { %v2863_v49 = vmul.f32 %v5951_v14, %v5930_v32  ;;  %v2790_v61 = vmul.f32 %v5927_v11, %v5977_v36  ;;  %v2888_v24 = vmul.f32 %v5967_v18, %v6094_v47  ;;  %v2815_v38 = vmul.f32 %v5939_v44, %v6030_v31  ;;  %3277 = vmatpush.bf16.msrb.mxu0 %v3619_v63 }
 0x372   : > { %v2697_v55 = vmul.f32 %v5971_v46, %v5892_v21  ;;  %v2739_v17 = vmul.f32 %v5992_v43, %v5906_v4  ;;  %v2840_v53 = vmul.f32 %v5945_v42, %v6035_v13  ;;  %v3618_v21 = vld [vmem:[%s6265_s11 + $0x8] sm:$0xff]  ;;  %v2764_v2 = vmul.f32 %v6075_v41, %v5922_v3 }
 0x373   : > { %v2871_v29 = vadd.f32 %v2863_v49, %v2846_v56  ;;  %v2798_v54 = vadd.f32 %v2790_v61, %v2773_v22  ;;  %v2789_v4 = vmul.f32 %v5927_v11, %v5930_v32  ;;  %v2865_v43 = vmul.f32 %v5951_v14, %v5994_v15  ;;  %v3617_v11 = vld [vmem:[%s6265_s11] sm:$0xff] }
 0x374   : > { %v2722_v50 = vadd.f32 %v2714_v25, %v2697_v55  ;;  %v2814_v27 = vmul.f32 %v6094_v47, %v5939_v44  ;;  %v3164_v32 = vld.sshfl [vmem:[#allocation1] sm:$0xff pattern:$0x73625140]  ;;  %v2839_v22 = vmul.f32 %v5945_v42, %v6028_v62  ;;  %v2890_v49 = vmul.f32 %v5967_v18, %v6041_v48 }
 0x375   : > { %v2896_v51 = vadd.f32 %v2888_v24, %v2871_v29  ;;  %v2823_v34 = vadd.f32 %v2815_v38, %v2798_v54  ;;  %3278 = vmatpush.bf16.msrb.mxu0 %v3618_v21  ;;  %v3165_v44 = vld.sshfl [vmem:[#allocation1 + $0x20] sm:$0xff pattern:$0x73625140]  ;;  %v2864_v29 = vmul.f32 %v5951_v14, %v5977_v36  ;;  %v2889_v38 = vmul.f32 %v5967_v18, %v6030_v31 }
 0x376   : > { %v2747_v46 = vadd.f32 %v2739_v17, %v2722_v50  ;;  %v3204_v47 = vpack.c.bf16 %v3165_v44, %v3164_v32 }
 0x377   : > { %v2916_v10 = vrot.slane %v2896_v51, 2  ;;  %v2917_v8 = vrot.slane %v2896_v51, 4  ;;  %v2848_v59 = vadd.f32 %v2840_v53, %v2823_v34  ;;  %v2918_v26 = vrot.slane %v2896_v51, 6 }
 0x378   : > { %v2772_v28 = vadd.f32 %v2764_v2, %v2747_v46  ;;  %v2966_v60 = vadd.f32 %v2896_v51, %v5881_v7 }
 0x379   : > { %v2967_v13 = vadd.f32 %v2916_v10, %v5883_v16  ;;  %v2968_v3 = vadd.f32 %v2917_v8, %v5885_v19  ;;  %v2873_v41 = vadd.f32 %v2865_v43, %v2848_v59  ;;  %v2969_v56 = vadd.f32 %v2918_v26, %v5888_v33  ;;  %3279 = vmatpush.bf16.msrb.mxu0 %v3617_v11 }
 0x37a   : > { %v2797_v37 = vadd.f32 %v2789_v4, %v2772_v28  ;;  %3166 = vst [vmem:[#allocation1] ss:$4 sm:$0xff] %v2966_v60 }
 0x37b   : > { %3167 = vst [vmem:[#allocation1 + $0x1] ss:$4 sm:$0xff] %v2967_v13  ;;  %v2898_v54 = vadd.f32 %v2890_v49, %v2873_v41 }
 0x37c   : > { %v2822_v15 = vadd.f32 %v2814_v27, %v2797_v37  ;;  %3168 = vst [vmem:[#allocation1 + $0x2] ss:$4 sm:$0xff] %v2968_v3  ;;  %3280 = vmatmul.bf16.vlgmr.msrb.gmra.mxu0 %v3204_v47 }
 0x37d   : > { %3169 = vst [vmem:[#allocation1 + $0x3] ss:$4 sm:$0xff] %v2969_v56  ;;  %v2922_v62 = vrot.slane %v2898_v54, 2  ;;  %v2923_v34 = vrot.slane %v2898_v54, 4  ;;  %v2924_v63 = vrot.slane %v2898_v54, 6  ;;  %v2974_v31 = vadd.f32 %v2898_v54, %v5917_v30 }
 0x37e   : > { %v2847_v61 = vadd.f32 %v2839_v22, %v2822_v15 }
 0x37f   : > { %v2975_v17 = vadd.f32 %v2922_v62, %v5920_v40  ;;  %v2976_v53 = vadd.f32 %v2923_v34, %v5924_v20 }
 0x380   : > { %v2872_v24 = vadd.f32 %v2864_v29, %v2847_v61 }
 0x382   : > { %v2897_v42 = vadd.f32 %v2889_v38, %v2872_v24 }
 0x384   : > { %v2919_v48 = vrot.slane %v2897_v42, 2  ;;  %v2920_v51 = vrot.slane %v2897_v42, 4  ;;  %v2921_v55 = vrot.slane %v2897_v42, 6  ;;  %v2970_v25 = vadd.f32 %v2897_v42, %v5881_v7  ;;  %v3174_v18 = vld.sshfl [vmem:[#allocation1] sm:$0xff pattern:$0x73625140] }
 0x385   : > { %v2977_v7 = vadd.f32 %v2924_v63, %v5932_v5  ;;  %3176 = vst [vmem:[#allocation1] ss:$4 sm:$0xff] %v2974_v31 }
 0x386   : > { %v2971_v50 = vadd.f32 %v2919_v48, %v5883_v16  ;;  %v2972_v14 = vadd.f32 %v2920_v51, %v5885_v19  ;;  %v2973_v36 = vadd.f32 %v2921_v55, %v5888_v33  ;;  %3170 = vst [vmem:[#allocation1 + $0x20] ss:$4 sm:$0xff] %v2970_v25 }
 0x387   : > { %3177 = vst [vmem:[#allocation1 + $0x1] ss:$4 sm:$0xff] %v2975_v17 }
 0x388   : > { %3171 = vst [vmem:[#allocation1 + $0x21] ss:$4 sm:$0xff] %v2971_v50 }
 0x389   : > { %3172 = vst [vmem:[#allocation1 + $0x22] ss:$4 sm:$0xff] %v2972_v14 }
 0x38a   : > { %3173 = vst [vmem:[#allocation1 + $0x23] ss:$4 sm:$0xff] %v2973_v36 }
 0x38b   : > { %3178 = vst [vmem:[#allocation1 + $0x2] ss:$4 sm:$0xff] %v2976_v53 }
 0x38c   : > { %3179 = vst [vmem:[#allocation1 + $0x3] ss:$4 sm:$0xff] %v2977_v7 }
 0x391   : > { %v3175_v16 = vld.sshfl [vmem:[#allocation1 + $0x20] sm:$0xff pattern:$0x73625140] }
 0x392   : > { %v3205_v19 = vpack.c.bf16 %v3175_v16, %v3174_v18  ;;  %3180 = vst [vmem:[#allocation1 + $0x20] ss:$4 sm:$0xff] %v6113_v12 }
 0x393   : > { %3181 = vst [vmem:[#allocation1 + $0x21] ss:$4 sm:$0xff] %v6116_v45  ;;  %v3184_v33 = vld.sshfl [vmem:[#allocation1] sm:$0xff pattern:$0x73625140]  ;;  %v3097_v45 = vpop.f32.mrf.mxu2 }
 0x394   : > { %3285 = vmatmul.bf16.gmra.mxu0 %v3205_v19  ;;  %3182 = vst [vmem:[#allocation1 + $0x22] ss:$4 sm:$0xff] %v6119_v58  ;;  %v3042_v58 = vpop.f32.mrf.mxu3 }
 0x395   : > { %3183 = vst [vmem:[#allocation1 + $0x23] ss:$4 sm:$0xff] %v6122_v35 }
 0x396   : > { %3186 = vst [vmem:[#allocation1] ss:$4 sm:$0xff] %v6125_v39 }
 0x397   : > { %3187 = vst [vmem:[#allocation1 + $0x1] ss:$4 sm:$0xff] %v6128_v23  ;;  %v3098_v23 = vadd.f32 %v3097_v45, %v3042_v58 }
 0x398   : > { %3188 = vst [vmem:[#allocation1 + $0x2] ss:$4 sm:$0xff] %v6133_v1  ;;  %v3739_v1 = vld [vmem:[%s6444_s25] ss:$0 sm:$0xff] }
 0x399   : > { %3189 = vst [vmem:[#allocation1 + $0x3] ss:$4 sm:$0xff] %v6136_v9 }
 0x39b   : > { %v3099_v35 = vpop.f32.mrf.mxu2 }
 0x39c   : > { %v3185_v30 = vld.sshfl [vmem:[#allocation1 + $0x20] sm:$0xff pattern:$0x73625140]  ;;  %v3044_v39 = vpop.f32.mrf.mxu3 }
 0x39d   : > { %3190 = vst [vmem:[#allocation1 + $0x20] ss:$4 sm:$0xff] %v6139_v6  ;;  %v3206_v40 = vpack.c.bf16 %v3185_v30, %v3184_v33  ;;  %v3100_v10 = vadd.f32 %v3099_v35, %v3044_v39 }
 0x39e   : > { %3191 = vst [vmem:[#allocation1 + $0x21] ss:$4 sm:$0xff] %v6142_v57 }
 0x39f   : > { %3192 = vst [vmem:[#allocation1 + $0x22] ss:$4 sm:$0xff] %v6145_v0 }
 0x3a0   : > { %3193 = vst [vmem:[#allocation1 + $0x23] ss:$4 sm:$0xff] %v6148_v52  ;;  %v3194_v5 = vld.sshfl [vmem:[#allocation1] sm:$0xff pattern:$0x73625140] }
 0x3a3   : > { %v3102_v0 = vpop.f32.mrf.mxu2 }
 0x3a4   : > { %3290 = vmatmul.bf16.gmra.mxu0 %v3206_v40  ;;  %v3047_v52 = vpop.f32.mrf.mxu3 }
 0x3a5   : > { %v3103_v26 = vadd.f32 %v3102_v0, %v3047_v52 }
 0x3a7   : > { %v3195_v20 = vld.sshfl [vmem:[#allocation1 + $0x20] sm:$0xff pattern:$0x73625140] }
 0x3a8   : > { %v3207_v12 = vpack.c.bf16 %v3195_v20, %v3194_v5 }
 0x3ab   : > { %v3104_v8 = vpop.f32.mrf.mxu2 }
 0x3ac   : > { %v3049_v59 = vpop.f32.mrf.mxu3 }
 0x3ad   : > { %v3105_v37 = vadd.f32 %v3104_v8, %v3049_v59 }
 0x3b3   : > { %v3107_v13 = vpop.f32.mrf.mxu2 }
 0x3b4   : > { %3295 = vmatmul.bf16.gmra.mxu0 %v3207_v12  ;;  %v3052_v27 = vpop.f32.mrf.mxu3 }
 0x3b5   : > { %v3108_v56 = vadd.f32 %v3107_v13, %v3052_v27 }
 0x3bb   : > { %v3109_v11 = vpop.f32.mrf.mxu2 }
 0x3bc   : > { %v3054_v22 = vpop.f32.mrf.mxu3 }
 0x3bd   : > { %v3110_v44 = vadd.f32 %v3109_v11, %v3054_v22 }
 0x3c3   : > { %v3112_v29 = vpop.f32.mrf.mxu2 }
 0x3c4   : > { %v3057_v24 = vpop.f32.mrf.mxu3 }
 0x3c5   : > { %v3113_v38 = vadd.f32 %v3112_v29, %v3057_v24 }
 0x3cb   : > { %v3114_v51 = vpop.f32.mrf.mxu2 }
 0x3cc   : > { %v3059_v55 = vpop.f32.mrf.mxu3 }
 0x3cd   : > { %v3115_v25 = vadd.f32 %v3114_v51, %v3059_v55 }
 0x3f9   : > { %v3281_v9 = vpop.f32.mrf.mxu0 }
 0x3fa   : > { %v3301_v6 = vadd.f32 %v3281_v9, %v3098_v23 }
 0x3fc   : > { %v3313_v57 = vadd.f32 %v3739_v1, %v3301_v6 }
 0x3fe   : > { %3321 = vst.msk [vmem:[%s6223_s23] sm:$0xff] %vm601_vm0, %v3313_v57 }
 0x401   : > { %v3283_v21 = vpop.f32.mrf.mxu0 }
 0x402   : > { %v3302_v46 = vadd.f32 %v3283_v21, %v3100_v10 }
 0x404   : > { %v3314_v2 = vadd.f32 %v3739_v1, %v3302_v46 }
 0x406   : > { %3322 = vst.msk [vmem:[%s6223_s23 + $0x8] sm:$0xff] %vm601_vm0, %v3314_v2 }
 0x411   : > { %v3286_v28 = vpop.f32.mrf.mxu0 }
 0x412   : > { %v3303_v4 = vadd.f32 %v3286_v28, %v3103_v26 }
 0x414   : > { %v3315_v43 = vadd.f32 %v3739_v1, %v3303_v4 }
 0x416   : > { %3323 = vst.msk [vmem:[%s6223_s23 + $0x10] sm:$0xff] %vm601_vm0, %v3315_v43 }
 0x419   : > { %v3288_v60 = vpop.f32.mrf.mxu0 }
 0x41a   : > { %v3304_v3 = vadd.f32 %v3288_v60, %v3105_v37 }
 0x41c   : > { %v3316_v41 = vadd.f32 %v3739_v1, %v3304_v3 }
 0x41e   : > { %3324 = vst.msk [vmem:[%s6223_s23 + $0x18] sm:$0xff] %vm601_vm0, %v3316_v41 }
 0x421   : > { %v3291_v32 = vpop.f32.mrf.mxu0 }
 0x422   : > { %v3305_v15 = vadd.f32 %v3291_v32, %v3108_v56 }
 0x424   : > { %v3317_v49 = vadd.f32 %v3739_v1, %v3305_v15 }
 0x426   : > { %3325 = vst.msk [vmem:[%s6223_s23 + $0x20] sm:$0xff] %vm601_vm0, %v3317_v49 }
 0x429   : > { %v3293_v47 = vpop.f32.mrf.mxu0 }
 0x42a   : > { %v3306_v61 = vadd.f32 %v3293_v47, %v3110_v44 }
 0x42c   : > { %v3318_v54 = vadd.f32 %v3739_v1, %v3306_v61 }
 0x42e   : > { %3326 = vst.msk [vmem:[%s6223_s23 + $0x28] sm:$0xff] %vm601_vm0, %v3318_v54 }
 0x431   : > { %v3296_v42 = vpop.f32.mrf.mxu0 }
 0x432   : > { %v3307_v62 = vadd.f32 %v3296_v42, %v3113_v38 }
 0x434   : > { %v3319_v48 = vadd.f32 %v3739_v1, %v3307_v62 }
 0x436   : > { %3327 = vst.msk [vmem:[%s6223_s23 + $0x30] sm:$0xff] %vm601_vm0, %v3319_v48 }
 0x439   : > { %v3298_v34 = vpop.f32.mrf.mxu0 }
 0x43a   : > { %v3308_v63 = vadd.f32 %v3298_v34, %v3115_v25 }
 0x43c   : > { %v3320_v50 = vadd.f32 %v3739_v1, %v3308_v63 }
 0x43e   : > { %3328 = vst.msk [vmem:[%s6223_s23 + $0x38] sm:$0xff] %vm601_vm0, %v3320_v50 }
 0x43f PF: > { %p26_p3 = scmp.ge.s32.totalorder %s4242_s3, 4   ;;  %s6446_s25 = smov %s4062_s26 }
 0x440   : > { %s6447_s26 = smov %s4066_s27  ;;  %s6448_s27 = smov %s4253_s12 }
 0x441   : > { %s6449_s28 = smov %s4242_s3  ;;  %28 = sbr.rel (!%p26_p3) target bundleno = 12 (0xc), region = 153 }
 0x446   :  { %3350 = vsyncpa [#allocation4], 1 }
 0x447   :  { %3352 = vsyncpa [#allocation4 + $0x1], 1 }
 0x448   :  { %3353 = vsyncpa [#allocation6], 1 }
 0x449   :  { %3354 = vsyncpa [#allocation9], 1 }
 0x44a   :  { %3355 = vsyncpa [#allocation12], 1 }

</bundles_post_ra>
